<compile_context>
chip_gen: v7x
topology: tpu7x:2x2x1
jax: 0.10.0
libtpu: 0.0.40
codegen_flags: <defaults>
</compile_context>

<pallas_src>
import math
import functools

import jax
import jax.numpy as jnp
from jax.experimental import pallas as pl
from jax.experimental.pallas import tpu as pltpu


# ----------------------------- helpers -------------------------------------

def _round_up(x, m):
    return ((x + m - 1) // m) * m


def _ln(x, g, b, eps):
    # LayerNorm over the last dim, stats in f32. x: (L, D); g/b: (1, D).
    mu = jnp.mean(x, axis=-1, keepdims=True)
    var = jnp.mean((x - mu) ** 2, axis=-1, keepdims=True)
    return (x - mu) * jax.lax.rsqrt(var + eps) * g + b


def _heads_attention(q, k, v, mask, n_head, scale):
    """Multi-head scaled-dot attention, heads split/merged in-kernel.

    q: (Lq, D) f32, k/v: (Lk, D) f32, mask: (Lq, Lk) int32 (1 = attend).
    Returns (Lq, D) f32 (heads concatenated back along lanes).
    """
    D = q.shape[-1]
    dh = D // n_head
    outs = []
    for h in range(n_head):
        qh = (q[:, h * dh:(h + 1) * dh] * scale).astype(jnp.bfloat16)
        kh = k[:, h * dh:(h + 1) * dh].astype(jnp.bfloat16)
        vh = v[:, h * dh:(h + 1) * dh].astype(jnp.bfloat16)
        # contraction on Dh directly (no in-kernel transpose of K)
        s = jax.lax.dot_general(qh, kh, (((1,), (1,)), ((), ())),
                                preferred_element_type=jnp.float32)   # (Lq, Lk)
        s = jnp.where(mask > 0, s, jnp.float32(-1e9))                 # masked_fill(mask==0)
        s = s - jnp.max(s, axis=-1, keepdims=True)
        e = jnp.exp(s)
        p = e * pl.reciprocal(jnp.sum(e, axis=-1, keepdims=True), approx=True)
        outs.append(jnp.dot(p.astype(jnp.bfloat16), vh,
                            preferred_element_type=jnp.float32))      # (Lq, Dh)
    return jnp.concatenate(outs, axis=-1)                             # (Lq, D)


# ----------------------------- Pallas kernels ------------------------------

def _encoder_block_kernel(x_ref, mask_ref,
                          wqkv_ref, bqkv_ref, wo_ref, bo_ref, g1_ref, be1_ref,
                          w1_ref, b1_ref, w2_ref, b2_ref, g2_ref, be2_ref,
                          o_ref, *, n_head, scale, eps):
    x = x_ref[0].astype(jnp.float32)                                  # (L, D)
    D = x.shape[-1]
    # fused QKV projection (weights pre-concatenated at init)
    qkv = jnp.dot(x.astype(jnp.bfloat16), wqkv_ref[...],
                  preferred_element_type=jnp.float32) + bqkv_ref[...]  # (L, 3D)
    attn = _heads_attention(qkv[:, :D], qkv[:, D:2 * D], qkv[:, 2 * D:],
                            mask_ref[0], n_head, scale)
    o = jnp.dot(attn.astype(jnp.bfloat16), wo_ref[...],
                preferred_element_type=jnp.float32) + bo_ref[...]
    h1 = _ln(x + o, g1_ref[...], be1_ref[...], eps)                   # LN(attn + res)
    f = jnp.dot(h1.astype(jnp.bfloat16), w1_ref[...],
                preferred_element_type=jnp.float32) + b1_ref[...]
    f = jnp.maximum(f, 0.0)                                           # ReLU
    f2 = jnp.dot(f.astype(jnp.bfloat16), w2_ref[...],
                 preferred_element_type=jnp.float32) + b2_ref[...]
    out = _ln(h1 + f2, g2_ref[...], be2_ref[...], eps)                # LN(ffn + res)
    o_ref[0] = out.astype(o_ref.dtype)


def _decoder_block_kernel(trg_ref, enc_ref, tmask_ref, stmask_ref,
                          wqkv_ref, bqkv_ref, wo1_ref, bo1_ref, g1_ref, be1_ref,
                          wq_ref, bq_ref, wkv_ref, bkv_ref, wo2_ref, bo2_ref,
                          g2_ref, be2_ref,
                          w1_ref, b1_ref, w2_ref, b2_ref, g3_ref, be3_ref,
                          o_ref, *, n_head, scale, eps):
    x = trg_ref[0].astype(jnp.float32)                                # (Lt, D)
    enc = enc_ref[0].astype(jnp.float32)                              # (Ls, D)
    D = x.shape[-1]
    # masked self-attention
    qkv = jnp.dot(x.astype(jnp.bfloat16), wqkv_ref[...],
                  preferred_element_type=jnp.float32) + bqkv_ref[...]
    sa = _heads_attention(qkv[:, :D], qkv[:, D:2 * D], qkv[:, 2 * D:],
                          tmask_ref[0], n_head, scale)
    sa = jnp.dot(sa.astype(jnp.bfloat16), wo1_ref[...],
                 preferred_element_type=jnp.float32) + bo1_ref[...]
    h1 = _ln(x + sa, g1_ref[...], be1_ref[...], eps)
    # cross-attention: q from decoder state, fused K/V projection of encoder memory
    qc = jnp.dot(h1.astype(jnp.bfloat16), wq_ref[...],
                 preferred_element_type=jnp.float32) + bq_ref[...]     # (Lt, D)
    kv = jnp.dot(enc.astype(jnp.bfloat16), wkv_ref[...],
                 preferred_element_type=jnp.float32) + bkv_ref[...]    # (Ls, 2D)
    ca = _heads_attention(qc, kv[:, :D], kv[:, D:], stmask_ref[0], n_head, scale)
    ca = jnp.dot(ca.astype(jnp.bfloat16), wo2_ref[...],
                 preferred_element_type=jnp.float32) + bo2_ref[...]
    h2 = _ln(h1 + ca, g2_ref[...], be2_ref[...], eps)
    # FFN
    f = jnp.dot(h2.astype(jnp.bfloat16), w1_ref[...],
                preferred_element_type=jnp.float32) + b1_ref[...]
    f = jnp.maximum(f, 0.0)
    f2 = jnp.dot(f.astype(jnp.bfloat16), w2_ref[...],
                 preferred_element_type=jnp.float32) + b2_ref[...]
    out = _ln(h2 + f2, g3_ref[...], be3_ref[...], eps)
    o_ref[0] = out.astype(o_ref.dtype)


def _linear_out_kernel(x_ref, w_ref, b_ref, o_ref):
    y = jnp.dot(x_ref[...].astype(jnp.bfloat16), w_ref[...],
                preferred_element_type=jnp.float32) + b_ref[...]
    o_ref[...] = y.astype(o_ref.dtype)


# ----------------------------- kernel wrappers -----------------------------

def _param_spec(arr):
    nd = arr.ndim
    return pl.BlockSpec(arr.shape, lambda *_: (0,) * nd)


def encoder_block_fused(p, x, mask, n_head):
    B, L, D = x.shape
    scale = 1.0 / math.sqrt(D // n_head)
    names = ["wqkv", "bqkv", "wo", "bo", "g1", "be1",
             "w1", "b1", "w2", "b2", "g2", "be2"]
    weights = [p[n] for n in names]
    in_specs = ([pl.BlockSpec((1, L, D), lambda b: (b, 0, 0)),
                 pl.BlockSpec((1, L, L), lambda b: (b, 0, 0))]
                + [_param_spec(w) for w in weights])
    return pl.pallas_call(
        functools.partial(_encoder_block_kernel, n_head=n_head, scale=scale, eps=1e-5),
        out_shape=jax.ShapeDtypeStruct((B, L, D), jnp.float32),
        grid=(B,),
        in_specs=in_specs,
        out_specs=pl.BlockSpec((1, L, D), lambda b: (b, 0, 0)),
        compiler_params=pltpu.CompilerParams(dimension_semantics=("parallel",)),
    )(x, mask, *weights)


def decoder_block_fused(p, trg, enc, t_mask, st_mask, n_head):
    B, Lt, D = trg.shape
    Ls = enc.shape[1]
    scale = 1.0 / math.sqrt(D // n_head)
    names = ["wqkv", "bqkv", "wo1", "bo1", "g1", "be1",
             "wq", "bq", "wkv", "bkv", "wo2", "bo2", "g2", "be2",
             "w1", "b1", "w2", "b2", "g3", "be3"]
    weights = [p[n] for n in names]
    in_specs = ([pl.BlockSpec((1, Lt, D), lambda b: (b, 0, 0)),
                 pl.BlockSpec((1, Ls, D), lambda b: (b, 0, 0)),
                 pl.BlockSpec((1, Lt, Lt), lambda b: (b, 0, 0)),
                 pl.BlockSpec((1, Lt, Ls), lambda b: (b, 0, 0))]
                + [_param_spec(w) for w in weights])
    return pl.pallas_call(
        functools.partial(_decoder_block_kernel, n_head=n_head, scale=scale, eps=1e-5),
        out_shape=jax.ShapeDtypeStruct((B, Lt, D), jnp.float32),
        grid=(B,),
        in_specs=in_specs,
        out_specs=pl.BlockSpec((1, Lt, D), lambda b: (b, 0, 0)),
        compiler_params=pltpu.CompilerParams(dimension_semantics=("parallel",)),
    )(trg, enc, t_mask, st_mask, *weights)


def linear_padded(x, w_pad, b_pad, n_out, max_tm=128, max_tn=512):
    """x: (M, K) f32, w_pad: (K, Npad) bf16 with Npad % 128 == 0 (padded at init),
    b_pad: (1, Npad) f32. Returns (M, n_out) f32. M tiled so the grid is >= 2 when
    possible (both v7x TensorCores). K is tiny here so no K axis is needed.
    TODO(synk): add an "arbitrary" K grid axis + f32 accumulator for large d_model."""
    M, K = x.shape
    n_pad = w_pad.shape[1]
    tm = min(_round_up(max(M // 2, 1), 8), max_tm)
    m_pad = _round_up(M, tm)
    tn = min(n_pad, max_tn)
    xp = x if m_pad == M else jnp.pad(x, ((0, m_pad - M), (0, 0)))
    out = pl.pallas_call(
        _linear_out_kernel,
        out_shape=jax.ShapeDtypeStruct((m_pad, n_pad), jnp.float32),
        grid=(m_pad // tm, n_pad // tn),
        in_specs=[
            pl.BlockSpec((tm, K), lambda i, j: (i, 0)),
            pl.BlockSpec((K, tn), lambda i, j: (0, j)),
            pl.BlockSpec((1, tn), lambda i, j: (0, j)),
        ],
        out_specs=pl.BlockSpec((tm, tn), lambda i, j: (i, j)),
        compiler_params=pltpu.CompilerParams(
            dimension_semantics=("parallel", "parallel")),
    )(xp, w_pad, b_pad)
    return out[:M, :n_out]


# ----------------------------- parameter init ------------------------------

def _init_linear_params(key, fan_in, fan_out):
    kw, kb = jax.random.split(key)
    bound = 1.0 / math.sqrt(fan_in)
    w = jax.random.uniform(kw, (fan_in, fan_out), jnp.float32, -bound, bound)
    b = jax.random.uniform(kb, (fan_out,), jnp.float32, -bound, bound)
    return w, b


def init_encoder_block(key, d_model, d_hidden):
    ks = jax.random.split(key, 6)
    wq, bq = _init_linear_params(ks[0], d_model, d_model)
    wk, bk = _init_linear_params(ks[1], d_model, d_model)
    wv, bv = _init_linear_params(ks[2], d_model, d_model)
    wo, bo = _init_linear_params(ks[3], d_model, d_model)
    w1, b1 = _init_linear_params(ks[4], d_model, d_hidden)
    w2, b2 = _init_linear_params(ks[5], d_hidden, d_model)
    ones = jnp.ones((1, d_model), jnp.float32)
    zeros = jnp.zeros((1, d_model), jnp.float32)
    return {
        # pre-fused QKV (one (D, 3D) matmul inside the block kernel)
        "wqkv": jnp.concatenate([wq, wk, wv], axis=1).astype(jnp.bfloat16),
        "bqkv": jnp.concatenate([bq, bk, bv]).reshape(1, -1),
        "wo": wo.astype(jnp.bfloat16), "bo": bo.reshape(1, -1),
        "g1": ones, "be1": zeros,
        "w1": w1.astype(jnp.bfloat16), "b1": b1.reshape(1, -1),
        "w2": w2.astype(jnp.bfloat16), "b2": b2.reshape(1, -1),
        "g2": ones, "be2": zeros,
    }


def init_decoder_block(key, d_model, d_hidden):
    ks = jax.random.split(key, 10)
    wq, bq = _init_linear_params(ks[0], d_model, d_model)
    wk, bk = _init_linear_params(ks[1], d_model, d_model)
    wv, bv = _init_linear_params(ks[2], d_model, d_model)
    wo1, bo1 = _init_linear_params(ks[3], d_model, d_model)
    cqw, cqb = _init_linear_params(ks[4], d_model, d_model)
    ckw, ckb = _init_linear_params(ks[5], d_model, d_model)
    cvw, cvb = _init_linear_params(ks[6], d_model, d_model)
    wo2, bo2 = _init_linear_params(ks[7], d_model, d_model)
    w1, b1 = _init_linear_params(ks[8], d_model, d_hidden)
    w2, b2 = _init_linear_params(ks[9], d_hidden, d_model)
    ones = jnp.ones((1, d_model), jnp.float32)
    zeros = jnp.zeros((1, d_model), jnp.float32)
    return {
        "wqkv": jnp.concatenate([wq, wk, wv], axis=1).astype(jnp.bfloat16),
        "bqkv": jnp.concatenate([bq, bk, bv]).reshape(1, -1),
        "wo1": wo1.astype(jnp.bfloat16), "bo1": bo1.reshape(1, -1),
        "g1": ones, "be1": zeros,
        "wq": cqw.astype(jnp.bfloat16), "bq": cqb.reshape(1, -1),
        # pre-fused KV projection for the encoder memory
        "wkv": jnp.concatenate([ckw, cvw], axis=1).astype(jnp.bfloat16),
        "bkv": jnp.concatenate([ckb, cvb]).reshape(1, -1),
        "wo2": wo2.astype(jnp.bfloat16), "bo2": bo2.reshape(1, -1),
        "g2": ones, "be2": zeros,
        "w1": w1.astype(jnp.bfloat16), "b1": b1.reshape(1, -1),
        "w2": w2.astype(jnp.bfloat16), "b2": b2.reshape(1, -1),
        "g3": ones, "be3": zeros,
    }


def sinusoid_pos_encoding(max_len, d_model):
    pos = jnp.arange(max_len, dtype=jnp.float32)[:, None]
    i = jnp.arange(0, d_model, 2, dtype=jnp.float32)
    angle = pos / jnp.power(10000.0, i / d_model)
    pe = jnp.zeros((max_len, d_model), jnp.float32)
    pe = pe.at[:, 0::2].set(jnp.sin(angle))
    pe = pe.at[:, 1::2].set(jnp.cos(angle))
    return pe


def init_transformer(key, src_voc, trg_voc, d_model, d_hidden, n_block, max_len):
    keys = jax.random.split(key, 3 + 2 * n_block)
    out_w, out_b = _init_linear_params(keys[2], d_model, trg_voc)
    n_pad = _round_up(trg_voc, 128)                       # lane padding done once here
    params = {
        "pe": sinusoid_pos_encoding(max_len, d_model),
        "enc": {
            "emb": jax.random.normal(keys[0], (src_voc, d_model), jnp.float32),
            "blocks": [init_encoder_block(keys[3 + i], d_model, d_hidden)
                       for i in range(n_block)],
        },
        "dec": {
            "emb": jax.random.normal(keys[1], (trg_voc, d_model), jnp.float32),
            "blocks": [init_decoder_block(keys[3 + n_block + i], d_model, d_hidden)
                       for i in range(n_block)],
            "out_w": jnp.pad(out_w, ((0, 0), (0, n_pad - trg_voc))).astype(jnp.bfloat16),
            "out_b": jnp.pad(out_b, (0, n_pad - trg_voc)).reshape(1, -1),
        },
    }
    return params


# ----------------------------- model glue ----------------------------------

def embed(emb_table, pe, tokens):
    # TODO(synk): embedding gather (data-dependent lookup) kept in plain JAX.
    tok = jnp.take(emb_table, tokens, axis=0)             # (B, L, D)
    L = tokens.shape[1]
    return tok + pe[:L][None]                             # dropout = identity (eval)


def make_pad_mask(q, k, pad_idx):
    # (B, Lq, Lk) bool, True = attend (matches the PyTorch reference, which uses
    # src_pad_idx for both q and k).
    kq = (k != pad_idx)[:, None, :]
    qq = (q != pad_idx)[:, :, None]
    return kq & qq


def transformer_forward(params, src, trg, src_pad_idx, n_head, n_out):
    src_mask = make_pad_mask(src, src, src_pad_idx).astype(jnp.int32)
    src_trg_mask = make_pad_mask(trg, src, src_pad_idx).astype(jnp.int32)
    Lt = trg.shape[1]
    no_peak = jnp.tril(jnp.ones((Lt, Lt), dtype=bool))
    trg_mask = (make_pad_mask(trg, trg, src_pad_idx) & no_peak[None]).astype(jnp.int32)

    # encoder: one fused Pallas kernel per block
    x = embed(params["enc"]["emb"], params["pe"], src)
    for bp in params["enc"]["blocks"]:
        x = encoder_block_fused(bp, x, src_mask, n_head)
    enc_src = x

    # decoder: one fused Pallas kernel per block
    y = embed(params["dec"]["emb"], params["pe"], trg)
    for bp in params["dec"]["blocks"]:
        y = decoder_block_fused(bp, y, enc_src, trg_mask, src_trg_mask, n_head)

    B, L, D = y.shape
    out = linear_padded(y.reshape(B * L, D), params["dec"]["out_w"],
                        params["dec"]["out_b"], n_out)
    return out.reshape(B, L, -1)


# ----------------------------- main ----------------------------------------

if __name__ == "__main__":
    # hyperparameters (small, consistent with the module's constructor)
    src_pad_idx = 0
    trg_pad_idx = 0
    src_voc_size = 32
    trg_voc_size = 32
    d_model = 32
    n_head = 4
    max_len = 16
    d_hidden = 64
    n_block = 2

    B, L_src, L_trg = 2, 8, 8

    key = jax.random.PRNGKey(0)
    kp, ks, kt = jax.random.split(key, 3)

    params = init_transformer(kp, src_voc_size, trg_voc_size,
                              d_model, d_hidden, n_block, max_len)

    src = jax.random.randint(ks, (B, L_src), 1, src_voc_size, dtype=jnp.int32)
    trg = jax.random.randint(kt, (B, L_trg), 1, trg_voc_size, dtype=jnp.int32)
    # add some padding tokens to exercise the pad masks
    src = src.at[:, -2:].set(src_pad_idx)
    trg = trg.at[:, -1:].set(trg_pad_idx)

    fwd = jax.jit(functools.partial(transformer_forward,
                                    src_pad_idx=src_pad_idx,
                                    n_head=n_head,
                                    n_out=trg_voc_size))
    out = fwd(params, src, trg)
    out = jax.block_until_ready(out)
    assert out.shape == (B, L_trg, trg_voc_size)
    assert bool(jnp.all(jnp.isfinite(out)))
    print("KERNEL_OK")
</pallas_src>

<mosaic_0001>
module attributes {stable_mosaic.version = 11 : i64} {
  func.func @_linear_out_kernel(%arg0: i32, %arg1: i32, %arg2: memref<8x32xf32, #tpu.memory_space<vmem>>, %arg3: memref<32x128xbf16, #tpu.memory_space<vmem>>, %arg4: memref<1x128xf32, #tpu.memory_space<vmem>>, %arg5: memref<8x128xf32, #tpu.memory_space<vmem>>) attributes {dimension_semantics = [#tpu.dimension_semantics<parallel>, #tpu.dimension_semantics<parallel>], iteration_bounds = array<i64: 2, 1>, scalar_prefetch = 0 : i64, scratch_operands = 0 : i64, tpu.core_type = #tpu.core_type<tc>, window_params = [{transform_indices = @transform_0, window_bounds = array<i64: 8, 32>}, {transform_indices = @transform_1, window_bounds = array<i64: 32, 128>}, {transform_indices = @transform_2, window_bounds = array<i64: 1, 128>}, {transform_indices = @transform_3, window_bounds = array<i64: 8, 128>}]} {
    %c0 = arith.constant 0 : index
    %c0_0 = arith.constant 0 : index
    %0 = vector.load %arg2[%c0, %c0_0] : memref<8x32xf32, #tpu.memory_space<vmem>>, vector<8x32xf32>
    %1 = arith.truncf %0 : vector<8x32xf32> to vector<8x32xbf16>
    %c0_1 = arith.constant 0 : index
    %c0_2 = arith.constant 0 : index
    %2 = vector.load %arg3[%c0_1, %c0_2] : memref<32x128xbf16, #tpu.memory_space<vmem>>, vector<32x128xbf16>
    %cst = arith.constant dense<0.000000e+00> : vector<8x128xf32>
    %3 = tpu.matmul %1, %2, %cst {dimension_numbers = #tpu.dot_dimension_numbers<[1], [0], [0], [1], [0, 0, 1, 1], [], []>} : vector<8x32xbf16>, vector<32x128xbf16>, vector<8x128xf32> -> vector<8x128xf32>
    %c0_3 = arith.constant 0 : index
    %c0_4 = arith.constant 0 : index
    %4 = vector.load %arg4[%c0_3, %c0_4] : memref<1x128xf32, #tpu.memory_space<vmem>>, vector<1x128xf32>
    %5 = vector.broadcast %4 : vector<1x128xf32> to vector<8x128xf32>
    %6 = arith.addf %3, %5 : vector<8x128xf32>
    %c0_5 = arith.constant 0 : index
    %c0_6 = arith.constant 0 : index
    %7 = vector.load %arg5[%c0_5, %c0_6] : memref<8x128xf32, #tpu.memory_space<vmem>>, vector<8x128xf32>
    tpu.vector_store %arg5[%c0_5, %c0_6], %6 {strides = array<i32>} : memref<8x128xf32, #tpu.memory_space<vmem>>, vector<8x128xf32>,
    return
  }
  func.func @transform_0(%arg0: i32, %arg1: i32) -> (i32, i32) {
    %c0_i32 = arith.constant 0 : i32
    %c0_i32_0 = arith.constant 0 : i32
    return %arg0, %c0_i32 : i32, i32
  }
  func.func @transform_1(%arg0: i32, %arg1: i32) -> (i32, i32) {
    %c0_i32 = arith.constant 0 : i32
    %c0_i32_0 = arith.constant 0 : i32
    return %c0_i32, %arg1 : i32, i32
  }
  func.func @transform_2(%arg0: i32, %arg1: i32) -> (i32, i32) {
    %c0_i32 = arith.constant 0 : i32
    %c0_i32_0 = arith.constant 0 : i32
    return %c0_i32, %arg1 : i32, i32
  }
  func.func @transform_3(%arg0: i32, %arg1: i32) -> (i32, i32) {
    %c0_i32 = arith.constant 0 : i32
    return %arg0, %arg1 : i32, i32
  }
}

module attributes {stable_mosaic.version = 11 : i64} {
  func.func @_encoder_block_kernel(%arg0: i32, %arg1: memref<1x8x32xf32, #tpu.memory_space<vmem>>, %arg2: memref<1x8x8xi32, #tpu.memory_space<vmem>>, %arg3: memref<32x96xbf16, #tpu.memory_space<vmem>>, %arg4: memref<1x96xf32, #tpu.memory_space<vmem>>, %arg5: memref<32x32xbf16, #tpu.memory_space<vmem>>, %arg6: memref<1x32xf32, #tpu.memory_space<vmem>>, %arg7: memref<1x32xf32, #tpu.memory_space<vmem>>, %arg8: memref<1x32xf32, #tpu.memory_space<vmem>>, %arg9: memref<32x64xbf16, #tpu.memory_space<vmem>>, %arg10: memref<1x64xf32, #tpu.memory_space<vmem>>, %arg11: memref<64x32xbf16, #tpu.memory_space<vmem>>, %arg12: memref<1x32xf32, #tpu.memory_space<vmem>>, %arg13: memref<1x32xf32, #tpu.memory_space<vmem>>, %arg14: memref<1x32xf32, #tpu.memory_space<vmem>>, %arg15: memref<1x8x32xf32, #tpu.memory_space<vmem>>) attributes {dimension_semantics = [#tpu.dimension_semantics<parallel>], iteration_bounds = array<i64: 2>, scalar_prefetch = 0 : i64, scratch_operands = 0 : i64, tpu.core_type = #tpu.core_type<tc>, window_params = [{transform_indices = @transform_0, window_bounds = array<i64: 1, 8, 32>}, {transform_indices = @transform_1, window_bounds = array<i64: 1, 8, 8>}, {pipeline_mode = #tpu.pipeline_mode<synchronous>, transform_indices = @transform_2, window_bounds = array<i64: 32, 96>}, {pipeline_mode = #tpu.pipeline_mode<synchronous>, transform_indices = @transform_3, window_bounds = array<i64: 1, 96>}, {pipeline_mode = #tpu.pipeline_mode<synchronous>, transform_indices = @transform_4, window_bounds = array<i64: 32, 32>}, {pipeline_mode = #tpu.pipeline_mode<synchronous>, transform_indices = @transform_5, window_bounds = array<i64: 1, 32>}, {pipeline_mode = #tpu.pipeline_mode<synchronous>, transform_indices = @transform_6, window_bounds = array<i64: 1, 32>}, {pipeline_mode = #tpu.pipeline_mode<synchronous>, transform_indices = @transform_7, window_bounds = array<i64: 1, 32>}, {pipeline_mode = #tpu.pipeline_mode<synchronous>, transform_indices = @transform_8, window_bounds = array<i64: 32, 64>}, {pipeline_mode = #tpu.pipeline_mode<synchronous>, transform_indices = @transform_9, window_bounds = array<i64: 1, 64>}, {pipeline_mode = #tpu.pipeline_mode<synchronous>, transform_indices = @transform_10, window_bounds = array<i64: 64, 32>}, {pipeline_mode = #tpu.pipeline_mode<synchronous>, transform_indices = @transform_11, window_bounds = array<i64: 1, 32>}, {pipeline_mode = #tpu.pipeline_mode<synchronous>, transform_indices = @transform_12, window_bounds = array<i64: 1, 32>}, {pipeline_mode = #tpu.pipeline_mode<synchronous>, transform_indices = @transform_13, window_bounds = array<i64: 1, 32>}, {transform_indices = @transform_14, window_bounds = array<i64: 1, 8, 32>}]} {
    %c0 = arith.constant 0 : index
    %c0_0 = arith.constant 0 : index
    %c0_1 = arith.constant 0 : index
    %0 = vector.load %arg1[%c0, %c0_0, %c0_1] : memref<1x8x32xf32, #tpu.memory_space<vmem>>, vector<1x8x32xf32>
    %1 = vector.shape_cast %0 : vector<1x8x32xf32> to vector<8x32xf32>
    %2 = arith.truncf %1 : vector<8x32xf32> to vector<8x32xbf16>
    %c0_2 = arith.constant 0 : index
    %c0_3 = arith.constant 0 : index
    %3 = vector.load %arg3[%c0_2, %c0_3] : memref<32x96xbf16, #tpu.memory_space<vmem>>, vector<32x96xbf16>
    %cst = arith.constant dense<0.000000e+00> : vector<8x96xf32>
    %4 = tpu.matmul %2, %3, %cst {dimension_numbers = #tpu.dot_dimension_numbers<[1], [0], [0], [1], [0, 0, 1, 1], [], []>} : vector<8x32xbf16>, vector<32x96xbf16>, vector<8x96xf32> -> vector<8x96xf32>
    %c0_4 = arith.constant 0 : index
    %c0_5 = arith.constant 0 : index
    %5 = vector.load %arg4[%c0_4, %c0_5] : memref<1x96xf32, #tpu.memory_space<vmem>>, vector<1x96xf32>
    %6 = vector.broadcast %5 : vector<1x96xf32> to vector<8x96xf32>
    %7 = arith.addf %4, %6 : vector<8x96xf32>
    %8 = vector.extract_strided_slice %7 {offsets = [0, 0], sizes = [8, 32], strides = [1, 1]} : vector<8x96xf32> to vector<8x32xf32>
    %9 = vector.extract_strided_slice %7 {offsets = [0, 32], sizes = [8, 32], strides = [1, 1]} : vector<8x96xf32> to vector<8x32xf32>
    %10 = vector.extract_strided_slice %7 {offsets = [0, 64], sizes = [8, 32], strides = [1, 1]} : vector<8x96xf32> to vector<8x32xf32>
    %c0_6 = arith.constant 0 : index
    %c0_7 = arith.constant 0 : index
    %c0_8 = arith.constant 0 : index
    %11 = vector.load %arg2[%c0_6, %c0_7, %c0_8] : memref<1x8x8xi32, #tpu.memory_space<vmem>>, vector<1x8x8xi32>
    %12 = vector.shape_cast %11 : vector<1x8x8xi32> to vector<8x8xi32>
    %13 = vector.extract_strided_slice %8 {offsets = [0, 0], sizes = [8, 8], strides = [1, 1]} : vector<8x32xf32> to vector<8x8xf32>
    %cst_9 = arith.constant 0.353553385 : f32
    %14 = vector.broadcast %cst_9 : f32 to vector<8x8xf32>
    %15 = arith.mulf %13, %14 : vector<8x8xf32>
    %16 = arith.truncf %15 : vector<8x8xf32> to vector<8x8xbf16>
    %17 = vector.extract_strided_slice %9 {offsets = [0, 0], sizes = [8, 8], strides = [1, 1]} : vector<8x32xf32> to vector<8x8xf32>
    %18 = arith.truncf %17 : vector<8x8xf32> to vector<8x8xbf16>
    %19 = vector.extract_strided_slice %10 {offsets = [0, 0], sizes = [8, 8], strides = [1, 1]} : vector<8x32xf32> to vector<8x8xf32>
    %20 = arith.truncf %19 : vector<8x8xf32> to vector<8x8xbf16>
    %cst_10 = arith.constant dense<0.000000e+00> : vector<8x8xf32>
    %21 = tpu.matmul %16, %18, %cst_10 {dimension_numbers = #tpu.dot_dimension_numbers<[1], [1], [0], [0], [0, 0, 1, 0], [], []>} : vector<8x8xbf16>, vector<8x8xbf16>, vector<8x8xf32> -> vector<8x8xf32>
    %c0_i32 = arith.constant 0 : i32
    %22 = vector.broadcast %c0_i32 : i32 to vector<8x8xi32>
    %23 = arith.cmpi sgt, %12, %22 : vector<8x8xi32>
    %cst_11 = arith.constant -1.000000e+09 : f32
    %24 = vector.broadcast %cst_11 : f32 to vector<8x8xf32>
    %25 = arith.select %23, %21, %24 : vector<8x8xi1>, vector<8x8xf32>
    %cst_12 = arith.constant dense<0xFF800000> : vector<8xf32>
    %26 = vector.multi_reduction <maximumf>, %25, %cst_12 [1] : vector<8x8xf32> to vector<8xf32>
    %27 = vector.shape_cast %26 : vector<8xf32> to vector<8x1xf32>
    %28 = vector.broadcast %27 : vector<8x1xf32> to vector<8x8xf32>
    %29 = arith.subf %25, %28 : vector<8x8xf32>
    %30 = math.exp %29 : vector<8x8xf32>
    %cst_13 = arith.constant dense<0.000000e+00> : vector<8xf32>
    %31 = vector.multi_reduction <add>, %30, %cst_13 [1] : vector<8x8xf32> to vector<8xf32>
    %32 = vector.shape_cast %31 : vector<8xf32> to vector<8x1xf32>
    %33 = tpu.reciprocal %32 {approx = true} : vector<8x1xf32> -> vector<8x1xf32>
    %34 = vector.broadcast %33 : vector<8x1xf32> to vector<8x8xf32>
    %35 = arith.mulf %30, %34 : vector<8x8xf32>
    %36 = arith.truncf %35 : vector<8x8xf32> to vector<8x8xbf16>
    %cst_14 = arith.constant dense<0.000000e+00> : vector<8x8xf32>
    %37 = tpu.matmul %36, %20, %cst_14 {dimension_numbers = #tpu.dot_dimension_numbers<[1], [0], [0], [1], [0, 0, 1, 1], [], []>} : vector<8x8xbf16>, vector<8x8xbf16>, vector<8x8xf32> -> vector<8x8xf32>
    %38 = vector.extract_strided_slice %8 {offsets = [0, 8], sizes = [8, 8], strides = [1, 1]} : vector<8x32xf32> to vector<8x8xf32>
    %cst_15 = arith.constant 0.353553385 : f32
    %39 = vector.broadcast %cst_15 : f32 to vector<8x8xf32>
    %40 = arith.mulf %38, %39 : vector<8x8xf32>
    %41 = arith.truncf %40 : vector<8x8xf32> to vector<8x8xbf16>
    %42 = vector.extract_strided_slice %9 {offsets = [0, 8], sizes = [8, 8], strides = [1, 1]} : vector<8x32xf32> to vector<8x8xf32>
    %43 = arith.truncf %42 : vector<8x8xf32> to vector<8x8xbf16>
    %44 = vector.extract_strided_slice %10 {offsets = [0, 8], sizes = [8, 8], strides = [1, 1]} : vector<8x32xf32> to vector<8x8xf32>
    %45 = arith.truncf %44 : vector<8x8xf32> to vector<8x8xbf16>
    %cst_16 = arith.constant dense<0.000000e+00> : vector<8x8xf32>
    %46 = tpu.matmul %41, %43, %cst_16 {dimension_numbers = #tpu.dot_dimension_numbers<[1], [1], [0], [0], [0, 0, 1, 0], [], []>} : vector<8x8xbf16>, vector<8x8xbf16>, vector<8x8xf32> -> vector<8x8xf32>
    %c0_i32_17 = arith.constant 0 : i32
    %47 = vector.broadcast %c0_i32_17 : i32 to vector<8x8xi32>
    %48 = arith.cmpi sgt, %12, %47 : vector<8x8xi32>
    %cst_18 = arith.constant -1.000000e+09 : f32
    %49 = vector.broadcast %cst_18 : f32 to vector<8x8xf32>
    %50 = arith.select %48, %46, %49 : vector<8x8xi1>, vector<8x8xf32>
    %cst_19 = arith.constant dense<0xFF800000> : vector<8xf32>
    %51 = vector.multi_reduction <maximumf>, %50, %cst_19 [1] : vector<8x8xf32> to vector<8xf32>
    %52 = vector.shape_cast %51 : vector<8xf32> to vector<8x1xf32>
    %53 = vector.broadcast %52 : vector<8x1xf32> to vector<8x8xf32>
    %54 = arith.subf %50, %53 : vector<8x8xf32>
    %55 = math.exp %54 : vector<8x8xf32>
    %cst_20 = arith.constant dense<0.000000e+00> : vector<8xf32>
    %56 = vector.multi_reduction <add>, %55, %cst_20 [1] : vector<8x8xf32> to vector<8xf32>
    %57 = vector.shape_cast %56 : vector<8xf32> to vector<8x1xf32>
    %58 = tpu.reciprocal %57 {approx = true} : vector<8x1xf32> -> vector<8x1xf32>
    %59 = vector.broadcast %58 : vector<8x1xf32> to vector<8x8xf32>
    %60 = arith.mulf %55, %59 : vector<8x8xf32>
    %61 = arith.truncf %60 : vector<8x8xf32> to vector<8x8xbf16>
    %cst_21 = arith.constant dense<0.000000e+00> : vector<8x8xf32>
    %62 = tpu.matmul %61, %45, %cst_21 {dimension_numbers = #tpu.dot_dimension_numbers<[1], [0], [0], [1], [0, 0, 1, 1], [], []>} : vector<8x8xbf16>, vector<8x8xbf16>, vector<8x8xf32> -> vector<8x8xf32>
    %63 = vector.extract_strided_slice %8 {offsets = [0, 16], sizes = [8, 8], strides = [1, 1]} : vector<8x32xf32> to vector<8x8xf32>
    %cst_22 = arith.constant 0.353553385 : f32
    %64 = vector.broadcast %cst_22 : f32 to vector<8x8xf32>
    %65 = arith.mulf %63, %64 : vector<8x8xf32>
    %66 = arith.truncf %65 : vector<8x8xf32> to vector<8x8xbf16>
    %67 = vector.extract_strided_slice %9 {offsets = [0, 16], sizes = [8, 8], strides = [1, 1]} : vector<8x32xf32> to vector<8x8xf32>
    %68 = arith.truncf %67 : vector<8x8xf32> to vector<8x8xbf16>
    %69 = vector.extract_strided_slice %10 {offsets = [0, 16], sizes = [8, 8], strides = [1, 1]} : vector<8x32xf32> to vector<8x8xf32>
    %70 = arith.truncf %69 : vector<8x8xf32> to vector<8x8xbf16>
    %cst_23 = arith.constant dense<0.000000e+00> : vector<8x8xf32>
    %71 = tpu.matmul %66, %68, %cst_23 {dimension_numbers = #tpu.dot_dimension_numbers<[1], [1], [0], [0], [0, 0, 1, 0], [], []>} : vector<8x8xbf16>, vector<8x8xbf16>, vector<8x8xf32> -> vector<8x8xf32>
    %c0_i32_24 = arith.constant 0 : i32
    %72 = vector.broadcast %c0_i32_24 : i32 to vector<8x8xi32>
    %73 = arith.cmpi sgt, %12, %72 : vector<8x8xi32>
    %cst_25 = arith.constant -1.000000e+09 : f32
    %74 = vector.broadcast %cst_25 : f32 to vector<8x8xf32>
    %75 = arith.select %73, %71, %74 : vector<8x8xi1>, vector<8x8xf32>
    %cst_26 = arith.constant dense<0xFF800000> : vector<8xf32>
    %76 = vector.multi_reduction <maximumf>, %75, %cst_26 [1] : vector<8x8xf32> to vector<8xf32>
    %77 = vector.shape_cast %76 : vector<8xf32> to vector<8x1xf32>
    %78 = vector.broadcast %77 : vector<8x1xf32> to vector<8x8xf32>
    %79 = arith.subf %75, %78 : vector<8x8xf32>
    %80 = math.exp %79 : vector<8x8xf32>
    %cst_27 = arith.constant dense<0.000000e+00> : vector<8xf32>
    %81 = vector.multi_reduction <add>, %80, %cst_27 [1] : vector<8x8xf32> to vector<8xf32>
    %82 = vector.shape_cast %81 : vector<8xf32> to vector<8x1xf32>
    %83 = tpu.reciprocal %82 {approx = true} : vector<8x1xf32> -> vector<8x1xf32>
    %84 = vector.broadcast %83 : vector<8x1xf32> to vector<8x8xf32>
    %85 = arith.mulf %80, %84 : vector<8x8xf32>
    %86 = arith.truncf %85 : vector<8x8xf32> to vector<8x8xbf16>
    %cst_28 = arith.constant dense<0.000000e+00> : vector<8x8xf32>
    %87 = tpu.matmul %86, %70, %cst_28 {dimension_numbers = #tpu.dot_dimension_numbers<[1], [0], [0], [1], [0, 0, 1, 1], [], []>} : vector<8x8xbf16>, vector<8x8xbf16>, vector<8x8xf32> -> vector<8x8xf32>
    %88 = vector.extract_strided_slice %8 {offsets = [0, 24], sizes = [8, 8], strides = [1, 1]} : vector<8x32xf32> to vector<8x8xf32>
    %cst_29 = arith.constant 0.353553385 : f32
    %89 = vector.broadcast %cst_29 : f32 to vector<8x8xf32>
    %90 = arith.mulf %88, %89 : vector<8x8xf32>
    %91 = arith.truncf %90 : vector<8x8xf32> to vector<8x8xbf16>
    %92 = vector.extract_strided_slice %9 {offsets = [0, 24], sizes = [8, 8], strides = [1, 1]} : vector<8x32xf32> to vector<8x8xf32>
    %93 = arith.truncf %92 : vector<8x8xf32> to vector<8x8xbf16>
    %94 = vector.extract_strided_slice %10 {offsets = [0, 24], sizes = [8, 8], strides = [1, 1]} : vector<8x32xf32> to vector<8x8xf32>
    %95 = arith.truncf %94 : vector<8x8xf32> to vector<8x8xbf16>
    %cst_30 = arith.constant dense<0.000000e+00> : vector<8x8xf32>
    %96 = tpu.matmul %91, %93, %cst_30 {dimension_numbers = #tpu.dot_dimension_numbers<[1], [1], [0], [0], [0, 0, 1, 0], [], []>} : vector<8x8xbf16>, vector<8x8xbf16>, vector<8x8xf32> -> vector<8x8xf32>
    %c0_i32_31 = arith.constant 0 : i32
    %97 = vector.broadcast %c0_i32_31 : i32 to vector<8x8xi32>
    %98 = arith.cmpi sgt, %12, %97 : vector<8x8xi32>
    %cst_32 = arith.constant -1.000000e+09 : f32
    %99 = vector.broadcast %cst_32 : f32 to vector<8x8xf32>
    %100 = arith.select %98, %96, %99 : vector<8x8xi1>, vector<8x8xf32>
    %cst_33 = arith.constant dense<0xFF800000> : vector<8xf32>
    %101 = vector.multi_reduction <maximumf>, %100, %cst_33 [1] : vector<8x8xf32> to vector<8xf32>
    %102 = vector.shape_cast %101 : vector<8xf32> to vector<8x1xf32>
    %103 = vector.broadcast %102 : vector<8x1xf32> to vector<8x8xf32>
    %104 = arith.subf %100, %103 : vector<8x8xf32>
    %105 = math.exp %104 : vector<8x8xf32>
    %cst_34 = arith.constant dense<0.000000e+00> : vector<8xf32>
    %106 = vector.multi_reduction <add>, %105, %cst_34 [1] : vector<8x8xf32> to vector<8xf32>
    %107 = vector.shape_cast %106 : vector<8xf32> to vector<8x1xf32>
    %108 = tpu.reciprocal %107 {approx = true} : vector<8x1xf32> -> vector<8x1xf32>
    %109 = vector.broadcast %108 : vector<8x1xf32> to vector<8x8xf32>
    %110 = arith.mulf %105, %109 : vector<8x8xf32>
    %111 = arith.truncf %110 : vector<8x8xf32> to vector<8x8xbf16>
    %cst_35 = arith.constant dense<0.000000e+00> : vector<8x8xf32>
    %112 = tpu.matmul %111, %95, %cst_35 {dimension_numbers = #tpu.dot_dimension_numbers<[1], [0], [0], [1], [0, 0, 1, 1], [], []>} : vector<8x8xbf16>, vector<8x8xbf16>, vector<8x8xf32> -> vector<8x8xf32>
    %113 = tpu.concatenate %37, %62, %87, %112 in 1 : vector<8x8xf32>, vector<8x8xf32>, vector<8x8xf32>, vector<8x8xf32> -> vector<8x32xf32>
    %114 = arith.truncf %113 : vector<8x32xf32> to vector<8x32xbf16>
    %c0_36 = arith.constant 0 : index
    %c0_37 = arith.constant 0 : index
    %115 = vector.load %arg5[%c0_36, %c0_37] : memref<32x32xbf16, #tpu.memory_space<vmem>>, vector<32x32xbf16>
    %cst_38 = arith.constant dense<0.000000e+00> : vector<8x32xf32>
    %116 = tpu.matmul %114, %115, %cst_38 {dimension_numbers = #tpu.dot_dimension_numbers<[1], [0], [0], [1], [0, 0, 1, 1], [], []>} : vector<8x32xbf16>, vector<32x32xbf16>, vector<8x32xf32> -> vector<8x32xf32>
    %c0_39 = arith.constant 0 : index
    %c0_40 = arith.constant 0 : index
    %117 = vector.load %arg6[%c0_39, %c0_40] : memref<1x32xf32, #tpu.memory_space<vmem>>, vector<1x32xf32>
    %118 = vector.broadcast %117 : vector<1x32xf32> to vector<8x32xf32>
    %119 = arith.addf %116, %118 : vector<8x32xf32>
    %120 = arith.addf %1, %119 : vector<8x32xf32>
    %c0_41 = arith.constant 0 : index
    %c0_42 = arith.constant 0 : index
    %121 = vector.load %arg7[%c0_41, %c0_42] : memref<1x32xf32, #tpu.memory_space<vmem>>, vector<1x32xf32>
    %c0_43 = arith.constant 0 : index
    %c0_44 = arith.constant 0 : index
    %122 = vector.load %arg8[%c0_43, %c0_44] : memref<1x32xf32, #tpu.memory_space<vmem>>, vector<1x32xf32>
    %cst_45 = arith.constant dense<0.000000e+00> : vector<8xf32>
    %123 = vector.multi_reduction <add>, %120, %cst_45 [1] : vector<8x32xf32> to vector<8xf32>
    %124 = vector.shape_cast %123 : vector<8xf32> to vector<8x1xf32>
    %cst_46 = arith.constant 3.200000e+01 : f32
    %125 = vector.broadcast %cst_46 : f32 to vector<8x1xf32>
    %126 = arith.divf %124, %125 : vector<8x1xf32>
    %127 = vector.broadcast %126 : vector<8x1xf32> to vector<8x32xf32>
    %128 = arith.subf %120, %127 : vector<8x32xf32>
    %129 = arith.mulf %128, %128 : vector<8x32xf32>
    %cst_47 = arith.constant dense<0.000000e+00> : vector<8xf32>
    %130 = vector.multi_reduction <add>, %129, %cst_47 [1] : vector<8x32xf32> to vector<8xf32>
    %131 = vector.shape_cast %130 : vector<8xf32> to vector<8x1xf32>
    %cst_48 = arith.constant 3.200000e+01 : f32
    %132 = vector.broadcast %cst_48 : f32 to vector<8x1xf32>
    %133 = arith.divf %131, %132 : vector<8x1xf32>
    %134 = vector.broadcast %126 : vector<8x1xf32> to vector<8x32xf32>
    %135 = arith.subf %120, %134 : vector<8x32xf32>
    %cst_49 = arith.constant 9.99999974E-6 : f32
    %136 = vector.broadcast %cst_49 : f32 to vector<8x1xf32>
    %137 = arith.addf %133, %136 : vector<8x1xf32>
    %138 = math.rsqrt %137 : vector<8x1xf32>
    %139 = vector.broadcast %138 : vector<8x1xf32> to vector<8x32xf32>
    %140 = arith.mulf %135, %139 : vector<8x32xf32>
    %141 = vector.broadcast %121 : vector<1x32xf32> to vector<8x32xf32>
    %142 = arith.mulf %140, %141 : vector<8x32xf32>
    %143 = vector.broadcast %122 : vector<1x32xf32> to vector<8x32xf32>
    %144 = arith.addf %142, %143 : vector<8x32xf32>
    %145 = arith.truncf %144 : vector<8x32xf32> to vector<8x32xbf16>
    %c0_50 = arith.constant 0 : index
    %c0_51 = arith.constant 0 : index
    %146 = vector.load %arg9[%c0_50, %c0_51] : memref<32x64xbf16, #tpu.memory_space<vmem>>, vector<32x64xbf16>
    %cst_52 = arith.constant dense<0.000000e+00> : vector<8x64xf32>
    %147 = tpu.matmul %145, %146, %cst_52 {dimension_numbers = #tpu.dot_dimension_numbers<[1], [0], [0], [1], [0, 0, 1, 1], [], []>} : vector<8x32xbf16>, vector<32x64xbf16>, vector<8x64xf32> -> vector<8x64xf32>
    %c0_53 = arith.constant 0 : index
    %c0_54 = arith.constant 0 : index
    %148 = vector.load %arg10[%c0_53, %c0_54] : memref<1x64xf32, #tpu.memory_space<vmem>>, vector<1x64xf32>
    %149 = vector.broadcast %148 : vector<1x64xf32> to vector<8x64xf32>
    %150 = arith.addf %147, %149 : vector<8x64xf32>
    %cst_55 = arith.constant 0.000000e+00 : f32
    %151 = vector.broadcast %cst_55 : f32 to vector<8x64xf32>
    %152 = arith.maximumf %150, %151 : vector<8x64xf32>
    %153 = arith.truncf %152 : vector<8x64xf32> to vector<8x64xbf16>
    %c0_56 = arith.constant 0 : index
    %c0_57 = arith.constant 0 : index
    %154 = vector.load %arg11[%c0_56, %c0_57] : memref<64x32xbf16, #tpu.memory_space<vmem>>, vector<64x32xbf16>
    %cst_58 = arith.constant dense<0.000000e+00> : vector<8x32xf32>
    %155 = tpu.matmul %153, %154, %cst_58 {dimension_numbers = #tpu.dot_dimension_numbers<[1], [0], [0], [1], [0, 0, 1, 1], [], []>} : vector<8x64xbf16>, vector<64x32xbf16>, vector<8x32xf32> -> vector<8x32xf32>
    %c0_59 = arith.constant 0 : index
    %c0_60 = arith.constant 0 : index
    %156 = vector.load %arg12[%c0_59, %c0_60] : memref<1x32xf32, #tpu.memory_space<vmem>>, vector<1x32xf32>
    %157 = vector.broadcast %156 : vector<1x32xf32> to vector<8x32xf32>
    %158 = arith.addf %155, %157 : vector<8x32xf32>
    %159 = arith.addf %144, %158 : vector<8x32xf32>
    %c0_61 = arith.constant 0 : index
    %c0_62 = arith.constant 0 : index
    %160 = vector.load %arg13[%c0_61, %c0_62] : memref<1x32xf32, #tpu.memory_space<vmem>>, vector<1x32xf32>
    %c0_63 = arith.constant 0 : index
    %c0_64 = arith.constant 0 : index
    %161 = vector.load %arg14[%c0_63, %c0_64] : memref<1x32xf32, #tpu.memory_space<vmem>>, vector<1x32xf32>
    %cst_65 = arith.constant dense<0.000000e+00> : vector<8xf32>
    %162 = vector.multi_reduction <add>, %159, %cst_65 [1] : vector<8x32xf32> to vector<8xf32>
    %163 = vector.shape_cast %162 : vector<8xf32> to vector<8x1xf32>
    %cst_66 = arith.constant 3.200000e+01 : f32
    %164 = vector.broadcast %cst_66 : f32 to vector<8x1xf32>
    %165 = arith.divf %163, %164 : vector<8x1xf32>
    %166 = vector.broadcast %165 : vector<8x1xf32> to vector<8x32xf32>
    %167 = arith.subf %159, %166 : vector<8x32xf32>
    %168 = arith.mulf %167, %167 : vector<8x32xf32>
    %cst_67 = arith.constant dense<0.000000e+00> : vector<8xf32>
    %169 = vector.multi_reduction <add>, %168, %cst_67 [1] : vector<8x32xf32> to vector<8xf32>
    %170 = vector.shape_cast %169 : vector<8xf32> to vector<8x1xf32>
    %cst_68 = arith.constant 3.200000e+01 : f32
    %171 = vector.broadcast %cst_68 : f32 to vector<8x1xf32>
    %172 = arith.divf %170, %171 : vector<8x1xf32>
    %173 = vector.broadcast %165 : vector<8x1xf32> to vector<8x32xf32>
    %174 = arith.subf %159, %173 : vector<8x32xf32>
    %cst_69 = arith.constant 9.99999974E-6 : f32
    %175 = vector.broadcast %cst_69 : f32 to vector<8x1xf32>
    %176 = arith.addf %172, %175 : vector<8x1xf32>
    %177 = math.rsqrt %176 : vector<8x1xf32>
    %178 = vector.broadcast %177 : vector<8x1xf32> to vector<8x32xf32>
    %179 = arith.mulf %174, %178 : vector<8x32xf32>
    %180 = vector.broadcast %160 : vector<1x32xf32> to vector<8x32xf32>
    %181 = arith.mulf %179, %180 : vector<8x32xf32>
    %182 = vector.broadcast %161 : vector<1x32xf32> to vector<8x32xf32>
    %183 = arith.addf %181, %182 : vector<8x32xf32>
    %c0_70 = arith.constant 0 : index
    %c0_71 = arith.constant 0 : index
    %c0_72 = arith.constant 0 : index
    %184 = vector.load %arg15[%c0_70, %c0_71, %c0_72] : memref<1x8x32xf32, #tpu.memory_space<vmem>>, vector<1x8x32xf32>
    %185 = vector.shape_cast %184 : vector<1x8x32xf32> to vector<8x32xf32>
    %186 = vector.shape_cast %183 : vector<8x32xf32> to vector<1x8x32xf32>
    tpu.vector_store %arg15[%c0_70, %c0_71, %c0_72], %186 {strides = array<i32>} : memref<1x8x32xf32, #tpu.memory_space<vmem>>, vector<1x8x32xf32>,
    return
  }
  func.func @transform_0(%arg0: i32) -> (i32, i32, i32) {
    %c0_i32 = arith.constant 0 : i32
    %c0_i32_0 = arith.constant 0 : i32
    %c0_i32_1 = arith.constant 0 : i32
    return %arg0, %c0_i32, %c0_i32_0 : i32, i32, i32
  }
  func.func @transform_1(%arg0: i32) -> (i32, i32, i32) {
    %c0_i32 = arith.constant 0 : i32
    %c0_i32_0 = arith.constant 0 : i32
    %c0_i32_1 = arith.constant 0 : i32
    return %arg0, %c0_i32, %c0_i32_0 : i32, i32, i32
  }
  func.func @transform_2(%arg0: i32) -> (i32, i32) {
    %c0_i32 = arith.constant 0 : i32
    %c0_i32_0 = arith.constant 0 : i32
    %c0_i32_1 = arith.constant 0 : i32
    return %c0_i32, %c0_i32_0 : i32, i32
  }
  func.func @transform_3(%arg0: i32) -> (i32, i32) {
    %c0_i32 = arith.constant 0 : i32
    %c0_i32_0 = arith.constant 0 : i32
    %c0_i32_1 = arith.constant 0 : i32
    return %c0_i32, %c0_i32_0 : i32, i32
  }
  func.func @transform_4(%arg0: i32) -> (i32, i32) {
    %c0_i32 = arith.constant 0 : i32
    %c0_i32_0 = arith.constant 0 : i32
    %c0_i32_1 = arith.constant 0 : i32
    return %c0_i32, %c0_i32_0 : i32, i32
  }
  func.func @transform_5(%arg0: i32) -> (i32, i32) {
    %c0_i32 = arith.constant 0 : i32
    %c0_i32_0 = arith.constant 0 : i32
    %c0_i32_1 = arith.constant 0 : i32
    return %c0_i32, %c0_i32_0 : i32, i32
  }
  func.func @transform_6(%arg0: i32) -> (i32, i32) {
    %c0_i32 = arith.constant 0 : i32
    %c0_i32_0 = arith.constant 0 : i32
    %c0_i32_1 = arith.constant 0 : i32
    return %c0_i32, %c0_i32_0 : i32, i32
  }
  func.func @transform_7(%arg0: i32) -> (i32, i32) {
    %c0_i32 = arith.constant 0 : i32
    %c0_i32_0 = arith.constant 0 : i32
    %c0_i32_1 = arith.constant 0 : i32
    return %c0_i32, %c0_i32_0 : i32, i32
  }
  func.func @transform_8(%arg0: i32) -> (i32, i32) {
    %c0_i32 = arith.constant 0 : i32
    %c0_i32_0 = arith.constant 0 : i32
    %c0_i32_1 = arith.constant 0 : i32
    return %c0_i32, %c0_i32_0 : i32, i32
  }
  func.func @transform_9(%arg0: i32) -> (i32, i32) {
    %c0_i32 = arith.constant 0 : i32
    %c0_i32_0 = arith.constant 0 : i32
    %c0_i32_1 = arith.constant 0 : i32
    return %c0_i32, %c0_i32_0 : i32, i32
  }
  func.func @transform_10(%arg0: i32) -> (i32, i32) {
    %c0_i32 = arith.constant 0 : i32
    %c0_i32_0 = arith.constant 0 : i32
    %c0_i32_1 = arith.constant 0 : i32
    return %c0_i32, %c0_i32_0 : i32, i32
  }
  func.func @transform_11(%arg0: i32) -> (i32, i32) {
    %c0_i32 = arith.constant 0 : i32
    %c0_i32_0 = arith.constant 0 : i32
    %c0_i32_1 = arith.constant 0 : i32
    return %c0_i32, %c0_i32_0 : i32, i32
  }
  func.func @transform_12(%arg0: i32) -> (i32, i32) {
    %c0_i32 = arith.constant 0 : i32
    %c0_i32_0 = arith.constant 0 : i32
    %c0_i32_1 = arith.constant 0 : i32
    return %c0_i32, %c0_i32_0 : i32, i32
  }
  func.func @transform_13(%arg0: i32) -> (i32, i32) {
    %c0_i32 = arith.constant 0 : i32
    %c0_i32_0 = arith.constant 0 : i32
    %c0_i32_1 = arith.constant 0 : i32
    return %c0_i32, %c0_i32_0 : i32, i32
  }
  func.func @transform_14(%arg0: i32) -> (i32, i32, i32) {
    %c0_i32 = arith.constant 0 : i32
    %c0_i32_0 = arith.constant 0 : i32
    %c0_i32_1 = arith.constant 0 : i32
    return %arg0, %c0_i32, %c0_i32_0 : i32, i32, i32
  }
}

module attributes {stable_mosaic.version = 11 : i64} {
  func.func @_decoder_block_kernel(%arg0: i32, %arg1: memref<1x8x32xf32, #tpu.memory_space<vmem>>, %arg2: memref<1x8x32xf32, #tpu.memory_space<vmem>>, %arg3: memref<1x8x8xi32, #tpu.memory_space<vmem>>, %arg4: memref<1x8x8xi32, #tpu.memory_space<vmem>>, %arg5: memref<32x96xbf16, #tpu.memory_space<vmem>>, %arg6: memref<1x96xf32, #tpu.memory_space<vmem>>, %arg7: memref<32x32xbf16, #tpu.memory_space<vmem>>, %arg8: memref<1x32xf32, #tpu.memory_space<vmem>>, %arg9: memref<1x32xf32, #tpu.memory_space<vmem>>, %arg10: memref<1x32xf32, #tpu.memory_space<vmem>>, %arg11: memref<32x32xbf16, #tpu.memory_space<vmem>>, %arg12: memref<1x32xf32, #tpu.memory_space<vmem>>, %arg13: memref<32x64xbf16, #tpu.memory_space<vmem>>, %arg14: memref<1x64xf32, #tpu.memory_space<vmem>>, %arg15: memref<32x32xbf16, #tpu.memory_space<vmem>>, %arg16: memref<1x32xf32, #tpu.memory_space<vmem>>, %arg17: memref<1x32xf32, #tpu.memory_space<vmem>>, %arg18: memref<1x32xf32, #tpu.memory_space<vmem>>, %arg19: memref<32x64xbf16, #tpu.memory_space<vmem>>, %arg20: memref<1x64xf32, #tpu.memory_space<vmem>>, %arg21: memref<64x32xbf16, #tpu.memory_space<vmem>>, %arg22: memref<1x32xf32, #tpu.memory_space<vmem>>, %arg23: memref<1x32xf32, #tpu.memory_space<vmem>>, %arg24: memref<1x32xf32, #tpu.memory_space<vmem>>, %arg25: memref<1x8x32xf32, #tpu.memory_space<vmem>>) attributes {dimension_semantics = [#tpu.dimension_semantics<parallel>], iteration_bounds = array<i64: 2>, scalar_prefetch = 0 : i64, scratch_operands = 0 : i64, tpu.core_type = #tpu.core_type<tc>, window_params = [{transform_indices = @transform_0, window_bounds = array<i64: 1, 8, 32>}, {transform_indices = @transform_1, window_bounds = array<i64: 1, 8, 32>}, {transform_indices = @transform_2, window_bounds = array<i64: 1, 8, 8>}, {transform_indices = @transform_3, window_bounds = array<i64: 1, 8, 8>}, {pipeline_mode = #tpu.pipeline_mode<synchronous>, transform_indices = @transform_4, window_bounds = array<i64: 32, 96>}, {pipeline_mode = #tpu.pipeline_mode<synchronous>, transform_indices = @transform_5, window_bounds = array<i64: 1, 96>}, {pipeline_mode = #tpu.pipeline_mode<synchronous>, transform_indices = @transform_6, window_bounds = array<i64: 32, 32>}, {pipeline_mode = #tpu.pipeline_mode<synchronous>, transform_indices = @transform_7, window_bounds = array<i64: 1, 32>}, {pipeline_mode = #tpu.pipeline_mode<synchronous>, transform_indices = @transform_8, window_bounds = array<i64: 1, 32>}, {pipeline_mode = #tpu.pipeline_mode<synchronous>, transform_indices = @transform_9, window_bounds = array<i64: 1, 32>}, {pipeline_mode = #tpu.pipeline_mode<synchronous>, transform_indices = @transform_10, window_bounds = array<i64: 32, 32>}, {pipeline_mode = #tpu.pipeline_mode<synchronous>, transform_indices = @transform_11, window_bounds = array<i64: 1, 32>}, {pipeline_mode = #tpu.pipeline_mode<synchronous>, transform_indices = @transform_12, window_bounds = array<i64: 32, 64>}, {pipeline_mode = #tpu.pipeline_mode<synchronous>, transform_indices = @transform_13, window_bounds = array<i64: 1, 64>}, {pipeline_mode = #tpu.pipeline_mode<synchronous>, transform_indices = @transform_14, window_bounds = array<i64: 32, 32>}, {pipeline_mode = #tpu.pipeline_mode<synchronous>, transform_indices = @transform_15, window_bounds = array<i64: 1, 32>}, {pipeline_mode = #tpu.pipeline_mode<synchronous>, transform_indices = @transform_16, window_bounds = array<i64: 1, 32>}, {pipeline_mode = #tpu.pipeline_mode<synchronous>, transform_indices = @transform_17, window_bounds = array<i64: 1, 32>}, {pipeline_mode = #tpu.pipeline_mode<synchronous>, transform_indices = @transform_18, window_bounds = array<i64: 32, 64>}, {pipeline_mode = #tpu.pipeline_mode<synchronous>, transform_indices = @transform_19, window_bounds = array<i64: 1, 64>}, {pipeline_mode = #tpu.pipeline_mode<synchronous>, transform_indices = @transform_20, window_bounds = array<i64: 64, 32>}, {pipeline_mode = #tpu.pipeline_mode<synchronous>, transform_indices = @transform_21, window_bounds = array<i64: 1, 32>}, {pipeline_mode = #tpu.pipeline_mode<synchronous>, transform_indices = @transform_22, window_bounds = array<i64: 1, 32>}, {pipeline_mode = #tpu.pipeline_mode<synchronous>, transform_indices = @transform_23, window_bounds = array<i64: 1, 32>}, {transform_indices = @transform_24, window_bounds = array<i64: 1, 8, 32>}]} {
    %c0 = arith.constant 0 : index
    %c0_0 = arith.constant 0 : index
    %c0_1 = arith.constant 0 : index
    %0 = vector.load %arg1[%c0, %c0_0, %c0_1] : memref<1x8x32xf32, #tpu.memory_space<vmem>>, vector<1x8x32xf32>
    %1 = vector.shape_cast %0 : vector<1x8x32xf32> to vector<8x32xf32>
    %c0_2 = arith.constant 0 : index
    %c0_3 = arith.constant 0 : index
    %c0_4 = arith.constant 0 : index
    %2 = vector.load %arg2[%c0_2, %c0_3, %c0_4] : memref<1x8x32xf32, #tpu.memory_space<vmem>>, vector<1x8x32xf32>
    %3 = vector.shape_cast %2 : vector<1x8x32xf32> to vector<8x32xf32>
    %4 = arith.truncf %1 : vector<8x32xf32> to vector<8x32xbf16>
    %c0_5 = arith.constant 0 : index
    %c0_6 = arith.constant 0 : index
    %5 = vector.load %arg5[%c0_5, %c0_6] : memref<32x96xbf16, #tpu.memory_space<vmem>>, vector<32x96xbf16>
    %cst = arith.constant dense<0.000000e+00> : vector<8x96xf32>
    %6 = tpu.matmul %4, %5, %cst {dimension_numbers = #tpu.dot_dimension_numbers<[1], [0], [0], [1], [0, 0, 1, 1], [], []>} : vector<8x32xbf16>, vector<32x96xbf16>, vector<8x96xf32> -> vector<8x96xf32>
    %c0_7 = arith.constant 0 : index
    %c0_8 = arith.constant 0 : index
    %7 = vector.load %arg6[%c0_7, %c0_8] : memref<1x96xf32, #tpu.memory_space<vmem>>, vector<1x96xf32>
    %8 = vector.broadcast %7 : vector<1x96xf32> to vector<8x96xf32>
    %9 = arith.addf %6, %8 : vector<8x96xf32>
    %10 = vector.extract_strided_slice %9 {offsets = [0, 0], sizes = [8, 32], strides = [1, 1]} : vector<8x96xf32> to vector<8x32xf32>
    %11 = vector.extract_strided_slice %9 {offsets = [0, 32], sizes = [8, 32], strides = [1, 1]} : vector<8x96xf32> to vector<8x32xf32>
    %12 = vector.extract_strided_slice %9 {offsets = [0, 64], sizes = [8, 32], strides = [1, 1]} : vector<8x96xf32> to vector<8x32xf32>
    %c0_9 = arith.constant 0 : index
    %c0_10 = arith.constant 0 : index
    %c0_11 = arith.constant 0 : index
    %13 = vector.load %arg3[%c0_9, %c0_10, %c0_11] : memref<1x8x8xi32, #tpu.memory_space<vmem>>, vector<1x8x8xi32>
    %14 = vector.shape_cast %13 : vector<1x8x8xi32> to vector<8x8xi32>
    %15 = vector.extract_strided_slice %10 {offsets = [0, 0], sizes = [8, 8], strides = [1, 1]} : vector<8x32xf32> to vector<8x8xf32>
    %cst_12 = arith.constant 0.353553385 : f32
    %16 = vector.broadcast %cst_12 : f32 to vector<8x8xf32>
    %17 = arith.mulf %15, %16 : vector<8x8xf32>
    %18 = arith.truncf %17 : vector<8x8xf32> to vector<8x8xbf16>
    %19 = vector.extract_strided_slice %11 {offsets = [0, 0], sizes = [8, 8], strides = [1, 1]} : vector<8x32xf32> to vector<8x8xf32>
    %20 = arith.truncf %19 : vector<8x8xf32> to vector<8x8xbf16>
    %21 = vector.extract_strided_slice %12 {offsets = [0, 0], sizes = [8, 8], strides = [1, 1]} : vector<8x32xf32> to vector<8x8xf32>
    %22 = arith.truncf %21 : vector<8x8xf32> to vector<8x8xbf16>
    %cst_13 = arith.constant dense<0.000000e+00> : vector<8x8xf32>
    %23 = tpu.matmul %18, %20, %cst_13 {dimension_numbers = #tpu.dot_dimension_numbers<[1], [1], [0], [0], [0, 0, 1, 0], [], []>} : vector<8x8xbf16>, vector<8x8xbf16>, vector<8x8xf32> -> vector<8x8xf32>
    %c0_i32 = arith.constant 0 : i32
    %24 = vector.broadcast %c0_i32 : i32 to vector<8x8xi32>
    %25 = arith.cmpi sgt, %14, %24 : vector<8x8xi32>
    %cst_14 = arith.constant -1.000000e+09 : f32
    %26 = vector.broadcast %cst_14 : f32 to vector<8x8xf32>
    %27 = arith.select %25, %23, %26 : vector<8x8xi1>, vector<8x8xf32>
    %cst_15 = arith.constant dense<0xFF800000> : vector<8xf32>
    %28 = vector.multi_reduction <maximumf>, %27, %cst_15 [1] : vector<8x8xf32> to vector<8xf32>
    %29 = vector.shape_cast %28 : vector<8xf32> to vector<8x1xf32>
    %30 = vector.broadcast %29 : vector<8x1xf32> to vector<8x8xf32>
    %31 = arith.subf %27, %30 : vector<8x8xf32>
    %32 = math.exp %31 : vector<8x8xf32>
    %cst_16 = arith.constant dense<0.000000e+00> : vector<8xf32>
    %33 = vector.multi_reduction <add>, %32, %cst_16 [1] : vector<8x8xf32> to vector<8xf32>
    %34 = vector.shape_cast %33 : vector<8xf32> to vector<8x1xf32>
    %35 = tpu.reciprocal %34 {approx = true} : vector<8x1xf32> -> vector<8x1xf32>
    %36 = vector.broadcast %35 : vector<8x1xf32> to vector<8x8xf32>
    %37 = arith.mulf %32, %36 : vector<8x8xf32>
    %38 = arith.truncf %37 : vector<8x8xf32> to vector<8x8xbf16>
    %cst_17 = arith.constant dense<0.000000e+00> : vector<8x8xf32>
    %39 = tpu.matmul %38, %22, %cst_17 {dimension_numbers = #tpu.dot_dimension_numbers<[1], [0], [0], [1], [0, 0, 1, 1], [], []>} : vector<8x8xbf16>, vector<8x8xbf16>, vector<8x8xf32> -> vector<8x8xf32>
    %40 = vector.extract_strided_slice %10 {offsets = [0, 8], sizes = [8, 8], strides = [1, 1]} : vector<8x32xf32> to vector<8x8xf32>
    %cst_18 = arith.constant 0.353553385 : f32
    %41 = vector.broadcast %cst_18 : f32 to vector<8x8xf32>
    %42 = arith.mulf %40, %41 : vector<8x8xf32>
    %43 = arith.truncf %42 : vector<8x8xf32> to vector<8x8xbf16>
    %44 = vector.extract_strided_slice %11 {offsets = [0, 8], sizes = [8, 8], strides = [1, 1]} : vector<8x32xf32> to vector<8x8xf32>
    %45 = arith.truncf %44 : vector<8x8xf32> to vector<8x8xbf16>
    %46 = vector.extract_strided_slice %12 {offsets = [0, 8], sizes = [8, 8], strides = [1, 1]} : vector<8x32xf32> to vector<8x8xf32>
    %47 = arith.truncf %46 : vector<8x8xf32> to vector<8x8xbf16>
    %cst_19 = arith.constant dense<0.000000e+00> : vector<8x8xf32>
    %48 = tpu.matmul %43, %45, %cst_19 {dimension_numbers = #tpu.dot_dimension_numbers<[1], [1], [0], [0], [0, 0, 1, 0], [], []>} : vector<8x8xbf16>, vector<8x8xbf16>, vector<8x8xf32> -> vector<8x8xf32>
    %c0_i32_20 = arith.constant 0 : i32
    %49 = vector.broadcast %c0_i32_20 : i32 to vector<8x8xi32>
    %50 = arith.cmpi sgt, %14, %49 : vector<8x8xi32>
    %cst_21 = arith.constant -1.000000e+09 : f32
    %51 = vector.broadcast %cst_21 : f32 to vector<8x8xf32>
    %52 = arith.select %50, %48, %51 : vector<8x8xi1>, vector<8x8xf32>
    %cst_22 = arith.constant dense<0xFF800000> : vector<8xf32>
    %53 = vector.multi_reduction <maximumf>, %52, %cst_22 [1] : vector<8x8xf32> to vector<8xf32>
    %54 = vector.shape_cast %53 : vector<8xf32> to vector<8x1xf32>
    %55 = vector.broadcast %54 : vector<8x1xf32> to vector<8x8xf32>
    %56 = arith.subf %52, %55 : vector<8x8xf32>
    %57 = math.exp %56 : vector<8x8xf32>
    %cst_23 = arith.constant dense<0.000000e+00> : vector<8xf32>
    %58 = vector.multi_reduction <add>, %57, %cst_23 [1] : vector<8x8xf32> to vector<8xf32>
    %59 = vector.shape_cast %58 : vector<8xf32> to vector<8x1xf32>
    %60 = tpu.reciprocal %59 {approx = true} : vector<8x1xf32> -> vector<8x1xf32>
    %61 = vector.broadcast %60 : vector<8x1xf32> to vector<8x8xf32>
    %62 = arith.mulf %57, %61 : vector<8x8xf32>
    %63 = arith.truncf %62 : vector<8x8xf32> to vector<8x8xbf16>
    %cst_24 = arith.constant dense<0.000000e+00> : vector<8x8xf32>
    %64 = tpu.matmul %63, %47, %cst_24 {dimension_numbers = #tpu.dot_dimension_numbers<[1], [0], [0], [1], [0, 0, 1, 1], [], []>} : vector<8x8xbf16>, vector<8x8xbf16>, vector<8x8xf32> -> vector<8x8xf32>
    %65 = vector.extract_strided_slice %10 {offsets = [0, 16], sizes = [8, 8], strides = [1, 1]} : vector<8x32xf32> to vector<8x8xf32>
    %cst_25 = arith.constant 0.353553385 : f32
    %66 = vector.broadcast %cst_25 : f32 to vector<8x8xf32>
    %67 = arith.mulf %65, %66 : vector<8x8xf32>
    %68 = arith.truncf %67 : vector<8x8xf32> to vector<8x8xbf16>
    %69 = vector.extract_strided_slice %11 {offsets = [0, 16], sizes = [8, 8], strides = [1, 1]} : vector<8x32xf32> to vector<8x8xf32>
    %70 = arith.truncf %69 : vector<8x8xf32> to vector<8x8xbf16>
    %71 = vector.extract_strided_slice %12 {offsets = [0, 16], sizes = [8, 8], strides = [1, 1]} : vector<8x32xf32> to vector<8x8xf32>
    %72 = arith.truncf %71 : vector<8x8xf32> to vector<8x8xbf16>
    %cst_26 = arith.constant dense<0.000000e+00> : vector<8x8xf32>
    %73 = tpu.matmul %68, %70, %cst_26 {dimension_numbers = #tpu.dot_dimension_numbers<[1], [1], [0], [0], [0, 0, 1, 0], [], []>} : vector<8x8xbf16>, vector<8x8xbf16>, vector<8x8xf32> -> vector<8x8xf32>
    %c0_i32_27 = arith.constant 0 : i32
    %74 = vector.broadcast %c0_i32_27 : i32 to vector<8x8xi32>
    %75 = arith.cmpi sgt, %14, %74 : vector<8x8xi32>
    %cst_28 = arith.constant -1.000000e+09 : f32
    %76 = vector.broadcast %cst_28 : f32 to vector<8x8xf32>
    %77 = arith.select %75, %73, %76 : vector<8x8xi1>, vector<8x8xf32>
    %cst_29 = arith.constant dense<0xFF800000> : vector<8xf32>
    %78 = vector.multi_reduction <maximumf>, %77, %cst_29 [1] : vector<8x8xf32> to vector<8xf32>
    %79 = vector.shape_cast %78 : vector<8xf32> to vector<8x1xf32>
    %80 = vector.broadcast %79 : vector<8x1xf32> to vector<8x8xf32>
    %81 = arith.subf %77, %80 : vector<8x8xf32>
    %82 = math.exp %81 : vector<8x8xf32>
    %cst_30 = arith.constant dense<0.000000e+00> : vector<8xf32>
    %83 = vector.multi_reduction <add>, %82, %cst_30 [1] : vector<8x8xf32> to vector<8xf32>
    %84 = vector.shape_cast %83 : vector<8xf32> to vector<8x1xf32>
    %85 = tpu.reciprocal %84 {approx = true} : vector<8x1xf32> -> vector<8x1xf32>
    %86 = vector.broadcast %85 : vector<8x1xf32> to vector<8x8xf32>
    %87 = arith.mulf %82, %86 : vector<8x8xf32>
    %88 = arith.truncf %87 : vector<8x8xf32> to vector<8x8xbf16>
    %cst_31 = arith.constant dense<0.000000e+00> : vector<8x8xf32>
    %89 = tpu.matmul %88, %72, %cst_31 {dimension_numbers = #tpu.dot_dimension_numbers<[1], [0], [0], [1], [0, 0, 1, 1], [], []>} : vector<8x8xbf16>, vector<8x8xbf16>, vector<8x8xf32> -> vector<8x8xf32>
    %90 = vector.extract_strided_slice %10 {offsets = [0, 24], sizes = [8, 8], strides = [1, 1]} : vector<8x32xf32> to vector<8x8xf32>
    %cst_32 = arith.constant 0.353553385 : f32
    %91 = vector.broadcast %cst_32 : f32 to vector<8x8xf32>
    %92 = arith.mulf %90, %91 : vector<8x8xf32>
    %93 = arith.truncf %92 : vector<8x8xf32> to vector<8x8xbf16>
    %94 = vector.extract_strided_slice %11 {offsets = [0, 24], sizes = [8, 8], strides = [1, 1]} : vector<8x32xf32> to vector<8x8xf32>
    %95 = arith.truncf %94 : vector<8x8xf32> to vector<8x8xbf16>
    %96 = vector.extract_strided_slice %12 {offsets = [0, 24], sizes = [8, 8], strides = [1, 1]} : vector<8x32xf32> to vector<8x8xf32>
    %97 = arith.truncf %96 : vector<8x8xf32> to vector<8x8xbf16>
    %cst_33 = arith.constant dense<0.000000e+00> : vector<8x8xf32>
    %98 = tpu.matmul %93, %95, %cst_33 {dimension_numbers = #tpu.dot_dimension_numbers<[1], [1], [0], [0], [0, 0, 1, 0], [], []>} : vector<8x8xbf16>, vector<8x8xbf16>, vector<8x8xf32> -> vector<8x8xf32>
    %c0_i32_34 = arith.constant 0 : i32
    %99 = vector.broadcast %c0_i32_34 : i32 to vector<8x8xi32>
    %100 = arith.cmpi sgt, %14, %99 : vector<8x8xi32>
    %cst_35 = arith.constant -1.000000e+09 : f32
    %101 = vector.broadcast %cst_35 : f32 to vector<8x8xf32>
    %102 = arith.select %100, %98, %101 : vector<8x8xi1>, vector<8x8xf32>
    %cst_36 = arith.constant dense<0xFF800000> : vector<8xf32>
    %103 = vector.multi_reduction <maximumf>, %102, %cst_36 [1] : vector<8x8xf32> to vector<8xf32>
    %104 = vector.shape_cast %103 : vector<8xf32> to vector<8x1xf32>
    %105 = vector.broadcast %104 : vector<8x1xf32> to vector<8x8xf32>
    %106 = arith.subf %102, %105 : vector<8x8xf32>
    %107 = math.exp %106 : vector<8x8xf32>
    %cst_37 = arith.constant dense<0.000000e+00> : vector<8xf32>
    %108 = vector.multi_reduction <add>, %107, %cst_37 [1] : vector<8x8xf32> to vector<8xf32>
    %109 = vector.shape_cast %108 : vector<8xf32> to vector<8x1xf32>
    %110 = tpu.reciprocal %109 {approx = true} : vector<8x1xf32> -> vector<8x1xf32>
    %111 = vector.broadcast %110 : vector<8x1xf32> to vector<8x8xf32>
    %112 = arith.mulf %107, %111 : vector<8x8xf32>
    %113 = arith.truncf %112 : vector<8x8xf32> to vector<8x8xbf16>
    %cst_38 = arith.constant dense<0.000000e+00> : vector<8x8xf32>
    %114 = tpu.matmul %113, %97, %cst_38 {dimension_numbers = #tpu.dot_dimension_numbers<[1], [0], [0], [1], [0, 0, 1, 1], [], []>} : vector<8x8xbf16>, vector<8x8xbf16>, vector<8x8xf32> -> vector<8x8xf32>
    %115 = tpu.concatenate %39, %64, %89, %114 in 1 : vector<8x8xf32>, vector<8x8xf32>, vector<8x8xf32>, vector<8x8xf32> -> vector<8x32xf32>
    %116 = arith.truncf %115 : vector<8x32xf32> to vector<8x32xbf16>
    %c0_39 = arith.constant 0 : index
    %c0_40 = arith.constant 0 : index
    %117 = vector.load %arg7[%c0_39, %c0_40] : memref<32x32xbf16, #tpu.memory_space<vmem>>, vector<32x32xbf16>
    %cst_41 = arith.constant dense<0.000000e+00> : vector<8x32xf32>
    %118 = tpu.matmul %116, %117, %cst_41 {dimension_numbers = #tpu.dot_dimension_numbers<[1], [0], [0], [1], [0, 0, 1, 1], [], []>} : vector<8x32xbf16>, vector<32x32xbf16>, vector<8x32xf32> -> vector<8x32xf32>
    %c0_42 = arith.constant 0 : index
    %c0_43 = arith.constant 0 : index
    %119 = vector.load %arg8[%c0_42, %c0_43] : memref<1x32xf32, #tpu.memory_space<vmem>>, vector<1x32xf32>
    %120 = vector.broadcast %119 : vector<1x32xf32> to vector<8x32xf32>
    %121 = arith.addf %118, %120 : vector<8x32xf32>
    %122 = arith.addf %1, %121 : vector<8x32xf32>
    %c0_44 = arith.constant 0 : index
    %c0_45 = arith.constant 0 : index
    %123 = vector.load %arg9[%c0_44, %c0_45] : memref<1x32xf32, #tpu.memory_space<vmem>>, vector<1x32xf32>
    %c0_46 = arith.constant 0 : index
    %c0_47 = arith.constant 0 : index
    %124 = vector.load %arg10[%c0_46, %c0_47] : memref<1x32xf32, #tpu.memory_space<vmem>>, vector<1x32xf32>
    %cst_48 = arith.constant dense<0.000000e+00> : vector<8xf32>
    %125 = vector.multi_reduction <add>, %122, %cst_48 [1] : vector<8x32xf32> to vector<8xf32>
    %126 = vector.shape_cast %125 : vector<8xf32> to vector<8x1xf32>
    %cst_49 = arith.constant 3.200000e+01 : f32
    %127 = vector.broadcast %cst_49 : f32 to vector<8x1xf32>
    %128 = arith.divf %126, %127 : vector<8x1xf32>
    %129 = vector.broadcast %128 : vector<8x1xf32> to vector<8x32xf32>
    %130 = arith.subf %122, %129 : vector<8x32xf32>
    %131 = arith.mulf %130, %130 : vector<8x32xf32>
    %cst_50 = arith.constant dense<0.000000e+00> : vector<8xf32>
    %132 = vector.multi_reduction <add>, %131, %cst_50 [1] : vector<8x32xf32> to vector<8xf32>
    %133 = vector.shape_cast %132 : vector<8xf32> to vector<8x1xf32>
    %cst_51 = arith.constant 3.200000e+01 : f32
    %134 = vector.broadcast %cst_51 : f32 to vector<8x1xf32>
    %135 = arith.divf %133, %134 : vector<8x1xf32>
    %136 = vector.broadcast %128 : vector<8x1xf32> to vector<8x32xf32>
    %137 = arith.subf %122, %136 : vector<8x32xf32>
    %cst_52 = arith.constant 9.99999974E-6 : f32
    %138 = vector.broadcast %cst_52 : f32 to vector<8x1xf32>
    %139 = arith.addf %135, %138 : vector<8x1xf32>
    %140 = math.rsqrt %139 : vector<8x1xf32>
    %141 = vector.broadcast %140 : vector<8x1xf32> to vector<8x32xf32>
    %142 = arith.mulf %137, %141 : vector<8x32xf32>
    %143 = vector.broadcast %123 : vector<1x32xf32> to vector<8x32xf32>
    %144 = arith.mulf %142, %143 : vector<8x32xf32>
    %145 = vector.broadcast %124 : vector<1x32xf32> to vector<8x32xf32>
    %146 = arith.addf %144, %145 : vector<8x32xf32>
    %147 = arith.truncf %146 : vector<8x32xf32> to vector<8x32xbf16>
    %c0_53 = arith.constant 0 : index
    %c0_54 = arith.constant 0 : index
    %148 = vector.load %arg11[%c0_53, %c0_54] : memref<32x32xbf16, #tpu.memory_space<vmem>>, vector<32x32xbf16>
    %cst_55 = arith.constant dense<0.000000e+00> : vector<8x32xf32>
    %149 = tpu.matmul %147, %148, %cst_55 {dimension_numbers = #tpu.dot_dimension_numbers<[1], [0], [0], [1], [0, 0, 1, 1], [], []>} : vector<8x32xbf16>, vector<32x32xbf16>, vector<8x32xf32> -> vector<8x32xf32>
    %c0_56 = arith.constant 0 : index
    %c0_57 = arith.constant 0 : index
    %150 = vector.load %arg12[%c0_56, %c0_57] : memref<1x32xf32, #tpu.memory_space<vmem>>, vector<1x32xf32>
    %151 = vector.broadcast %150 : vector<1x32xf32> to vector<8x32xf32>
    %152 = arith.addf %149, %151 : vector<8x32xf32>
    %153 = arith.truncf %3 : vector<8x32xf32> to vector<8x32xbf16>
    %c0_58 = arith.constant 0 : index
    %c0_59 = arith.constant 0 : index
    %154 = vector.load %arg13[%c0_58, %c0_59] : memref<32x64xbf16, #tpu.memory_space<vmem>>, vector<32x64xbf16>
    %cst_60 = arith.constant dense<0.000000e+00> : vector<8x64xf32>
    %155 = tpu.matmul %153, %154, %cst_60 {dimension_numbers = #tpu.dot_dimension_numbers<[1], [0], [0], [1], [0, 0, 1, 1], [], []>} : vector<8x32xbf16>, vector<32x64xbf16>, vector<8x64xf32> -> vector<8x64xf32>
    %c0_61 = arith.constant 0 : index
    %c0_62 = arith.constant 0 : index
    %156 = vector.load %arg14[%c0_61, %c0_62] : memref<1x64xf32, #tpu.memory_space<vmem>>, vector<1x64xf32>
    %157 = vector.broadcast %156 : vector<1x64xf32> to vector<8x64xf32>
    %158 = arith.addf %155, %157 : vector<8x64xf32>
    %159 = vector.extract_strided_slice %158 {offsets = [0, 0], sizes = [8, 32], strides = [1, 1]} : vector<8x64xf32> to vector<8x32xf32>
    %160 = vector.extract_strided_slice %158 {offsets = [0, 32], sizes = [8, 32], strides = [1, 1]} : vector<8x64xf32> to vector<8x32xf32>
    %c0_63 = arith.constant 0 : index
    %c0_64 = arith.constant 0 : index
    %c0_65 = arith.constant 0 : index
    %161 = vector.load %arg4[%c0_63, %c0_64, %c0_65] : memref<1x8x8xi32, #tpu.memory_space<vmem>>, vector<1x8x8xi32>
    %162 = vector.shape_cast %161 : vector<1x8x8xi32> to vector<8x8xi32>
    %163 = vector.extract_strided_slice %152 {offsets = [0, 0], sizes = [8, 8], strides = [1, 1]} : vector<8x32xf32> to vector<8x8xf32>
    %cst_66 = arith.constant 0.353553385 : f32
    %164 = vector.broadcast %cst_66 : f32 to vector<8x8xf32>
    %165 = arith.mulf %163, %164 : vector<8x8xf32>
    %166 = arith.truncf %165 : vector<8x8xf32> to vector<8x8xbf16>
    %167 = vector.extract_strided_slice %159 {offsets = [0, 0], sizes = [8, 8], strides = [1, 1]} : vector<8x32xf32> to vector<8x8xf32>
    %168 = arith.truncf %167 : vector<8x8xf32> to vector<8x8xbf16>
    %169 = vector.extract_strided_slice %160 {offsets = [0, 0], sizes = [8, 8], strides = [1, 1]} : vector<8x32xf32> to vector<8x8xf32>
    %170 = arith.truncf %169 : vector<8x8xf32> to vector<8x8xbf16>
    %cst_67 = arith.constant dense<0.000000e+00> : vector<8x8xf32>
    %171 = tpu.matmul %166, %168, %cst_67 {dimension_numbers = #tpu.dot_dimension_numbers<[1], [1], [0], [0], [0, 0, 1, 0], [], []>} : vector<8x8xbf16>, vector<8x8xbf16>, vector<8x8xf32> -> vector<8x8xf32>
    %c0_i32_68 = arith.constant 0 : i32
    %172 = vector.broadcast %c0_i32_68 : i32 to vector<8x8xi32>
    %173 = arith.cmpi sgt, %162, %172 : vector<8x8xi32>
    %cst_69 = arith.constant -1.000000e+09 : f32
    %174 = vector.broadcast %cst_69 : f32 to vector<8x8xf32>
    %175 = arith.select %173, %171, %174 : vector<8x8xi1>, vector<8x8xf32>
    %cst_70 = arith.constant dense<0xFF800000> : vector<8xf32>
    %176 = vector.multi_reduction <maximumf>, %175, %cst_70 [1] : vector<8x8xf32> to vector<8xf32>
    %177 = vector.shape_cast %176 : vector<8xf32> to vector<8x1xf32>
    %178 = vector.broadcast %177 : vector<8x1xf32> to vector<8x8xf32>
    %179 = arith.subf %175, %178 : vector<8x8xf32>
    %180 = math.exp %179 : vector<8x8xf32>
    %cst_71 = arith.constant dense<0.000000e+00> : vector<8xf32>
    %181 = vector.multi_reduction <add>, %180, %cst_71 [1] : vector<8x8xf32> to vector<8xf32>
    %182 = vector.shape_cast %181 : vector<8xf32> to vector<8x1xf32>
    %183 = tpu.reciprocal %182 {approx = true} : vector<8x1xf32> -> vector<8x1xf32>
    %184 = vector.broadcast %183 : vector<8x1xf32> to vector<8x8xf32>
    %185 = arith.mulf %180, %184 : vector<8x8xf32>
    %186 = arith.truncf %185 : vector<8x8xf32> to vector<8x8xbf16>
    %cst_72 = arith.constant dense<0.000000e+00> : vector<8x8xf32>
    %187 = tpu.matmul %186, %170, %cst_72 {dimension_numbers = #tpu.dot_dimension_numbers<[1], [0], [0], [1], [0, 0, 1, 1], [], []>} : vector<8x8xbf16>, vector<8x8xbf16>, vector<8x8xf32> -> vector<8x8xf32>
    %188 = vector.extract_strided_slice %152 {offsets = [0, 8], sizes = [8, 8], strides = [1, 1]} : vector<8x32xf32> to vector<8x8xf32>
    %cst_73 = arith.constant 0.353553385 : f32
    %189 = vector.broadcast %cst_73 : f32 to vector<8x8xf32>
    %190 = arith.mulf %188, %189 : vector<8x8xf32>
    %191 = arith.truncf %190 : vector<8x8xf32> to vector<8x8xbf16>
    %192 = vector.extract_strided_slice %159 {offsets = [0, 8], sizes = [8, 8], strides = [1, 1]} : vector<8x32xf32> to vector<8x8xf32>
    %193 = arith.truncf %192 : vector<8x8xf32> to vector<8x8xbf16>
    %194 = vector.extract_strided_slice %160 {offsets = [0, 8], sizes = [8, 8], strides = [1, 1]} : vector<8x32xf32> to vector<8x8xf32>
    %195 = arith.truncf %194 : vector<8x8xf32> to vector<8x8xbf16>
    %cst_74 = arith.constant dense<0.000000e+00> : vector<8x8xf32>
    %196 = tpu.matmul %191, %193, %cst_74 {dimension_numbers = #tpu.dot_dimension_numbers<[1], [1], [0], [0], [0, 0, 1, 0], [], []>} : vector<8x8xbf16>, vector<8x8xbf16>, vector<8x8xf32> -> vector<8x8xf32>
    %c0_i32_75 = arith.constant 0 : i32
    %197 = vector.broadcast %c0_i32_75 : i32 to vector<8x8xi32>
    %198 = arith.cmpi sgt, %162, %197 : vector<8x8xi32>
    %cst_76 = arith.constant -1.000000e+09 : f32
    %199 = vector.broadcast %cst_76 : f32 to vector<8x8xf32>
    %200 = arith.select %198, %196, %199 : vector<8x8xi1>, vector<8x8xf32>
    %cst_77 = arith.constant dense<0xFF800000> : vector<8xf32>
    %201 = vector.multi_reduction <maximumf>, %200, %cst_77 [1] : vector<8x8xf32> to vector<8xf32>
    %202 = vector.shape_cast %201 : vector<8xf32> to vector<8x1xf32>
    %203 = vector.broadcast %202 : vector<8x1xf32> to vector<8x8xf32>
    %204 = arith.subf %200, %203 : vector<8x8xf32>
    %205 = math.exp %204 : vector<8x8xf32>
    %cst_78 = arith.constant dense<0.000000e+00> : vector<8xf32>
    %206 = vector.multi_reduction <add>, %205, %cst_78 [1] : vector<8x8xf32> to vector<8xf32>
    %207 = vector.shape_cast %206 : vector<8xf32> to vector<8x1xf32>
    %208 = tpu.reciprocal %207 {approx = true} : vector<8x1xf32> -> vector<8x1xf32>
    %209 = vector.broadcast %208 : vector<8x1xf32> to vector<8x8xf32>
    %210 = arith.mulf %205, %209 : vector<8x8xf32>
    %211 = arith.truncf %210 : vector<8x8xf32> to vector<8x8xbf16>
    %cst_79 = arith.constant dense<0.000000e+00> : vector<8x8xf32>
    %212 = tpu.matmul %211, %195, %cst_79 {dimension_numbers = #tpu.dot_dimension_numbers<[1], [0], [0], [1], [0, 0, 1, 1], [], []>} : vector<8x8xbf16>, vector<8x8xbf16>, vector<8x8xf32> -> vector<8x8xf32>
    %213 = vector.extract_strided_slice %152 {offsets = [0, 16], sizes = [8, 8], strides = [1, 1]} : vector<8x32xf32> to vector<8x8xf32>
    %cst_80 = arith.constant 0.353553385 : f32
    %214 = vector.broadcast %cst_80 : f32 to vector<8x8xf32>
    %215 = arith.mulf %213, %214 : vector<8x8xf32>
    %216 = arith.truncf %215 : vector<8x8xf32> to vector<8x8xbf16>
    %217 = vector.extract_strided_slice %159 {offsets = [0, 16], sizes = [8, 8], strides = [1, 1]} : vector<8x32xf32> to vector<8x8xf32>
    %218 = arith.truncf %217 : vector<8x8xf32> to vector<8x8xbf16>
    %219 = vector.extract_strided_slice %160 {offsets = [0, 16], sizes = [8, 8], strides = [1, 1]} : vector<8x32xf32> to vector<8x8xf32>
    %220 = arith.truncf %219 : vector<8x8xf32> to vector<8x8xbf16>
    %cst_81 = arith.constant dense<0.000000e+00> : vector<8x8xf32>
    %221 = tpu.matmul %216, %218, %cst_81 {dimension_numbers = #tpu.dot_dimension_numbers<[1], [1], [0], [0], [0, 0, 1, 0], [], []>} : vector<8x8xbf16>, vector<8x8xbf16>, vector<8x8xf32> -> vector<8x8xf32>
    %c0_i32_82 = arith.constant 0 : i32
    %222 = vector.broadcast %c0_i32_82 : i32 to vector<8x8xi32>
    %223 = arith.cmpi sgt, %162, %222 : vector<8x8xi32>
    %cst_83 = arith.constant -1.000000e+09 : f32
    %224 = vector.broadcast %cst_83 : f32 to vector<8x8xf32>
    %225 = arith.select %223, %221, %224 : vector<8x8xi1>, vector<8x8xf32>
    %cst_84 = arith.constant dense<0xFF800000> : vector<8xf32>
    %226 = vector.multi_reduction <maximumf>, %225, %cst_84 [1] : vector<8x8xf32> to vector<8xf32>
    %227 = vector.shape_cast %226 : vector<8xf32> to vector<8x1xf32>
    %228 = vector.broadcast %227 : vector<8x1xf32> to vector<8x8xf32>
    %229 = arith.subf %225, %228 : vector<8x8xf32>
    %230 = math.exp %229 : vector<8x8xf32>
    %cst_85 = arith.constant dense<0.000000e+00> : vector<8xf32>
    %231 = vector.multi_reduction <add>, %230, %cst_85 [1] : vector<8x8xf32> to vector<8xf32>
    %232 = vector.shape_cast %231 : vector<8xf32> to vector<8x1xf32>
    %233 = tpu.reciprocal %232 {approx = true} : vector<8x1xf32> -> vector<8x1xf32>
    %234 = vector.broadcast %233 : vector<8x1xf32> to vector<8x8xf32>
    %235 = arith.mulf %230, %234 : vector<8x8xf32>
    %236 = arith.truncf %235 : vector<8x8xf32> to vector<8x8xbf16>
    %cst_86 = arith.constant dense<0.000000e+00> : vector<8x8xf32>
    %237 = tpu.matmul %236, %220, %cst_86 {dimension_numbers = #tpu.dot_dimension_numbers<[1], [0], [0], [1], [0, 0, 1, 1], [], []>} : vector<8x8xbf16>, vector<8x8xbf16>, vector<8x8xf32> -> vector<8x8xf32>
    %238 = vector.extract_strided_slice %152 {offsets = [0, 24], sizes = [8, 8], strides = [1, 1]} : vector<8x32xf32> to vector<8x8xf32>
    %cst_87 = arith.constant 0.353553385 : f32
    %239 = vector.broadcast %cst_87 : f32 to vector<8x8xf32>
    %240 = arith.mulf %238, %239 : vector<8x8xf32>
    %241 = arith.truncf %240 : vector<8x8xf32> to vector<8x8xbf16>
    %242 = vector.extract_strided_slice %159 {offsets = [0, 24], sizes = [8, 8], strides = [1, 1]} : vector<8x32xf32> to vector<8x8xf32>
    %243 = arith.truncf %242 : vector<8x8xf32> to vector<8x8xbf16>
    %244 = vector.extract_strided_slice %160 {offsets = [0, 24], sizes = [8, 8], strides = [1, 1]} : vector<8x32xf32> to vector<8x8xf32>
    %245 = arith.truncf %244 : vector<8x8xf32> to vector<8x8xbf16>
    %cst_88 = arith.constant dense<0.000000e+00> : vector<8x8xf32>
    %246 = tpu.matmul %241, %243, %cst_88 {dimension_numbers = #tpu.dot_dimension_numbers<[1], [1], [0], [0], [0, 0, 1, 0], [], []>} : vector<8x8xbf16>, vector<8x8xbf16>, vector<8x8xf32> -> vector<8x8xf32>
    %c0_i32_89 = arith.constant 0 : i32
    %247 = vector.broadcast %c0_i32_89 : i32 to vector<8x8xi32>
    %248 = arith.cmpi sgt, %162, %247 : vector<8x8xi32>
    %cst_90 = arith.constant -1.000000e+09 : f32
    %249 = vector.broadcast %cst_90 : f32 to vector<8x8xf32>
    %250 = arith.select %248, %246, %249 : vector<8x8xi1>, vector<8x8xf32>
    %cst_91 = arith.constant dense<0xFF800000> : vector<8xf32>
    %251 = vector.multi_reduction <maximumf>, %250, %cst_91 [1] : vector<8x8xf32> to vector<8xf32>
    %252 = vector.shape_cast %251 : vector<8xf32> to vector<8x1xf32>
    %253 = vector.broadcast %252 : vector<8x1xf32> to vector<8x8xf32>
    %254 = arith.subf %250, %253 : vector<8x8xf32>
    %255 = math.exp %254 : vector<8x8xf32>
    %cst_92 = arith.constant dense<0.000000e+00> : vector<8xf32>
    %256 = vector.multi_reduction <add>, %255, %cst_92 [1] : vector<8x8xf32> to vector<8xf32>
    %257 = vector.shape_cast %256 : vector<8xf32> to vector<8x1xf32>
    %258 = tpu.reciprocal %257 {approx = true} : vector<8x1xf32> -> vector<8x1xf32>
    %259 = vector.broadcast %258 : vector<8x1xf32> to vector<8x8xf32>
    %260 = arith.mulf %255, %259 : vector<8x8xf32>
    %261 = arith.truncf %260 : vector<8x8xf32> to vector<8x8xbf16>
    %cst_93 = arith.constant dense<0.000000e+00> : vector<8x8xf32>
    %262 = tpu.matmul %261, %245, %cst_93 {dimension_numbers = #tpu.dot_dimension_numbers<[1], [0], [0], [1], [0, 0, 1, 1], [], []>} : vector<8x8xbf16>, vector<8x8xbf16>, vector<8x8xf32> -> vector<8x8xf32>
    %263 = tpu.concatenate %187, %212, %237, %262 in 1 : vector<8x8xf32>, vector<8x8xf32>, vector<8x8xf32>, vector<8x8xf32> -> vector<8x32xf32>
    %264 = arith.truncf %263 : vector<8x32xf32> to vector<8x32xbf16>
    %c0_94 = arith.constant 0 : index
    %c0_95 = arith.constant 0 : index
    %265 = vector.load %arg15[%c0_94, %c0_95] : memref<32x32xbf16, #tpu.memory_space<vmem>>, vector<32x32xbf16>
    %cst_96 = arith.constant dense<0.000000e+00> : vector<8x32xf32>
    %266 = tpu.matmul %264, %265, %cst_96 {dimension_numbers = #tpu.dot_dimension_numbers<[1], [0], [0], [1], [0, 0, 1, 1], [], []>} : vector<8x32xbf16>, vector<32x32xbf16>, vector<8x32xf32> -> vector<8x32xf32>
    %c0_97 = arith.constant 0 : index
    %c0_98 = arith.constant 0 : index
    %267 = vector.load %arg16[%c0_97, %c0_98] : memref<1x32xf32, #tpu.memory_space<vmem>>, vector<1x32xf32>
    %268 = vector.broadcast %267 : vector<1x32xf32> to vector<8x32xf32>
    %269 = arith.addf %266, %268 : vector<8x32xf32>
    %270 = arith.addf %146, %269 : vector<8x32xf32>
    %c0_99 = arith.constant 0 : index
    %c0_100 = arith.constant 0 : index
    %271 = vector.load %arg17[%c0_99, %c0_100] : memref<1x32xf32, #tpu.memory_space<vmem>>, vector<1x32xf32>
    %c0_101 = arith.constant 0 : index
    %c0_102 = arith.constant 0 : index
    %272 = vector.load %arg18[%c0_101, %c0_102] : memref<1x32xf32, #tpu.memory_space<vmem>>, vector<1x32xf32>
    %cst_103 = arith.constant dense<0.000000e+00> : vector<8xf32>
    %273 = vector.multi_reduction <add>, %270, %cst_103 [1] : vector<8x32xf32> to vector<8xf32>
    %274 = vector.shape_cast %273 : vector<8xf32> to vector<8x1xf32>
    %cst_104 = arith.constant 3.200000e+01 : f32
    %275 = vector.broadcast %cst_104 : f32 to vector<8x1xf32>
    %276 = arith.divf %274, %275 : vector<8x1xf32>
    %277 = vector.broadcast %276 : vector<8x1xf32> to vector<8x32xf32>
    %278 = arith.subf %270, %277 : vector<8x32xf32>
    %279 = arith.mulf %278, %278 : vector<8x32xf32>
    %cst_105 = arith.constant dense<0.000000e+00> : vector<8xf32>
    %280 = vector.multi_reduction <add>, %279, %cst_105 [1] : vector<8x32xf32> to vector<8xf32>
    %281 = vector.shape_cast %280 : vector<8xf32> to vector<8x1xf32>
    %cst_106 = arith.constant 3.200000e+01 : f32
    %282 = vector.broadcast %cst_106 : f32 to vector<8x1xf32>
    %283 = arith.divf %281, %282 : vector<8x1xf32>
    %284 = vector.broadcast %276 : vector<8x1xf32> to vector<8x32xf32>
    %285 = arith.subf %270, %284 : vector<8x32xf32>
    %cst_107 = arith.constant 9.99999974E-6 : f32
    %286 = vector.broadcast %cst_107 : f32 to vector<8x1xf32>
    %287 = arith.addf %283, %286 : vector<8x1xf32>
    %288 = math.rsqrt %287 : vector<8x1xf32>
    %289 = vector.broadcast %288 : vector<8x1xf32> to vector<8x32xf32>
    %290 = arith.mulf %285, %289 : vector<8x32xf32>
    %291 = vector.broadcast %271 : vector<1x32xf32> to vector<8x32xf32>
    %292 = arith.mulf %290, %291 : vector<8x32xf32>
    %293 = vector.broadcast %272 : vector<1x32xf32> to vector<8x32xf32>
    %294 = arith.addf %292, %293 : vector<8x32xf32>
    %295 = arith.truncf %294 : vector<8x32xf32> to vector<8x32xbf16>
    %c0_108 = arith.constant 0 : index
    %c0_109 = arith.constant 0 : index
    %296 = vector.load %arg19[%c0_108, %c0_109] : memref<32x64xbf16, #tpu.memory_space<vmem>>, vector<32x64xbf16>
    %cst_110 = arith.constant dense<0.000000e+00> : vector<8x64xf32>
    %297 = tpu.matmul %295, %296, %cst_110 {dimension_numbers = #tpu.dot_dimension_numbers<[1], [0], [0], [1], [0, 0, 1, 1], [], []>} : vector<8x32xbf16>, vector<32x64xbf16>, vector<8x64xf32> -> vector<8x64xf32>
    %c0_111 = arith.constant 0 : index
    %c0_112 = arith.constant 0 : index
    %298 = vector.load %arg20[%c0_111, %c0_112] : memref<1x64xf32, #tpu.memory_space<vmem>>, vector<1x64xf32>
    %299 = vector.broadcast %298 : vector<1x64xf32> to vector<8x64xf32>
    %300 = arith.addf %297, %299 : vector<8x64xf32>
    %cst_113 = arith.constant 0.000000e+00 : f32
    %301 = vector.broadcast %cst_113 : f32 to vector<8x64xf32>
    %302 = arith.maximumf %300, %301 : vector<8x64xf32>
    %303 = arith.truncf %302 : vector<8x64xf32> to vector<8x64xbf16>
    %c0_114 = arith.constant 0 : index
    %c0_115 = arith.constant 0 : index
    %304 = vector.load %arg21[%c0_114, %c0_115] : memref<64x32xbf16, #tpu.memory_space<vmem>>, vector<64x32xbf16>
    %cst_116 = arith.constant dense<0.000000e+00> : vector<8x32xf32>
    %305 = tpu.matmul %303, %304, %cst_116 {dimension_numbers = #tpu.dot_dimension_numbers<[1], [0], [0], [1], [0, 0, 1, 1], [], []>} : vector<8x64xbf16>, vector<64x32xbf16>, vector<8x32xf32> -> vector<8x32xf32>
    %c0_117 = arith.constant 0 : index
    %c0_118 = arith.constant 0 : index
    %306 = vector.load %arg22[%c0_117, %c0_118] : memref<1x32xf32, #tpu.memory_space<vmem>>, vector<1x32xf32>
    %307 = vector.broadcast %306 : vector<1x32xf32> to vector<8x32xf32>
    %308 = arith.addf %305, %307 : vector<8x32xf32>
    %309 = arith.addf %294, %308 : vector<8x32xf32>
    %c0_119 = arith.constant 0 : index
    %c0_120 = arith.constant 0 : index
    %310 = vector.load %arg23[%c0_119, %c0_120] : memref<1x32xf32, #tpu.memory_space<vmem>>, vector<1x32xf32>
    %c0_121 = arith.constant 0 : index
    %c0_122 = arith.constant 0 : index
    %311 = vector.load %arg24[%c0_121, %c0_122] : memref<1x32xf32, #tpu.memory_space<vmem>>, vector<1x32xf32>
    %cst_123 = arith.constant dense<0.000000e+00> : vector<8xf32>
    %312 = vector.multi_reduction <add>, %309, %cst_123 [1] : vector<8x32xf32> to vector<8xf32>
    %313 = vector.shape_cast %312 : vector<8xf32> to vector<8x1xf32>
    %cst_124 = arith.constant 3.200000e+01 : f32
    %314 = vector.broadcast %cst_124 : f32 to vector<8x1xf32>
    %315 = arith.divf %313, %314 : vector<8x1xf32>
    %316 = vector.broadcast %315 : vector<8x1xf32> to vector<8x32xf32>
    %317 = arith.subf %309, %316 : vector<8x32xf32>
    %318 = arith.mulf %317, %317 : vector<8x32xf32>
    %cst_125 = arith.constant dense<0.000000e+00> : vector<8xf32>
    %319 = vector.multi_reduction <add>, %318, %cst_125 [1] : vector<8x32xf32> to vector<8xf32>
    %320 = vector.shape_cast %319 : vector<8xf32> to vector<8x1xf32>
    %cst_126 = arith.constant 3.200000e+01 : f32
    %321 = vector.broadcast %cst_126 : f32 to vector<8x1xf32>
    %322 = arith.divf %320, %321 : vector<8x1xf32>
    %323 = vector.broadcast %315 : vector<8x1xf32> to vector<8x32xf32>
    %324 = arith.subf %309, %323 : vector<8x32xf32>
    %cst_127 = arith.constant 9.99999974E-6 : f32
    %325 = vector.broadcast %cst_127 : f32 to vector<8x1xf32>
    %326 = arith.addf %322, %325 : vector<8x1xf32>
    %327 = math.rsqrt %326 : vector<8x1xf32>
    %328 = vector.broadcast %327 : vector<8x1xf32> to vector<8x32xf32>
    %329 = arith.mulf %324, %328 : vector<8x32xf32>
    %330 = vector.broadcast %310 : vector<1x32xf32> to vector<8x32xf32>
    %331 = arith.mulf %329, %330 : vector<8x32xf32>
    %332 = vector.broadcast %311 : vector<1x32xf32> to vector<8x32xf32>
    %333 = arith.addf %331, %332 : vector<8x32xf32>
    %c0_128 = arith.constant 0 : index
    %c0_129 = arith.constant 0 : index
    %c0_130 = arith.constant 0 : index
    %334 = vector.load %arg25[%c0_128, %c0_129, %c0_130] : memref<1x8x32xf32, #tpu.memory_space<vmem>>, vector<1x8x32xf32>
    %335 = vector.shape_cast %334 : vector<1x8x32xf32> to vector<8x32xf32>
    %336 = vector.shape_cast %333 : vector<8x32xf32> to vector<1x8x32xf32>
    tpu.vector_store %arg25[%c0_128, %c0_129, %c0_130], %336 {strides = array<i32>} : memref<1x8x32xf32, #tpu.memory_space<vmem>>, vector<1x8x32xf32>,
    return
  }
  func.func @transform_0(%arg0: i32) -> (i32, i32, i32) {
    %c0_i32 = arith.constant 0 : i32
    %c0_i32_0 = arith.constant 0 : i32
    %c0_i32_1 = arith.constant 0 : i32
    return %arg0, %c0_i32, %c0_i32_0 : i32, i32, i32
  }
  func.func @transform_1(%arg0: i32) -> (i32, i32, i32) {
    %c0_i32 = arith.constant 0 : i32
    %c0_i32_0 = arith.constant 0 : i32
    %c0_i32_1 = arith.constant 0 : i32
    return %arg0, %c0_i32, %c0_i32_0 : i32, i32, i32
  }
  func.func @transform_2(%arg0: i32) -> (i32, i32, i32) {
    %c0_i32 = arith.constant 0 : i32
    %c0_i32_0 = arith.constant 0 : i32
    %c0_i32_1 = arith.constant 0 : i32
    return %arg0, %c0_i32, %c0_i32_0 : i32, i32, i32
  }
  func.func @transform_3(%arg0: i32) -> (i32, i32, i32) {
    %c0_i32 = arith.constant 0 : i32
    %c0_i32_0 = arith.constant 0 : i32
    %c0_i32_1 = arith.constant 0 : i32
    return %arg0, %c0_i32, %c0_i32_0 : i32, i32, i32
  }
  func.func @transform_4(%arg0: i32) -> (i32, i32) {
    %c0_i32 = arith.constant 0 : i32
    %c0_i32_0 = arith.constant 0 : i32
    %c0_i32_1 = arith.constant 0 : i32
    return %c0_i32, %c0_i32_0 : i32, i32
  }
  func.func @transform_5(%arg0: i32) -> (i32, i32) {
    %c0_i32 = arith.constant 0 : i32
    %c0_i32_0 = arith.constant 0 : i32
    %c0_i32_1 = arith.constant 0 : i32
    return %c0_i32, %c0_i32_0 : i32, i32
  }
  func.func @transform_6(%arg0: i32) -> (i32, i32) {
    %c0_i32 = arith.constant 0 : i32
    %c0_i32_0 = arith.constant 0 : i32
    %c0_i32_1 = arith.constant 0 : i32
    return %c0_i32, %c0_i32_0 : i32, i32
  }
  func.func @transform_7(%arg0: i32) -> (i32, i32) {
    %c0_i32 = arith.constant 0 : i32
    %c0_i32_0 = arith.constant 0 : i32
    %c0_i32_1 = arith.constant 0 : i32
    return %c0_i32, %c0_i32_0 : i32, i32
  }
  func.func @transform_8(%arg0: i32) -> (i32, i32) {
    %c0_i32 = arith.constant 0 : i32
    %c0_i32_0 = arith.constant 0 : i32
    %c0_i32_1 = arith.constant 0 : i32
    return %c0_i32, %c0_i32_0 : i32, i32
  }
  func.func @transform_9(%arg0: i32) -> (i32, i32) {
    %c0_i32 = arith.constant 0 : i32
    %c0_i32_0 = arith.constant 0 : i32
    %c0_i32_1 = arith.constant 0 : i32
    return %c0_i32, %c0_i32_0 : i32, i32
  }
  func.func @transform_10(%arg0: i32) -> (i32, i32) {
    %c0_i32 = arith.constant 0 : i32
    %c0_i32_0 = arith.constant 0 : i32
    %c0_i32_1 = arith.constant 0 : i32
    return %c0_i32, %c0_i32_0 : i32, i32
  }
  func.func @transform_11(%arg0: i32) -> (i32, i32) {
    %c0_i32 = arith.constant 0 : i32
    %c0_i32_0 = arith.constant 0 : i32
    %c0_i32_1 = arith.constant 0 : i32
    return %c0_i32, %c0_i32_0 : i32, i32
  }
  func.func @transform_12(%arg0: i32) -> (i32, i32) {
    %c0_i32 = arith.constant 0 : i32
    %c0_i32_0 = arith.constant 0 : i32
    %c0_i32_1 = arith.constant 0 : i32
    return %c0_i32, %c0_i32_0 : i32, i32
  }
  func.func @transform_13(%arg0: i32) -> (i32, i32) {
    %c0_i32 = arith.constant 0 : i32
    %c0_i32_0 = arith.constant 0 : i32
    %c0_i32_1 = arith.constant 0 : i32
    return %c0_i32, %c0_i32_0 : i32, i32
  }
  func.func @transform_14(%arg0: i32) -> (i32, i32) {
    %c0_i32 = arith.constant 0 : i32
    %c0_i32_0 = arith.constant 0 : i32
    %c0_i32_1 = arith.constant 0 : i32
    return %c0_i32, %c0_i32_0 : i32, i32
  }
  func.func @transform_15(%arg0: i32) -> (i32, i32) {
    %c0_i32 = arith.constant 0 : i32
    %c0_i32_0 = arith.constant 0 : i32
    %c0_i32_1 = arith.constant 0 : i32
    return %c0_i32, %c0_i32_0 : i32, i32
  }
  func.func @transform_16(%arg0: i32) -> (i32, i32) {
    %c0_i32 = arith.constant 0 : i32
    %c0_i32_0 = arith.constant 0 : i32
    %c0_i32_1 = arith.constant 0 : i32
    return %c0_i32, %c0_i32_0 : i32, i32
  }
  func.func @transform_17(%arg0: i32) -> (i32, i32) {
    %c0_i32 = arith.constant 0 : i32
    %c0_i32_0 = arith.constant 0 : i32
    %c0_i32_1 = arith.constant 0 : i32
    return %c0_i32, %c0_i32_0 : i32, i32
  }
  func.func @transform_18(%arg0: i32) -> (i32, i32) {
    %c0_i32 = arith.constant 0 : i32
    %c0_i32_0 = arith.constant 0 : i32
    %c0_i32_1 = arith.constant 0 : i32
    return %c0_i32, %c0_i32_0 : i32, i32
  }
  func.func @transform_19(%arg0: i32) -> (i32, i32) {
    %c0_i32 = arith.constant 0 : i32
    %c0_i32_0 = arith.constant 0 : i32
    %c0_i32_1 = arith.constant 0 : i32
    return %c0_i32, %c0_i32_0 : i32, i32
  }
  func.func @transform_20(%arg0: i32) -> (i32, i32) {
    %c0_i32 = arith.constant 0 : i32
    %c0_i32_0 = arith.constant 0 : i32
    %c0_i32_1 = arith.constant 0 : i32
    return %c0_i32, %c0_i32_0 : i32, i32
  }
  func.func @transform_21(%arg0: i32) -> (i32, i32) {
    %c0_i32 = arith.constant 0 : i32
    %c0_i32_0 = arith.constant 0 : i32
    %c0_i32_1 = arith.constant 0 : i32
    return %c0_i32, %c0_i32_0 : i32, i32
  }
  func.func @transform_22(%arg0: i32) -> (i32, i32) {
    %c0_i32 = arith.constant 0 : i32
    %c0_i32_0 = arith.constant 0 : i32
    %c0_i32_1 = arith.constant 0 : i32
    return %c0_i32, %c0_i32_0 : i32, i32
  }
  func.func @transform_23(%arg0: i32) -> (i32, i32) {
    %c0_i32 = arith.constant 0 : i32
    %c0_i32_0 = arith.constant 0 : i32
    %c0_i32_1 = arith.constant 0 : i32
    return %c0_i32, %c0_i32_0 : i32, i32
  }
  func.func @transform_24(%arg0: i32) -> (i32, i32, i32) {
    %c0_i32 = arith.constant 0 : i32
    %c0_i32_0 = arith.constant 0 : i32
    %c0_i32_1 = arith.constant 0 : i32
    return %arg0, %c0_i32, %c0_i32_0 : i32, i32, i32
  }
}

module attributes {stable_mosaic.version = 11 : i64} {
  func.func @_decoder_block_kernel(%arg0: i32, %arg1: memref<1x8x32xf32, #tpu.memory_space<vmem>>, %arg2: memref<1x8x32xf32, #tpu.memory_space<vmem>>, %arg3: memref<1x8x8xi32, #tpu.memory_space<vmem>>, %arg4: memref<1x8x8xi32, #tpu.memory_space<vmem>>, %arg5: memref<32x96xbf16, #tpu.memory_space<vmem>>, %arg6: memref<1x96xf32, #tpu.memory_space<vmem>>, %arg7: memref<32x32xbf16, #tpu.memory_space<vmem>>, %arg8: memref<1x32xf32, #tpu.memory_space<vmem>>, %arg9: memref<1x32xf32, #tpu.memory_space<vmem>>, %arg10: memref<1x32xf32, #tpu.memory_space<vmem>>, %arg11: memref<32x32xbf16, #tpu.memory_space<vmem>>, %arg12: memref<1x32xf32, #tpu.memory_space<vmem>>, %arg13: memref<32x64xbf16, #tpu.memory_space<vmem>>, %arg14: memref<1x64xf32, #tpu.memory_space<vmem>>, %arg15: memref<32x32xbf16, #tpu.memory_space<vmem>>, %arg16: memref<1x32xf32, #tpu.memory_space<vmem>>, %arg17: memref<1x32xf32, #tpu.memory_space<vmem>>, %arg18: memref<1x32xf32, #tpu.memory_space<vmem>>, %arg19: memref<32x64xbf16, #tpu.memory_space<vmem>>, %arg20: memref<1x64xf32, #tpu.memory_space<vmem>>, %arg21: memref<64x32xbf16, #tpu.memory_space<vmem>>, %arg22: memref<1x32xf32, #tpu.memory_space<vmem>>, %arg23: memref<1x32xf32, #tpu.memory_space<vmem>>, %arg24: memref<1x32xf32, #tpu.memory_space<vmem>>, %arg25: memref<1x8x32xf32, #tpu.memory_space<vmem>>) attributes {dimension_semantics = [#tpu.dimension_semantics<parallel>], iteration_bounds = array<i64: 2>, scalar_prefetch = 0 : i64, scratch_operands = 0 : i64, tpu.core_type = #tpu.core_type<tc>, window_params = [{transform_indices = @transform_0, window_bounds = array<i64: 1, 8, 32>}, {transform_indices = @transform_1, window_bounds = array<i64: 1, 8, 32>}, {transform_indices = @transform_2, window_bounds = array<i64: 1, 8, 8>}, {transform_indices = @transform_3, window_bounds = array<i64: 1, 8, 8>}, {pipeline_mode = #tpu.pipeline_mode<synchronous>, transform_indices = @transform_4, window_bounds = array<i64: 32, 96>}, {pipeline_mode = #tpu.pipeline_mode<synchronous>, transform_indices = @transform_5, window_bounds = array<i64: 1, 96>}, {pipeline_mode = #tpu.pipeline_mode<synchronous>, transform_indices = @transform_6, window_bounds = array<i64: 32, 32>}, {pipeline_mode = #tpu.pipeline_mode<synchronous>, transform_indices = @transform_7, window_bounds = array<i64: 1, 32>}, {pipeline_mode = #tpu.pipeline_mode<synchronous>, transform_indices = @transform_8, window_bounds = array<i64: 1, 32>}, {pipeline_mode = #tpu.pipeline_mode<synchronous>, transform_indices = @transform_9, window_bounds = array<i64: 1, 32>}, {pipeline_mode = #tpu.pipeline_mode<synchronous>, transform_indices = @transform_10, window_bounds = array<i64: 32, 32>}, {pipeline_mode = #tpu.pipeline_mode<synchronous>, transform_indices = @transform_11, window_bounds = array<i64: 1, 32>}, {pipeline_mode = #tpu.pipeline_mode<synchronous>, transform_indices = @transform_12, window_bounds = array<i64: 32, 64>}, {pipeline_mode = #tpu.pipeline_mode<synchronous>, transform_indices = @transform_13, window_bounds = array<i64: 1, 64>}, {pipeline_mode = #tpu.pipeline_mode<synchronous>, transform_indices = @transform_14, window_bounds = array<i64: 32, 32>}, {pipeline_mode = #tpu.pipeline_mode<synchronous>, transform_indices = @transform_15, window_bounds = array<i64: 1, 32>}, {pipeline_mode = #tpu.pipeline_mode<synchronous>, transform_indices = @transform_16, window_bounds = array<i64: 1, 32>}, {pipeline_mode = #tpu.pipeline_mode<synchronous>, transform_indices = @transform_17, window_bounds = array<i64: 1, 32>}, {pipeline_mode = #tpu.pipeline_mode<synchronous>, transform_indices = @transform_18, window_bounds = array<i64: 32, 64>}, {pipeline_mode = #tpu.pipeline_mode<synchronous>, transform_indices = @transform_19, window_bounds = array<i64: 1, 64>}, {pipeline_mode = #tpu.pipeline_mode<synchronous>, transform_indices = @transform_20, window_bounds = array<i64: 64, 32>}, {pipeline_mode = #tpu.pipeline_mode<synchronous>, transform_indices = @transform_21, window_bounds = array<i64: 1, 32>}, {pipeline_mode = #tpu.pipeline_mode<synchronous>, transform_indices = @transform_22, window_bounds = array<i64: 1, 32>}, {pipeline_mode = #tpu.pipeline_mode<synchronous>, transform_indices = @transform_23, window_bounds = array<i64: 1, 32>}, {transform_indices = @transform_24, window_bounds = array<i64: 1, 8, 32>}]} {
    %c0 = arith.constant 0 : index
    %c0_0 = arith.constant 0 : index
    %c0_1 = arith.constant 0 : index
    %0 = vector.load %arg1[%c0, %c0_0, %c0_1] : memref<1x8x32xf32, #tpu.memory_space<vmem>>, vector<1x8x32xf32>
    %1 = vector.shape_cast %0 : vector<1x8x32xf32> to vector<8x32xf32>
    %c0_2 = arith.constant 0 : index
    %c0_3 = arith.constant 0 : index
    %c0_4 = arith.constant 0 : index
    %2 = vector.load %arg2[%c0_2, %c0_3, %c0_4] : memref<1x8x32xf32, #tpu.memory_space<vmem>>, vector<1x8x32xf32>
    %3 = vector.shape_cast %2 : vector<1x8x32xf32> to vector<8x32xf32>
    %4 = arith.truncf %1 : vector<8x32xf32> to vector<8x32xbf16>
    %c0_5 = arith.constant 0 : index
    %c0_6 = arith.constant 0 : index
    %5 = vector.load %arg5[%c0_5, %c0_6] : memref<32x96xbf16, #tpu.memory_space<vmem>>, vector<32x96xbf16>
    %cst = arith.constant dense<0.000000e+00> : vector<8x96xf32>
    %6 = tpu.matmul %4, %5, %cst {dimension_numbers = #tpu.dot_dimension_numbers<[1], [0], [0], [1], [0, 0, 1, 1], [], []>} : vector<8x32xbf16>, vector<32x96xbf16>, vector<8x96xf32> -> vector<8x96xf32>
    %c0_7 = arith.constant 0 : index
    %c0_8 = arith.constant 0 : index
    %7 = vector.load %arg6[%c0_7, %c0_8] : memref<1x96xf32, #tpu.memory_space<vmem>>, vector<1x96xf32>
    %8 = vector.broadcast %7 : vector<1x96xf32> to vector<8x96xf32>
    %9 = arith.addf %6, %8 : vector<8x96xf32>
    %10 = vector.extract_strided_slice %9 {offsets = [0, 0], sizes = [8, 32], strides = [1, 1]} : vector<8x96xf32> to vector<8x32xf32>
    %11 = vector.extract_strided_slice %9 {offsets = [0, 32], sizes = [8, 32], strides = [1, 1]} : vector<8x96xf32> to vector<8x32xf32>
    %12 = vector.extract_strided_slice %9 {offsets = [0, 64], sizes = [8, 32], strides = [1, 1]} : vector<8x96xf32> to vector<8x32xf32>
    %c0_9 = arith.constant 0 : index
    %c0_10 = arith.constant 0 : index
    %c0_11 = arith.constant 0 : index
    %13 = vector.load %arg3[%c0_9, %c0_10, %c0_11] : memref<1x8x8xi32, #tpu.memory_space<vmem>>, vector<1x8x8xi32>
    %14 = vector.shape_cast %13 : vector<1x8x8xi32> to vector<8x8xi32>
    %15 = vector.extract_strided_slice %10 {offsets = [0, 0], sizes = [8, 8], strides = [1, 1]} : vector<8x32xf32> to vector<8x8xf32>
    %cst_12 = arith.constant 0.353553385 : f32
    %16 = vector.broadcast %cst_12 : f32 to vector<8x8xf32>
    %17 = arith.mulf %15, %16 : vector<8x8xf32>
    %18 = arith.truncf %17 : vector<8x8xf32> to vector<8x8xbf16>
    %19 = vector.extract_strided_slice %11 {offsets = [0, 0], sizes = [8, 8], strides = [1, 1]} : vector<8x32xf32> to vector<8x8xf32>
    %20 = arith.truncf %19 : vector<8x8xf32> to vector<8x8xbf16>
    %21 = vector.extract_strided_slice %12 {offsets = [0, 0], sizes = [8, 8], strides = [1, 1]} : vector<8x32xf32> to vector<8x8xf32>
    %22 = arith.truncf %21 : vector<8x8xf32> to vector<8x8xbf16>
    %cst_13 = arith.constant dense<0.000000e+00> : vector<8x8xf32>
    %23 = tpu.matmul %18, %20, %cst_13 {dimension_numbers = #tpu.dot_dimension_numbers<[1], [1], [0], [0], [0, 0, 1, 0], [], []>} : vector<8x8xbf16>, vector<8x8xbf16>, vector<8x8xf32> -> vector<8x8xf32>
    %c0_i32 = arith.constant 0 : i32
    %24 = vector.broadcast %c0_i32 : i32 to vector<8x8xi32>
    %25 = arith.cmpi sgt, %14, %24 : vector<8x8xi32>
    %cst_14 = arith.constant -1.000000e+09 : f32
    %26 = vector.broadcast %cst_14 : f32 to vector<8x8xf32>
    %27 = arith.select %25, %23, %26 : vector<8x8xi1>, vector<8x8xf32>
    %cst_15 = arith.constant dense<0xFF800000> : vector<8xf32>
    %28 = vector.multi_reduction <maximumf>, %27, %cst_15 [1] : vector<8x8xf32> to vector<8xf32>
    %29 = vector.shape_cast %28 : vector<8xf32> to vector<8x1xf32>
    %30 = vector.broadcast %29 : vector<8x1xf32> to vector<8x8xf32>
    %31 = arith.subf %27, %30 : vector<8x8xf32>
    %32 = math.exp %31 : vector<8x8xf32>
    %cst_16 = arith.constant dense<0.000000e+00> : vector<8xf32>
    %33 = vector.multi_reduction <add>, %32, %cst_16 [1] : vector<8x8xf32> to vector<8xf32>
    %34 = vector.shape_cast %33 : vector<8xf32> to vector<8x1xf32>
    %35 = tpu.reciprocal %34 {approx = true} : vector<8x1xf32> -> vector<8x1xf32>
    %36 = vector.broadcast %35 : vector<8x1xf32> to vector<8x8xf32>
    %37 = arith.mulf %32, %36 : vector<8x8xf32>
    %38 = arith.truncf %37 : vector<8x8xf32> to vector<8x8xbf16>
    %cst_17 = arith.constant dense<0.000000e+00> : vector<8x8xf32>
    %39 = tpu.matmul %38, %22, %cst_17 {dimension_numbers = #tpu.dot_dimension_numbers<[1], [0], [0], [1], [0, 0, 1, 1], [], []>} : vector<8x8xbf16>, vector<8x8xbf16>, vector<8x8xf32> -> vector<8x8xf32>
    %40 = vector.extract_strided_slice %10 {offsets = [0, 8], sizes = [8, 8], strides = [1, 1]} : vector<8x32xf32> to vector<8x8xf32>
    %cst_18 = arith.constant 0.353553385 : f32
    %41 = vector.broadcast %cst_18 : f32 to vector<8x8xf32>
    %42 = arith.mulf %40, %41 : vector<8x8xf32>
    %43 = arith.truncf %42 : vector<8x8xf32> to vector<8x8xbf16>
    %44 = vector.extract_strided_slice %11 {offsets = [0, 8], sizes = [8, 8], strides = [1, 1]} : vector<8x32xf32> to vector<8x8xf32>
    %45 = arith.truncf %44 : vector<8x8xf32> to vector<8x8xbf16>
    %46 = vector.extract_strided_slice %12 {offsets = [0, 8], sizes = [8, 8], strides = [1, 1]} : vector<8x32xf32> to vector<8x8xf32>
    %47 = arith.truncf %46 : vector<8x8xf32> to vector<8x8xbf16>
    %cst_19 = arith.constant dense<0.000000e+00> : vector<8x8xf32>
    %48 = tpu.matmul %43, %45, %cst_19 {dimension_numbers = #tpu.dot_dimension_numbers<[1], [1], [0], [0], [0, 0, 1, 0], [], []>} : vector<8x8xbf16>, vector<8x8xbf16>, vector<8x8xf32> -> vector<8x8xf32>
    %c0_i32_20 = arith.constant 0 : i32
    %49 = vector.broadcast %c0_i32_20 : i32 to vector<8x8xi32>
    %50 = arith.cmpi sgt, %14, %49 : vector<8x8xi32>
    %cst_21 = arith.constant -1.000000e+09 : f32
    %51 = vector.broadcast %cst_21 : f32 to vector<8x8xf32>
    %52 = arith.select %50, %48, %51 : vector<8x8xi1>, vector<8x8xf32>
    %cst_22 = arith.constant dense<0xFF800000> : vector<8xf32>
    %53 = vector.multi_reduction <maximumf>, %52, %cst_22 [1] : vector<8x8xf32> to vector<8xf32>
    %54 = vector.shape_cast %53 : vector<8xf32> to vector<8x1xf32>
    %55 = vector.broadcast %54 : vector<8x1xf32> to vector<8x8xf32>
    %56 = arith.subf %52, %55 : vector<8x8xf32>
    %57 = math.exp %56 : vector<8x8xf32>
    %cst_23 = arith.constant dense<0.000000e+00> : vector<8xf32>
    %58 = vector.multi_reduction <add>, %57, %cst_23 [1] : vector<8x8xf32> to vector<8xf32>
    %59 = vector.shape_cast %58 : vector<8xf32> to vector<8x1xf32>
    %60 = tpu.reciprocal %59 {approx = true} : vector<8x1xf32> -> vector<8x1xf32>
    %61 = vector.broadcast %60 : vector<8x1xf32> to vector<8x8xf32>
    %62 = arith.mulf %57, %61 : vector<8x8xf32>
    %63 = arith.truncf %62 : vector<8x8xf32> to vector<8x8xbf16>
    %cst_24 = arith.constant dense<0.000000e+00> : vector<8x8xf32>
    %64 = tpu.matmul %63, %47, %cst_24 {dimension_numbers = #tpu.dot_dimension_numbers<[1], [0], [0], [1], [0, 0, 1, 1], [], []>} : vector<8x8xbf16>, vector<8x8xbf16>, vector<8x8xf32> -> vector<8x8xf32>
    %65 = vector.extract_strided_slice %10 {offsets = [0, 16], sizes = [8, 8], strides = [1, 1]} : vector<8x32xf32> to vector<8x8xf32>
    %cst_25 = arith.constant 0.353553385 : f32
    %66 = vector.broadcast %cst_25 : f32 to vector<8x8xf32>
    %67 = arith.mulf %65, %66 : vector<8x8xf32>
    %68 = arith.truncf %67 : vector<8x8xf32> to vector<8x8xbf16>
    %69 = vector.extract_strided_slice %11 {offsets = [0, 16], sizes = [8, 8], strides = [1, 1]} : vector<8x32xf32> to vector<8x8xf32>
    %70 = arith.truncf %69 : vector<8x8xf32> to vector<8x8xbf16>
    %71 = vector.extract_strided_slice %12 {offsets = [0, 16], sizes = [8, 8], strides = [1, 1]} : vector<8x32xf32> to vector<8x8xf32>
    %72 = arith.truncf %71 : vector<8x8xf32> to vector<8x8xbf16>
    %cst_26 = arith.constant dense<0.000000e+00> : vector<8x8xf32>
    %73 = tpu.matmul %68, %70, %cst_26 {dimension_numbers = #tpu.dot_dimension_numbers<[1], [1], [0], [0], [0, 0, 1, 0], [], []>} : vector<8x8xbf16>, vector<8x8xbf16>, vector<8x8xf32> -> vector<8x8xf32>
    %c0_i32_27 = arith.constant 0 : i32
    %74 = vector.broadcast %c0_i32_27 : i32 to vector<8x8xi32>
    %75 = arith.cmpi sgt, %14, %74 : vector<8x8xi32>
    %cst_28 = arith.constant -1.000000e+09 : f32
    %76 = vector.broadcast %cst_28 : f32 to vector<8x8xf32>
    %77 = arith.select %75, %73, %76 : vector<8x8xi1>, vector<8x8xf32>
    %cst_29 = arith.constant dense<0xFF800000> : vector<8xf32>
    %78 = vector.multi_reduction <maximumf>, %77, %cst_29 [1] : vector<8x8xf32> to vector<8xf32>
    %79 = vector.shape_cast %78 : vector<8xf32> to vector<8x1xf32>
    %80 = vector.broadcast %79 : vector<8x1xf32> to vector<8x8xf32>
    %81 = arith.subf %77, %80 : vector<8x8xf32>
    %82 = math.exp %81 : vector<8x8xf32>
    %cst_30 = arith.constant dense<0.000000e+00> : vector<8xf32>
    %83 = vector.multi_reduction <add>, %82, %cst_30 [1] : vector<8x8xf32> to vector<8xf32>
    %84 = vector.shape_cast %83 : vector<8xf32> to vector<8x1xf32>
    %85 = tpu.reciprocal %84 {approx = true} : vector<8x1xf32> -> vector<8x1xf32>
    %86 = vector.broadcast %85 : vector<8x1xf32> to vector<8x8xf32>
    %87 = arith.mulf %82, %86 : vector<8x8xf32>
    %88 = arith.truncf %87 : vector<8x8xf32> to vector<8x8xbf16>
    %cst_31 = arith.constant dense<0.000000e+00> : vector<8x8xf32>
    %89 = tpu.matmul %88, %72, %cst_31 {dimension_numbers = #tpu.dot_dimension_numbers<[1], [0], [0], [1], [0, 0, 1, 1], [], []>} : vector<8x8xbf16>, vector<8x8xbf16>, vector<8x8xf32> -> vector<8x8xf32>
    %90 = vector.extract_strided_slice %10 {offsets = [0, 24], sizes = [8, 8], strides = [1, 1]} : vector<8x32xf32> to vector<8x8xf32>
    %cst_32 = arith.constant 0.353553385 : f32
    %91 = vector.broadcast %cst_32 : f32 to vector<8x8xf32>
    %92 = arith.mulf %90, %91 : vector<8x8xf32>
    %93 = arith.truncf %92 : vector<8x8xf32> to vector<8x8xbf16>
    %94 = vector.extract_strided_slice %11 {offsets = [0, 24], sizes = [8, 8], strides = [1, 1]} : vector<8x32xf32> to vector<8x8xf32>
    %95 = arith.truncf %94 : vector<8x8xf32> to vector<8x8xbf16>
    %96 = vector.extract_strided_slice %12 {offsets = [0, 24], sizes = [8, 8], strides = [1, 1]} : vector<8x32xf32> to vector<8x8xf32>
    %97 = arith.truncf %96 : vector<8x8xf32> to vector<8x8xbf16>
    %cst_33 = arith.constant dense<0.000000e+00> : vector<8x8xf32>
    %98 = tpu.matmul %93, %95, %cst_33 {dimension_numbers = #tpu.dot_dimension_numbers<[1], [1], [0], [0], [0, 0, 1, 0], [], []>} : vector<8x8xbf16>, vector<8x8xbf16>, vector<8x8xf32> -> vector<8x8xf32>
    %c0_i32_34 = arith.constant 0 : i32
    %99 = vector.broadcast %c0_i32_34 : i32 to vector<8x8xi32>
    %100 = arith.cmpi sgt, %14, %99 : vector<8x8xi32>
    %cst_35 = arith.constant -1.000000e+09 : f32
    %101 = vector.broadcast %cst_35 : f32 to vector<8x8xf32>
    %102 = arith.select %100, %98, %101 : vector<8x8xi1>, vector<8x8xf32>
    %cst_36 = arith.constant dense<0xFF800000> : vector<8xf32>
    %103 = vector.multi_reduction <maximumf>, %102, %cst_36 [1] : vector<8x8xf32> to vector<8xf32>
    %104 = vector.shape_cast %103 : vector<8xf32> to vector<8x1xf32>
    %105 = vector.broadcast %104 : vector<8x1xf32> to vector<8x8xf32>
    %106 = arith.subf %102, %105 : vector<8x8xf32>
    %107 = math.exp %106 : vector<8x8xf32>
    %cst_37 = arith.constant dense<0.000000e+00> : vector<8xf32>
    %108 = vector.multi_reduction <add>, %107, %cst_37 [1] : vector<8x8xf32> to vector<8xf32>
    %109 = vector.shape_cast %108 : vector<8xf32> to vector<8x1xf32>
    %110 = tpu.reciprocal %109 {approx = true} : vector<8x1xf32> -> vector<8x1xf32>
    %111 = vector.broadcast %110 : vector<8x1xf32> to vector<8x8xf32>
    %112 = arith.mulf %107, %111 : vector<8x8xf32>
    %113 = arith.truncf %112 : vector<8x8xf32> to vector<8x8xbf16>
    %cst_38 = arith.constant dense<0.000000e+00> : vector<8x8xf32>
    %114 = tpu.matmul %113, %97, %cst_38 {dimension_numbers = #tpu.dot_dimension_numbers<[1], [0], [0], [1], [0, 0, 1, 1], [], []>} : vector<8x8xbf16>, vector<8x8xbf16>, vector<8x8xf32> -> vector<8x8xf32>
    %115 = tpu.concatenate %39, %64, %89, %114 in 1 : vector<8x8xf32>, vector<8x8xf32>, vector<8x8xf32>, vector<8x8xf32> -> vector<8x32xf32>
    %116 = arith.truncf %115 : vector<8x32xf32> to vector<8x32xbf16>
    %c0_39 = arith.constant 0 : index
    %c0_40 = arith.constant 0 : index
    %117 = vector.load %arg7[%c0_39, %c0_40] : memref<32x32xbf16, #tpu.memory_space<vmem>>, vector<32x32xbf16>
    %cst_41 = arith.constant dense<0.000000e+00> : vector<8x32xf32>
    %118 = tpu.matmul %116, %117, %cst_41 {dimension_numbers = #tpu.dot_dimension_numbers<[1], [0], [0], [1], [0, 0, 1, 1], [], []>} : vector<8x32xbf16>, vector<32x32xbf16>, vector<8x32xf32> -> vector<8x32xf32>
    %c0_42 = arith.constant 0 : index
    %c0_43 = arith.constant 0 : index
    %119 = vector.load %arg8[%c0_42, %c0_43] : memref<1x32xf32, #tpu.memory_space<vmem>>, vector<1x32xf32>
    %120 = vector.broadcast %119 : vector<1x32xf32> to vector<8x32xf32>
    %121 = arith.addf %118, %120 : vector<8x32xf32>
    %122 = arith.addf %1, %121 : vector<8x32xf32>
    %c0_44 = arith.constant 0 : index
    %c0_45 = arith.constant 0 : index
    %123 = vector.load %arg9[%c0_44, %c0_45] : memref<1x32xf32, #tpu.memory_space<vmem>>, vector<1x32xf32>
    %c0_46 = arith.constant 0 : index
    %c0_47 = arith.constant 0 : index
    %124 = vector.load %arg10[%c0_46, %c0_47] : memref<1x32xf32, #tpu.memory_space<vmem>>, vector<1x32xf32>
    %cst_48 = arith.constant dense<0.000000e+00> : vector<8xf32>
    %125 = vector.multi_reduction <add>, %122, %cst_48 [1] : vector<8x32xf32> to vector<8xf32>
    %126 = vector.shape_cast %125 : vector<8xf32> to vector<8x1xf32>
    %cst_49 = arith.constant 3.200000e+01 : f32
    %127 = vector.broadcast %cst_49 : f32 to vector<8x1xf32>
    %128 = arith.divf %126, %127 : vector<8x1xf32>
    %129 = vector.broadcast %128 : vector<8x1xf32> to vector<8x32xf32>
    %130 = arith.subf %122, %129 : vector<8x32xf32>
    %131 = arith.mulf %130, %130 : vector<8x32xf32>
    %cst_50 = arith.constant dense<0.000000e+00> : vector<8xf32>
    %132 = vector.multi_reduction <add>, %131, %cst_50 [1] : vector<8x32xf32> to vector<8xf32>
    %133 = vector.shape_cast %132 : vector<8xf32> to vector<8x1xf32>
    %cst_51 = arith.constant 3.200000e+01 : f32
    %134 = vector.broadcast %cst_51 : f32 to vector<8x1xf32>
    %135 = arith.divf %133, %134 : vector<8x1xf32>
    %136 = vector.broadcast %128 : vector<8x1xf32> to vector<8x32xf32>
    %137 = arith.subf %122, %136 : vector<8x32xf32>
    %cst_52 = arith.constant 9.99999974E-6 : f32
    %138 = vector.broadcast %cst_52 : f32 to vector<8x1xf32>
    %139 = arith.addf %135, %138 : vector<8x1xf32>
    %140 = math.rsqrt %139 : vector<8x1xf32>
    %141 = vector.broadcast %140 : vector<8x1xf32> to vector<8x32xf32>
    %142 = arith.mulf %137, %141 : vector<8x32xf32>
    %143 = vector.broadcast %123 : vector<1x32xf32> to vector<8x32xf32>
    %144 = arith.mulf %142, %143 : vector<8x32xf32>
    %145 = vector.broadcast %124 : vector<1x32xf32> to vector<8x32xf32>
    %146 = arith.addf %144, %145 : vector<8x32xf32>
    %147 = arith.truncf %146 : vector<8x32xf32> to vector<8x32xbf16>
    %c0_53 = arith.constant 0 : index
    %c0_54 = arith.constant 0 : index
    %148 = vector.load %arg11[%c0_53, %c0_54] : memref<32x32xbf16, #tpu.memory_space<vmem>>, vector<32x32xbf16>
    %cst_55 = arith.constant dense<0.000000e+00> : vector<8x32xf32>
    %149 = tpu.matmul %147, %148, %cst_55 {dimension_numbers = #tpu.dot_dimension_numbers<[1], [0], [0], [1], [0, 0, 1, 1], [], []>} : vector<8x32xbf16>, vector<32x32xbf16>, vector<8x32xf32> -> vector<8x32xf32>
    %c0_56 = arith.constant 0 : index
    %c0_57 = arith.constant 0 : index
    %150 = vector.load %arg12[%c0_56, %c0_57] : memref<1x32xf32, #tpu.memory_space<vmem>>, vector<1x32xf32>
    %151 = vector.broadcast %150 : vector<1x32xf32> to vector<8x32xf32>
    %152 = arith.addf %149, %151 : vector<8x32xf32>
    %153 = arith.truncf %3 : vector<8x32xf32> to vector<8x32xbf16>
    %c0_58 = arith.constant 0 : index
    %c0_59 = arith.constant 0 : index
    %154 = vector.load %arg13[%c0_58, %c0_59] : memref<32x64xbf16, #tpu.memory_space<vmem>>, vector<32x64xbf16>
    %cst_60 = arith.constant dense<0.000000e+00> : vector<8x64xf32>
    %155 = tpu.matmul %153, %154, %cst_60 {dimension_numbers = #tpu.dot_dimension_numbers<[1], [0], [0], [1], [0, 0, 1, 1], [], []>} : vector<8x32xbf16>, vector<32x64xbf16>, vector<8x64xf32> -> vector<8x64xf32>
    %c0_61 = arith.constant 0 : index
    %c0_62 = arith.constant 0 : index
    %156 = vector.load %arg14[%c0_61, %c0_62] : memref<1x64xf32, #tpu.memory_space<vmem>>, vector<1x64xf32>
    %157 = vector.broadcast %156 : vector<1x64xf32> to vector<8x64xf32>
    %158 = arith.addf %155, %157 : vector<8x64xf32>
    %159 = vector.extract_strided_slice %158 {offsets = [0, 0], sizes = [8, 32], strides = [1, 1]} : vector<8x64xf32> to vector<8x32xf32>
    %160 = vector.extract_strided_slice %158 {offsets = [0, 32], sizes = [8, 32], strides = [1, 1]} : vector<8x64xf32> to vector<8x32xf32>
    %c0_63 = arith.constant 0 : index
    %c0_64 = arith.constant 0 : index
    %c0_65 = arith.constant 0 : index
    %161 = vector.load %arg4[%c0_63, %c0_64, %c0_65] : memref<1x8x8xi32, #tpu.memory_space<vmem>>, vector<1x8x8xi32>
    %162 = vector.shape_cast %161 : vector<1x8x8xi32> to vector<8x8xi32>
    %163 = vector.extract_strided_slice %152 {offsets = [0, 0], sizes = [8, 8], strides = [1, 1]} : vector<8x32xf32> to vector<8x8xf32>
    %cst_66 = arith.constant 0.353553385 : f32
    %164 = vector.broadcast %cst_66 : f32 to vector<8x8xf32>
    %165 = arith.mulf %163, %164 : vector<8x8xf32>
    %166 = arith.truncf %165 : vector<8x8xf32> to vector<8x8xbf16>
    %167 = vector.extract_strided_slice %159 {offsets = [0, 0], sizes = [8, 8], strides = [1, 1]} : vector<8x32xf32> to vector<8x8xf32>
    %168 = arith.truncf %167 : vector<8x8xf32> to vector<8x8xbf16>
    %169 = vector.extract_strided_slice %160 {offsets = [0, 0], sizes = [8, 8], strides = [1, 1]} : vector<8x32xf32> to vector<8x8xf32>
    %170 = arith.truncf %169 : vector<8x8xf32> to vector<8x8xbf16>
    %cst_67 = arith.constant dense<0.000000e+00> : vector<8x8xf32>
    %171 = tpu.matmul %166, %168, %cst_67 {dimension_numbers = #tpu.dot_dimension_numbers<[1], [1], [0], [0], [0, 0, 1, 0], [], []>} : vector<8x8xbf16>, vector<8x8xbf16>, vector<8x8xf32> -> vector<8x8xf32>
    %c0_i32_68 = arith.constant 0 : i32
    %172 = vector.broadcast %c0_i32_68 : i32 to vector<8x8xi32>
    %173 = arith.cmpi sgt, %162, %172 : vector<8x8xi32>
    %cst_69 = arith.constant -1.000000e+09 : f32
    %174 = vector.broadcast %cst_69 : f32 to vector<8x8xf32>
    %175 = arith.select %173, %171, %174 : vector<8x8xi1>, vector<8x8xf32>
    %cst_70 = arith.constant dense<0xFF800000> : vector<8xf32>
    %176 = vector.multi_reduction <maximumf>, %175, %cst_70 [1] : vector<8x8xf32> to vector<8xf32>
    %177 = vector.shape_cast %176 : vector<8xf32> to vector<8x1xf32>
    %178 = vector.broadcast %177 : vector<8x1xf32> to vector<8x8xf32>
    %179 = arith.subf %175, %178 : vector<8x8xf32>
    %180 = math.exp %179 : vector<8x8xf32>
    %cst_71 = arith.constant dense<0.000000e+00> : vector<8xf32>
    %181 = vector.multi_reduction <add>, %180, %cst_71 [1] : vector<8x8xf32> to vector<8xf32>
    %182 = vector.shape_cast %181 : vector<8xf32> to vector<8x1xf32>
    %183 = tpu.reciprocal %182 {approx = true} : vector<8x1xf32> -> vector<8x1xf32>
    %184 = vector.broadcast %183 : vector<8x1xf32> to vector<8x8xf32>
    %185 = arith.mulf %180, %184 : vector<8x8xf32>
    %186 = arith.truncf %185 : vector<8x8xf32> to vector<8x8xbf16>
    %cst_72 = arith.constant dense<0.000000e+00> : vector<8x8xf32>
    %187 = tpu.matmul %186, %170, %cst_72 {dimension_numbers = #tpu.dot_dimension_numbers<[1], [0], [0], [1], [0, 0, 1, 1], [], []>} : vector<8x8xbf16>, vector<8x8xbf16>, vector<8x8xf32> -> vector<8x8xf32>
    %188 = vector.extract_strided_slice %152 {offsets = [0, 8], sizes = [8, 8], strides = [1, 1]} : vector<8x32xf32> to vector<8x8xf32>
    %cst_73 = arith.constant 0.353553385 : f32
    %189 = vector.broadcast %cst_73 : f32 to vector<8x8xf32>
    %190 = arith.mulf %188, %189 : vector<8x8xf32>
    %191 = arith.truncf %190 : vector<8x8xf32> to vector<8x8xbf16>
    %192 = vector.extract_strided_slice %159 {offsets = [0, 8], sizes = [8, 8], strides = [1, 1]} : vector<8x32xf32> to vector<8x8xf32>
    %193 = arith.truncf %192 : vector<8x8xf32> to vector<8x8xbf16>
    %194 = vector.extract_strided_slice %160 {offsets = [0, 8], sizes = [8, 8], strides = [1, 1]} : vector<8x32xf32> to vector<8x8xf32>
    %195 = arith.truncf %194 : vector<8x8xf32> to vector<8x8xbf16>
    %cst_74 = arith.constant dense<0.000000e+00> : vector<8x8xf32>
    %196 = tpu.matmul %191, %193, %cst_74 {dimension_numbers = #tpu.dot_dimension_numbers<[1], [1], [0], [0], [0, 0, 1, 0], [], []>} : vector<8x8xbf16>, vector<8x8xbf16>, vector<8x8xf32> -> vector<8x8xf32>
    %c0_i32_75 = arith.constant 0 : i32
    %197 = vector.broadcast %c0_i32_75 : i32 to vector<8x8xi32>
    %198 = arith.cmpi sgt, %162, %197 : vector<8x8xi32>
    %cst_76 = arith.constant -1.000000e+09 : f32
    %199 = vector.broadcast %cst_76 : f32 to vector<8x8xf32>
    %200 = arith.select %198, %196, %199 : vector<8x8xi1>, vector<8x8xf32>
    %cst_77 = arith.constant dense<0xFF800000> : vector<8xf32>
    %201 = vector.multi_reduction <maximumf>, %200, %cst_77 [1] : vector<8x8xf32> to vector<8xf32>
    %202 = vector.shape_cast %201 : vector<8xf32> to vector<8x1xf32>
    %203 = vector.broadcast %202 : vector<8x1xf32> to vector<8x8xf32>
    %204 = arith.subf %200, %203 : vector<8x8xf32>
    %205 = math.exp %204 : vector<8x8xf32>
    %cst_78 = arith.constant dense<0.000000e+00> : vector<8xf32>
    %206 = vector.multi_reduction <add>, %205, %cst_78 [1] : vector<8x8xf32> to vector<8xf32>
    %207 = vector.shape_cast %206 : vector<8xf32> to vector<8x1xf32>
    %208 = tpu.reciprocal %207 {approx = true} : vector<8x1xf32> -> vector<8x1xf32>
    %209 = vector.broadcast %208 : vector<8x1xf32> to vector<8x8xf32>
    %210 = arith.mulf %205, %209 : vector<8x8xf32>
    %211 = arith.truncf %210 : vector<8x8xf32> to vector<8x8xbf16>
    %cst_79 = arith.constant dense<0.000000e+00> : vector<8x8xf32>
    %212 = tpu.matmul %211, %195, %cst_79 {dimension_numbers = #tpu.dot_dimension_numbers<[1], [0], [0], [1], [0, 0, 1, 1], [], []>} : vector<8x8xbf16>, vector<8x8xbf16>, vector<8x8xf32> -> vector<8x8xf32>
    %213 = vector.extract_strided_slice %152 {offsets = [0, 16], sizes = [8, 8], strides = [1, 1]} : vector<8x32xf32> to vector<8x8xf32>
    %cst_80 = arith.constant 0.353553385 : f32
    %214 = vector.broadcast %cst_80 : f32 to vector<8x8xf32>
    %215 = arith.mulf %213, %214 : vector<8x8xf32>
    %216 = arith.truncf %215 : vector<8x8xf32> to vector<8x8xbf16>
    %217 = vector.extract_strided_slice %159 {offsets = [0, 16], sizes = [8, 8], strides = [1, 1]} : vector<8x32xf32> to vector<8x8xf32>
    %218 = arith.truncf %217 : vector<8x8xf32> to vector<8x8xbf16>
    %219 = vector.extract_strided_slice %160 {offsets = [0, 16], sizes = [8, 8], strides = [1, 1]} : vector<8x32xf32> to vector<8x8xf32>
    %220 = arith.truncf %219 : vector<8x8xf32> to vector<8x8xbf16>
    %cst_81 = arith.constant dense<0.000000e+00> : vector<8x8xf32>
    %221 = tpu.matmul %216, %218, %cst_81 {dimension_numbers = #tpu.dot_dimension_numbers<[1], [1], [0], [0], [0, 0, 1, 0], [], []>} : vector<8x8xbf16>, vector<8x8xbf16>, vector<8x8xf32> -> vector<8x8xf32>
    %c0_i32_82 = arith.constant 0 : i32
    %222 = vector.broadcast %c0_i32_82 : i32 to vector<8x8xi32>
    %223 = arith.cmpi sgt, %162, %222 : vector<8x8xi32>
    %cst_83 = arith.constant -1.000000e+09 : f32
    %224 = vector.broadcast %cst_83 : f32 to vector<8x8xf32>
    %225 = arith.select %223, %221, %224 : vector<8x8xi1>, vector<8x8xf32>
    %cst_84 = arith.constant dense<0xFF800000> : vector<8xf32>
    %226 = vector.multi_reduction <maximumf>, %225, %cst_84 [1] : vector<8x8xf32> to vector<8xf32>
    %227 = vector.shape_cast %226 : vector<8xf32> to vector<8x1xf32>
    %228 = vector.broadcast %227 : vector<8x1xf32> to vector<8x8xf32>
    %229 = arith.subf %225, %228 : vector<8x8xf32>
    %230 = math.exp %229 : vector<8x8xf32>
    %cst_85 = arith.constant dense<0.000000e+00> : vector<8xf32>
    %231 = vector.multi_reduction <add>, %230, %cst_85 [1] : vector<8x8xf32> to vector<8xf32>
    %232 = vector.shape_cast %231 : vector<8xf32> to vector<8x1xf32>
    %233 = tpu.reciprocal %232 {approx = true} : vector<8x1xf32> -> vector<8x1xf32>
    %234 = vector.broadcast %233 : vector<8x1xf32> to vector<8x8xf32>
    %235 = arith.mulf %230, %234 : vector<8x8xf32>
    %236 = arith.truncf %235 : vector<8x8xf32> to vector<8x8xbf16>
    %cst_86 = arith.constant dense<0.000000e+00> : vector<8x8xf32>
    %237 = tpu.matmul %236, %220, %cst_86 {dimension_numbers = #tpu.dot_dimension_numbers<[1], [0], [0], [1], [0, 0, 1, 1], [], []>} : vector<8x8xbf16>, vector<8x8xbf16>, vector<8x8xf32> -> vector<8x8xf32>
    %238 = vector.extract_strided_slice %152 {offsets = [0, 24], sizes = [8, 8], strides = [1, 1]} : vector<8x32xf32> to vector<8x8xf32>
    %cst_87 = arith.constant 0.353553385 : f32
    %239 = vector.broadcast %cst_87 : f32 to vector<8x8xf32>
    %240 = arith.mulf %238, %239 : vector<8x8xf32>
    %241 = arith.truncf %240 : vector<8x8xf32> to vector<8x8xbf16>
    %242 = vector.extract_strided_slice %159 {offsets = [0, 24], sizes = [8, 8], strides = [1, 1]} : vector<8x32xf32> to vector<8x8xf32>
    %243 = arith.truncf %242 : vector<8x8xf32> to vector<8x8xbf16>
    %244 = vector.extract_strided_slice %160 {offsets = [0, 24], sizes = [8, 8], strides = [1, 1]} : vector<8x32xf32> to vector<8x8xf32>
    %245 = arith.truncf %244 : vector<8x8xf32> to vector<8x8xbf16>
    %cst_88 = arith.constant dense<0.000000e+00> : vector<8x8xf32>
    %246 = tpu.matmul %241, %243, %cst_88 {dimension_numbers = #tpu.dot_dimension_numbers<[1], [1], [0], [0], [0, 0, 1, 0], [], []>} : vector<8x8xbf16>, vector<8x8xbf16>, vector<8x8xf32> -> vector<8x8xf32>
    %c0_i32_89 = arith.constant 0 : i32
    %247 = vector.broadcast %c0_i32_89 : i32 to vector<8x8xi32>
    %248 = arith.cmpi sgt, %162, %247 : vector<8x8xi32>
    %cst_90 = arith.constant -1.000000e+09 : f32
    %249 = vector.broadcast %cst_90 : f32 to vector<8x8xf32>
    %250 = arith.select %248, %246, %249 : vector<8x8xi1>, vector<8x8xf32>
    %cst_91 = arith.constant dense<0xFF800000> : vector<8xf32>
    %251 = vector.multi_reduction <maximumf>, %250, %cst_91 [1] : vector<8x8xf32> to vector<8xf32>
    %252 = vector.shape_cast %251 : vector<8xf32> to vector<8x1xf32>
    %253 = vector.broadcast %252 : vector<8x1xf32> to vector<8x8xf32>
    %254 = arith.subf %250, %253 : vector<8x8xf32>
    %255 = math.exp %254 : vector<8x8xf32>
    %cst_92 = arith.constant dense<0.000000e+00> : vector<8xf32>
    %256 = vector.multi_reduction <add>, %255, %cst_92 [1] : vector<8x8xf32> to vector<8xf32>
    %257 = vector.shape_cast %256 : vector<8xf32> to vector<8x1xf32>
    %258 = tpu.reciprocal %257 {approx = true} : vector<8x1xf32> -> vector<8x1xf32>
    %259 = vector.broadcast %258 : vector<8x1xf32> to vector<8x8xf32>
    %260 = arith.mulf %255, %259 : vector<8x8xf32>
    %261 = arith.truncf %260 : vector<8x8xf32> to vector<8x8xbf16>
    %cst_93 = arith.constant dense<0.000000e+00> : vector<8x8xf32>
    %262 = tpu.matmul %261, %245, %cst_93 {dimension_numbers = #tpu.dot_dimension_numbers<[1], [0], [0], [1], [0, 0, 1, 1], [], []>} : vector<8x8xbf16>, vector<8x8xbf16>, vector<8x8xf32> -> vector<8x8xf32>
    %263 = tpu.concatenate %187, %212, %237, %262 in 1 : vector<8x8xf32>, vector<8x8xf32>, vector<8x8xf32>, vector<8x8xf32> -> vector<8x32xf32>
    %264 = arith.truncf %263 : vector<8x32xf32> to vector<8x32xbf16>
    %c0_94 = arith.constant 0 : index
    %c0_95 = arith.constant 0 : index
    %265 = vector.load %arg15[%c0_94, %c0_95] : memref<32x32xbf16, #tpu.memory_space<vmem>>, vector<32x32xbf16>
    %cst_96 = arith.constant dense<0.000000e+00> : vector<8x32xf32>
    %266 = tpu.matmul %264, %265, %cst_96 {dimension_numbers = #tpu.dot_dimension_numbers<[1], [0], [0], [1], [0, 0, 1, 1], [], []>} : vector<8x32xbf16>, vector<32x32xbf16>, vector<8x32xf32> -> vector<8x32xf32>
    %c0_97 = arith.constant 0 : index
    %c0_98 = arith.constant 0 : index
    %267 = vector.load %arg16[%c0_97, %c0_98] : memref<1x32xf32, #tpu.memory_space<vmem>>, vector<1x32xf32>
    %268 = vector.broadcast %267 : vector<1x32xf32> to vector<8x32xf32>
    %269 = arith.addf %266, %268 : vector<8x32xf32>
    %270 = arith.addf %146, %269 : vector<8x32xf32>
    %c0_99 = arith.constant 0 : index
    %c0_100 = arith.constant 0 : index
    %271 = vector.load %arg17[%c0_99, %c0_100] : memref<1x32xf32, #tpu.memory_space<vmem>>, vector<1x32xf32>
    %c0_101 = arith.constant 0 : index
    %c0_102 = arith.constant 0 : index
    %272 = vector.load %arg18[%c0_101, %c0_102] : memref<1x32xf32, #tpu.memory_space<vmem>>, vector<1x32xf32>
    %cst_103 = arith.constant dense<0.000000e+00> : vector<8xf32>
    %273 = vector.multi_reduction <add>, %270, %cst_103 [1] : vector<8x32xf32> to vector<8xf32>
    %274 = vector.shape_cast %273 : vector<8xf32> to vector<8x1xf32>
    %cst_104 = arith.constant 3.200000e+01 : f32
    %275 = vector.broadcast %cst_104 : f32 to vector<8x1xf32>
    %276 = arith.divf %274, %275 : vector<8x1xf32>
    %277 = vector.broadcast %276 : vector<8x1xf32> to vector<8x32xf32>
    %278 = arith.subf %270, %277 : vector<8x32xf32>
    %279 = arith.mulf %278, %278 : vector<8x32xf32>
    %cst_105 = arith.constant dense<0.000000e+00> : vector<8xf32>
    %280 = vector.multi_reduction <add>, %279, %cst_105 [1] : vector<8x32xf32> to vector<8xf32>
    %281 = vector.shape_cast %280 : vector<8xf32> to vector<8x1xf32>
    %cst_106 = arith.constant 3.200000e+01 : f32
    %282 = vector.broadcast %cst_106 : f32 to vector<8x1xf32>
    %283 = arith.divf %281, %282 : vector<8x1xf32>
    %284 = vector.broadcast %276 : vector<8x1xf32> to vector<8x32xf32>
    %285 = arith.subf %270, %284 : vector<8x32xf32>
    %cst_107 = arith.constant 9.99999974E-6 : f32
    %286 = vector.broadcast %cst_107 : f32 to vector<8x1xf32>
    %287 = arith.addf %283, %286 : vector<8x1xf32>
    %288 = math.rsqrt %287 : vector<8x1xf32>
    %289 = vector.broadcast %288 : vector<8x1xf32> to vector<8x32xf32>
    %290 = arith.mulf %285, %289 : vector<8x32xf32>
    %291 = vector.broadcast %271 : vector<1x32xf32> to vector<8x32xf32>
    %292 = arith.mulf %290, %291 : vector<8x32xf32>
    %293 = vector.broadcast %272 : vector<1x32xf32> to vector<8x32xf32>
    %294 = arith.addf %292, %293 : vector<8x32xf32>
    %295 = arith.truncf %294 : vector<8x32xf32> to vector<8x32xbf16>
    %c0_108 = arith.constant 0 : index
    %c0_109 = arith.constant 0 : index
    %296 = vector.load %arg19[%c0_108, %c0_109] : memref<32x64xbf16, #tpu.memory_space<vmem>>, vector<32x64xbf16>
    %cst_110 = arith.constant dense<0.000000e+00> : vector<8x64xf32>
    %297 = tpu.matmul %295, %296, %cst_110 {dimension_numbers = #tpu.dot_dimension_numbers<[1], [0], [0], [1], [0, 0, 1, 1], [], []>} : vector<8x32xbf16>, vector<32x64xbf16>, vector<8x64xf32> -> vector<8x64xf32>
    %c0_111 = arith.constant 0 : index
    %c0_112 = arith.constant 0 : index
    %298 = vector.load %arg20[%c0_111, %c0_112] : memref<1x64xf32, #tpu.memory_space<vmem>>, vector<1x64xf32>
    %299 = vector.broadcast %298 : vector<1x64xf32> to vector<8x64xf32>
    %300 = arith.addf %297, %299 : vector<8x64xf32>
    %cst_113 = arith.constant 0.000000e+00 : f32
    %301 = vector.broadcast %cst_113 : f32 to vector<8x64xf32>
    %302 = arith.maximumf %300, %301 : vector<8x64xf32>
    %303 = arith.truncf %302 : vector<8x64xf32> to vector<8x64xbf16>
    %c0_114 = arith.constant 0 : index
    %c0_115 = arith.constant 0 : index
    %304 = vector.load %arg21[%c0_114, %c0_115] : memref<64x32xbf16, #tpu.memory_space<vmem>>, vector<64x32xbf16>
    %cst_116 = arith.constant dense<0.000000e+00> : vector<8x32xf32>
    %305 = tpu.matmul %303, %304, %cst_116 {dimension_numbers = #tpu.dot_dimension_numbers<[1], [0], [0], [1], [0, 0, 1, 1], [], []>} : vector<8x64xbf16>, vector<64x32xbf16>, vector<8x32xf32> -> vector<8x32xf32>
    %c0_117 = arith.constant 0 : index
    %c0_118 = arith.constant 0 : index
    %306 = vector.load %arg22[%c0_117, %c0_118] : memref<1x32xf32, #tpu.memory_space<vmem>>, vector<1x32xf32>
    %307 = vector.broadcast %306 : vector<1x32xf32> to vector<8x32xf32>
    %308 = arith.addf %305, %307 : vector<8x32xf32>
    %309 = arith.addf %294, %308 : vector<8x32xf32>
    %c0_119 = arith.constant 0 : index
    %c0_120 = arith.constant 0 : index
    %310 = vector.load %arg23[%c0_119, %c0_120] : memref<1x32xf32, #tpu.memory_space<vmem>>, vector<1x32xf32>
    %c0_121 = arith.constant 0 : index
    %c0_122 = arith.constant 0 : index
    %311 = vector.load %arg24[%c0_121, %c0_122] : memref<1x32xf32, #tpu.memory_space<vmem>>, vector<1x32xf32>
    %cst_123 = arith.constant dense<0.000000e+00> : vector<8xf32>
    %312 = vector.multi_reduction <add>, %309, %cst_123 [1] : vector<8x32xf32> to vector<8xf32>
    %313 = vector.shape_cast %312 : vector<8xf32> to vector<8x1xf32>
    %cst_124 = arith.constant 3.200000e+01 : f32
    %314 = vector.broadcast %cst_124 : f32 to vector<8x1xf32>
    %315 = arith.divf %313, %314 : vector<8x1xf32>
    %316 = vector.broadcast %315 : vector<8x1xf32> to vector<8x32xf32>
    %317 = arith.subf %309, %316 : vector<8x32xf32>
    %318 = arith.mulf %317, %317 : vector<8x32xf32>
    %cst_125 = arith.constant dense<0.000000e+00> : vector<8xf32>
    %319 = vector.multi_reduction <add>, %318, %cst_125 [1] : vector<8x32xf32> to vector<8xf32>
    %320 = vector.shape_cast %319 : vector<8xf32> to vector<8x1xf32>
    %cst_126 = arith.constant 3.200000e+01 : f32
    %321 = vector.broadcast %cst_126 : f32 to vector<8x1xf32>
    %322 = arith.divf %320, %321 : vector<8x1xf32>
    %323 = vector.broadcast %315 : vector<8x1xf32> to vector<8x32xf32>
    %324 = arith.subf %309, %323 : vector<8x32xf32>
    %cst_127 = arith.constant 9.99999974E-6 : f32
    %325 = vector.broadcast %cst_127 : f32 to vector<8x1xf32>
    %326 = arith.addf %322, %325 : vector<8x1xf32>
    %327 = math.rsqrt %326 : vector<8x1xf32>
    %328 = vector.broadcast %327 : vector<8x1xf32> to vector<8x32xf32>
    %329 = arith.mulf %324, %328 : vector<8x32xf32>
    %330 = vector.broadcast %310 : vector<1x32xf32> to vector<8x32xf32>
    %331 = arith.mulf %329, %330 : vector<8x32xf32>
    %332 = vector.broadcast %311 : vector<1x32xf32> to vector<8x32xf32>
    %333 = arith.addf %331, %332 : vector<8x32xf32>
    %c0_128 = arith.constant 0 : index
    %c0_129 = arith.constant 0 : index
    %c0_130 = arith.constant 0 : index
    %334 = vector.load %arg25[%c0_128, %c0_129, %c0_130] : memref<1x8x32xf32, #tpu.memory_space<vmem>>, vector<1x8x32xf32>
    %335 = vector.shape_cast %334 : vector<1x8x32xf32> to vector<8x32xf32>
    %336 = vector.shape_cast %333 : vector<8x32xf32> to vector<1x8x32xf32>
    tpu.vector_store %arg25[%c0_128, %c0_129, %c0_130], %336 {strides = array<i32>} : memref<1x8x32xf32, #tpu.memory_space<vmem>>, vector<1x8x32xf32>,
    return
  }
  func.func @transform_0(%arg0: i32) -> (i32, i32, i32) {
    %c0_i32 = arith.constant 0 : i32
    %c0_i32_0 = arith.constant 0 : i32
    %c0_i32_1 = arith.constant 0 : i32
    return %arg0, %c0_i32, %c0_i32_0 : i32, i32, i32
  }
  func.func @transform_1(%arg0: i32) -> (i32, i32, i32) {
    %c0_i32 = arith.constant 0 : i32
    %c0_i32_0 = arith.constant 0 : i32
    %c0_i32_1 = arith.constant 0 : i32
    return %arg0, %c0_i32, %c0_i32_0 : i32, i32, i32
  }
  func.func @transform_2(%arg0: i32) -> (i32, i32, i32) {
    %c0_i32 = arith.constant 0 : i32
    %c0_i32_0 = arith.constant 0 : i32
    %c0_i32_1 = arith.constant 0 : i32
    return %arg0, %c0_i32, %c0_i32_0 : i32, i32, i32
  }
  func.func @transform_3(%arg0: i32) -> (i32, i32, i32) {
    %c0_i32 = arith.constant 0 : i32
    %c0_i32_0 = arith.constant 0 : i32
    %c0_i32_1 = arith.constant 0 : i32
    return %arg0, %c0_i32, %c0_i32_0 : i32, i32, i32
  }
  func.func @transform_4(%arg0: i32) -> (i32, i32) {
    %c0_i32 = arith.constant 0 : i32
    %c0_i32_0 = arith.constant 0 : i32
    %c0_i32_1 = arith.constant 0 : i32
    return %c0_i32, %c0_i32_0 : i32, i32
  }
  func.func @transform_5(%arg0: i32) -> (i32, i32) {
    %c0_i32 = arith.constant 0 : i32
    %c0_i32_0 = arith.constant 0 : i32
    %c0_i32_1 = arith.constant 0 : i32
    return %c0_i32, %c0_i32_0 : i32, i32
  }
  func.func @transform_6(%arg0: i32) -> (i32, i32) {
    %c0_i32 = arith.constant 0 : i32
    %c0_i32_0 = arith.constant 0 : i32
    %c0_i32_1 = arith.constant 0 : i32
    return %c0_i32, %c0_i32_0 : i32, i32
  }
  func.func @transform_7(%arg0: i32) -> (i32, i32) {
    %c0_i32 = arith.constant 0 : i32
    %c0_i32_0 = arith.constant 0 : i32
    %c0_i32_1 = arith.constant 0 : i32
    return %c0_i32, %c0_i32_0 : i32, i32
  }
  func.func @transform_8(%arg0: i32) -> (i32, i32) {
    %c0_i32 = arith.constant 0 : i32
    %c0_i32_0 = arith.constant 0 : i32
    %c0_i32_1 = arith.constant 0 : i32
    return %c0_i32, %c0_i32_0 : i32, i32
  }
  func.func @transform_9(%arg0: i32) -> (i32, i32) {
    %c0_i32 = arith.constant 0 : i32
    %c0_i32_0 = arith.constant 0 : i32
    %c0_i32_1 = arith.constant 0 : i32
    return %c0_i32, %c0_i32_0 : i32, i32
  }
  func.func @transform_10(%arg0: i32) -> (i32, i32) {
    %c0_i32 = arith.constant 0 : i32
    %c0_i32_0 = arith.constant 0 : i32
    %c0_i32_1 = arith.constant 0 : i32
    return %c0_i32, %c0_i32_0 : i32, i32
  }
  func.func @transform_11(%arg0: i32) -> (i32, i32) {
    %c0_i32 = arith.constant 0 : i32
    %c0_i32_0 = arith.constant 0 : i32
    %c0_i32_1 = arith.constant 0 : i32
    return %c0_i32, %c0_i32_0 : i32, i32
  }
  func.func @transform_12(%arg0: i32) -> (i32, i32) {
    %c0_i32 = arith.constant 0 : i32
    %c0_i32_0 = arith.constant 0 : i32
    %c0_i32_1 = arith.constant 0 : i32
    return %c0_i32, %c0_i32_0 : i32, i32
  }
  func.func @transform_13(%arg0: i32) -> (i32, i32) {
    %c0_i32 = arith.constant 0 : i32
    %c0_i32_0 = arith.constant 0 : i32
    %c0_i32_1 = arith.constant 0 : i32
    return %c0_i32, %c0_i32_0 : i32, i32
  }
  func.func @transform_14(%arg0: i32) -> (i32, i32) {
    %c0_i32 = arith.constant 0 : i32
    %c0_i32_0 = arith.constant 0 : i32
    %c0_i32_1 = arith.constant 0 : i32
    return %c0_i32, %c0_i32_0 : i32, i32
  }
  func.func @transform_15(%arg0: i32) -> (i32, i32) {
    %c0_i32 = arith.constant 0 : i32
    %c0_i32_0 = arith.constant 0 : i32
    %c0_i32_1 = arith.constant 0 : i32
    return %c0_i32, %c0_i32_0 : i32, i32
  }
  func.func @transform_16(%arg0: i32) -> (i32, i32) {
    %c0_i32 = arith.constant 0 : i32
    %c0_i32_0 = arith.constant 0 : i32
    %c0_i32_1 = arith.constant 0 : i32
    return %c0_i32, %c0_i32_0 : i32, i32
  }
  func.func @transform_17(%arg0: i32) -> (i32, i32) {
    %c0_i32 = arith.constant 0 : i32
    %c0_i32_0 = arith.constant 0 : i32
    %c0_i32_1 = arith.constant 0 : i32
    return %c0_i32, %c0_i32_0 : i32, i32
  }
  func.func @transform_18(%arg0: i32) -> (i32, i32) {
    %c0_i32 = arith.constant 0 : i32
    %c0_i32_0 = arith.constant 0 : i32
    %c0_i32_1 = arith.constant 0 : i32
    return %c0_i32, %c0_i32_0 : i32, i32
  }
  func.func @transform_19(%arg0: i32) -> (i32, i32) {
    %c0_i32 = arith.constant 0 : i32
    %c0_i32_0 = arith.constant 0 : i32
    %c0_i32_1 = arith.constant 0 : i32
    return %c0_i32, %c0_i32_0 : i32, i32
  }
  func.func @transform_20(%arg0: i32) -> (i32, i32) {
    %c0_i32 = arith.constant 0 : i32
    %c0_i32_0 = arith.constant 0 : i32
    %c0_i32_1 = arith.constant 0 : i32
    return %c0_i32, %c0_i32_0 : i32, i32
  }
  func.func @transform_21(%arg0: i32) -> (i32, i32) {
    %c0_i32 = arith.constant 0 : i32
    %c0_i32_0 = arith.constant 0 : i32
    %c0_i32_1 = arith.constant 0 : i32
    return %c0_i32, %c0_i32_0 : i32, i32
  }
  func.func @transform_22(%arg0: i32) -> (i32, i32) {
    %c0_i32 = arith.constant 0 : i32
    %c0_i32_0 = arith.constant 0 : i32
    %c0_i32_1 = arith.constant 0 : i32
    return %c0_i32, %c0_i32_0 : i32, i32
  }
  func.func @transform_23(%arg0: i32) -> (i32, i32) {
    %c0_i32 = arith.constant 0 : i32
    %c0_i32_0 = arith.constant 0 : i32
    %c0_i32_1 = arith.constant 0 : i32
    return %c0_i32, %c0_i32_0 : i32, i32
  }
  func.func @transform_24(%arg0: i32) -> (i32, i32, i32) {
    %c0_i32 = arith.constant 0 : i32
    %c0_i32_0 = arith.constant 0 : i32
    %c0_i32_1 = arith.constant 0 : i32
    return %arg0, %c0_i32, %c0_i32_0 : i32, i32, i32
  }
}

</mosaic_0001>

<bundles_post_ra>
// kernel: transformer_forward.9
= control target key start
LH: loop header
LB: loop body
LE: loop exit
PB: predicated region body
PF: predicated region fallthrough
CT: control target
= control target key end

     0   :  { %s487_s12 = smov 0   ;;  %s489_s13 = smov 0   ;;  %s529_s0 = inlined_call_operand.vmem [shape: f32[16,32], index: 0, kind: input, shape index: {}]   ;;  %s530_s1 = inlined_call_operand.vmem [shape: bf16[32,128], index: 1, kind: input, shape index: {}]   ;;  %s531_s2 = inlined_call_operand.vmem [shape: f32[1,128], index: 2, kind: input, shape index: {}]   ;;  %s532_s3 = inlined_call_operand.vmem [shape: f32[16,128], index: 3, kind: output, shape index: {}]  }
   0x1   :  { %s491_s14 = smov 0  }
   0x2 LB: > { %s25_s15 = sadd.s32 1, %s459_s13  ;;  %p393_p0 = scmp.ge.s32.totalorder %s463_s14, 1  ;;  %s463_s14 = sphi %s491_s14, %s13_s14   ;;  %s459_s13 = sphi %s489_s13, %s534_s13   ;;  %s455_s12 = sphi %s487_s12, %s533_s12  }
   0x3   : > { %p27_p1 = scmp.ge.s32.totalorder %s25_s15, 2  ;;  %p167_p2 = scmp.lt.s32.totalorder %s463_s14, 3 }
   0x5   : > { %s536_s15 = smov (%p27_p1, %s25_s15), 0  ;;  %p168_p3 = pnand %p393_p0, %p167_p2 }
   0x6   : > { %v439_v0 = vld [vmem:[%s530_s1] sm:$0xff] (!%p168_p3)   ;;  %v465_v1 = vmov (!%p168_p3), 0.0   ;;  %v440_v2 = vld [vmem:[%s530_s1 + $0x8] sm:$0xff] (!%p168_p3)   ;;  %vm466_vm0 = vmmov (!%p168_p3), 0   ;;  %p199_p4 = scmp.lt.s32.totalorder (!%p168_p3), %s455_s12, 1  ;;  %vm243_vm1 = vcmask (!%p168_p3), 261120  }
   0x7   : > { %171 = sbr.rel (%p168_p3) target bundleno = 235 (0xeb), region = 32  ;;  %405 = vmatprep.subr.bf16.mxu0 (!%p168_p3), %v465_v1  ;;  %409 = vmatprep.mubr.msk.bf16.mxu0 (!%p168_p3), %vm466_vm0, %v465_v1  ;;  %v396_v5 = vld [vmem:[%s531_s2] ss:$0 sm:$0xff] (!%p168_p3) }
   0x8   : > { %406 = vmatpush3.bf16.msra.mxu0 (!%p168_p3), %v439_v0 }
   0x9   : > { %407 = vmatprep.subr.bf16.mxu0 (!%p168_p3), %v465_v1 }
   0xc   : > { %408 = vmatpush3.bf16.msra.mxu0 (!%p168_p3), %v440_v2 }
   0xe   : > { %s538_s12 = smov (!%p199_p4, %s455_s12), 1 }
   0xf   : > { %s394_s20 = sshll.u32 %s538_s12, 3 }
  0x10   : > { %s202_s23 = scalar_lea.vmem %s529_s0, %s394_s20  ;;  %s216_s28 = scalar_lea.vmem %s532_s3, %s394_s20 }
  0x11   : > { %v218_v3 = vld [vmem:[%s202_s23] sm:$0xff] }
  0x12   : > { %v219_v4 = vpack.c.bf16 %v218_v3, %v218_v3 }
  0x14   : > { %410 = vmatmul.mubr.msk.bf16.vlgmr.msra.gmra.mrb[0].mxu0 %vm243_vm1, %v219_v4 }
  0xe7   : > { %v281_v6 = vpop.f32.mrb[0].mxu0 }
  0xe8   : > { %v282_v7 = vadd.f32 %v396_v5, %v281_v6  ;;  %v411_v8 = vpop.f32.mrb[1].mxu0 }
  0xe9   : > { %v284_v9 = vpop.f32.mrb[2].mxu0 }
  0xea   : > { %287 = vst [vmem:[%s216_s28] sm:$0xff] %v282_v7  ;;  %v412_v10 = vpop.f32.mrb[3].mxu0 }
  0xeb PF: > { %s13_s14 = sadd.s32 1, %s463_s14   ;;  %s533_s12 = smov %s459_s13 }
  0xec   : > { %p10_p5 = scmp.ge.s32.totalorder %s13_s14, 4   ;;  %s534_s13 = smov %s536_s15 }
  0xee   :  { %12 = sbr.rel (!%p10_p5) target bundleno = 2 (0x2), region = 68 }

// kernel: transformer_forward.5
= control target key start
LH: loop header
LB: loop body
LE: loop exit
PB: predicated region body
PF: predicated region fallthrough
CT: control target
= control target key end

     0   :  { %s1671_s29 = smov 0   ;;  %s1844_s0 = inlined_call_operand.vmem [shape: f32[2,8,32], index: 0, kind: input, shape index: {}]   ;;  %s1845_s1 = inlined_call_operand.vmem [shape: s32[2,8,8], index: 1, kind: input, shape index: {}]   ;;  %s1846_s2 = inlined_call_operand.vmem [shape: bf16[32,96], index: 2, kind: input, shape index: {}]   ;;  %s1847_s3 = inlined_call_operand.vmem [shape: f32[1,96], index: 3, kind: input, shape index: {}]   ;;  %s1848_s4 = inlined_call_operand.vmem [shape: bf16[32,32], index: 4, kind: input, shape index: {}]   ;;  %s1849_s5 = inlined_call_operand.vmem [shape: f32[1,32], index: 5, kind: input, shape index: {}]   ;;  %s1850_s6 = inlined_call_operand.vmem [shape: f32[1,32], index: 6, kind: input, shape index: {}]   ;;  %s1851_s7 = inlined_call_operand.vmem [shape: f32[1,32], index: 7, kind: input, shape index: {}]   ;;  %s1852_s8 = inlined_call_operand.vmem [shape: bf16[32,64], index: 8, kind: input, shape index: {}]   ;;  %s1853_s9 = inlined_call_operand.vmem [shape: f32[1,64], index: 9, kind: input, shape index: {}]   ;;  %s1854_s10 = inlined_call_operand.vmem [shape: bf16[64,32], index: 10, kind: input, shape index: {}]   ;;  %s1855_s11 = inlined_call_operand.vmem [shape: f32[1,32], index: 11, kind: input, shape index: {}]   ;;  %s1856_s12 = inlined_call_operand.vmem [shape: f32[1,32], index: 12, kind: input, shape index: {}]   ;;  %s1857_s13 = inlined_call_operand.vmem [shape: f32[1,32], index: 13, kind: input, shape index: {}]   ;;  %s1858_s14 = inlined_call_operand.vmem [shape: f32[2,8,32], index: 14, kind: output, shape index: {}]  }
   0x1 LB: > { %s1364_s30 = sadd.s32 4294967295, %s1578_s29   ;;  %p1368_p0 = scmp.ge.s32.totalorder %s1578_s29, 1  ;;  %s1578_s29 = sphi %s1671_s29, %s24_s29  }
   0x2   : > { %p420_p1 = scmp.lt.s32.totalorder %s1578_s29, 3 }
   0x4   : > { %p421_p2 = pnand %p1368_p0, %p420_p1 }
   0x5   : > { %v1542_v0 = vld [vmem:[%s1846_s2] sm:$0xff] (!%p421_p2)   ;;  %v1580_v1 = vmov (!%p421_p2), 0.0   ;;  %v1543_v2 = vld [vmem:[%s1846_s2 + $0x8] sm:$0xff] (!%p421_p2)   ;;  %vm1581_vm0 = vmmov (!%p421_p2), 0   ;;  %p468_p3 = scmp.lt.s32.totalorder (!%p421_p2), %s1364_s30, 1  ;;  %vm506_vm1 = vcmask (!%p421_p2), 261120  }
   0x6   : > { %424 = sbr.rel (%p421_p2) target bundleno = 2558 (0x9fe), region = 76  ;;  %1434 = vmatprep.subr.bf16.mxu0 (!%p421_p2), %v1580_v1  ;;  %1442 = vmatprep.subr.bf16.mxu1 (!%p421_p2), %v1580_v1  ;;  %v1372_v5 = vld [vmem:[%s1847_s3] ss:$0 sm:$0xff] (!%p421_p2)  ;;  %s1582_s25 = smov (!%p421_p2), 96   ;;  %vm557_vm2 = vcmask (!%p421_p2), 64512   ;;  %vm623_vm4 = vcmask (!%p421_p2), 1043456  }
   0x7   : > { %1435 = vmatpush3.bf16.msra.mxu0 (!%p421_p2), %v1542_v0  ;;  %1438 = vmatprep.mubr.msk.bf16.mxu0 (!%p421_p2), %vm1581_vm0, %v1580_v1  ;;  %s1583_s26 = smov (!%p421_p2), 120   ;;  %s1584_s27 = smov (!%p421_p2), 88   ;;  %vm1014_vm5 = vcmask (!%p421_p2), 130048   ;;  %vm1016_vm6 = vcmask (!%p421_p2), 195584   ;;  %vm1224_vm7 = vcmask (!%p421_p2), 523264  }
   0x8   : > { %1436 = vmatprep.subr.bf16.mxu0 (!%p421_p2), %v1580_v1  ;;  %1444 = vmatprep.mubr.msk.bf16.mxu1 (!%p421_p2), %vm1581_vm0, %v1580_v1  ;;  %s1585_s28 = smov (!%p421_p2), 80   ;;  %s1587_s15 = smov (!%p421_p2), 72  }
   0x9   : > { %s1588_s16 = smov (!%p421_p2), 104   ;;  %s1589_s21 = smov (!%p421_p2), 56  }
   0xa   : > { %s1591_s23 = smov (!%p421_p2), 40   ;;  %s1592_s24 = smov (!%p421_p2), 48  }
   0xb   : > { %1437 = vmatpush3.bf16.msra.mxu0 (!%p421_p2), %v1543_v2 }
   0xc   : > { %1448 = vmatprep.subr.bf16.mxu0 (!%p421_p2), %v1580_v1 }
   0xd   : > { %s1860_s30 = smov (!%p468_p3, %s1364_s30), 1 }
   0xe   : > { %s1692_s19 = sshll.u32 %s1860_s30, 3  ;;  %s1586_s30 = smov 112  }
   0xf   : > { %s471_s22 = scalar_lea.vmem %s1844_s0, %s1692_s19  ;;  %s475_s20 = scalar_lea.vmem %s1845_s1, %s1692_s19 }
  0x10   : > { %v1699_v3 = vld [vmem:[%s471_s22] sm:$0xff]  ;;  %s1590_s22 = smov 64   ;;  %s479_s17 = scalar_lea.vmem %s1858_s14, %s1692_s19 }
  0x11   : > { %v482_v4 = vpack.c.bf16 %v1699_v3, %v1699_v3  ;;  %v550_v25 = vld [vmem:[%s475_s20] sm:$0xff] }
  0x12   : > { %vm604_vm3 = vcmp.gt.s32.totalorder %v550_v25, 0 }
  0x13   : > { %1439 = vmatmul.mubr.msk.bf16.vlgmr.msra.gmra.mrb[0].mxu0 %vm506_vm1, %v482_v4 }
  0x14   : > { %1450 = vmatprep.mubr.msk.bf16.mxu0 %vm1581_vm0, %v1580_v1 }
  0xe6   : > { %v544_v6 = vpop.f32.mrb[0].mxu0 }
  0xe7   : > { %v545_v7 = vadd.f32 %v1372_v5, %v544_v6  ;;  %v1440_v8 = vpop.f32.mrb[1].mxu0 }
  0xe8   : > { %v547_v9 = vpop.f32.mrb[2].mxu0 }
  0xe9   : > { %v551_v10 = vmul.f32 0.35355338, %v545_v7  ;;  %v1709_v11 = vpack.c.bf16 %v545_v7, %v545_v7  ;;  %v1441_v12 = vpop.f32.mrb[3].mxu0 }
  0xeb   : > { %v552_v13 = vpack.c.bf16 %v551_v10, %v551_v10  ;;  %555 = vrot.lane.b32.xlu0 %v1709_v11, %s1582_s25  ;;  %s1593_s25 = smov 8  }
  0xed   : > { %668 = vrot.lane.b32.xlu1 %v552_v13, %s1583_s26 }
  0xef   : > { %670 = vrot.lane.b32.xlu0 %v1709_v11, %s1584_s27 }
  0xf1   : > { %781 = vrot.lane.b32.xlu1 %v1709_v11, %s1585_s28 }
  0xf3   : > { %779 = vrot.lane.b32.xlu0 %v552_v13, %s1586_s30 }
  0xf5   : > { %892 = vrot.lane.b32.xlu1 %v1709_v11, %s1587_s15  ;;  %s1594_s15 = smov 16  }
  0xf7   : > { %890 = vrot.lane.b32.xlu0 %v552_v13, %s1588_s16  ;;  %s1595_s16 = smov 24  }
 0x15d   : > { %v556_v14 = vpop.permute.xlu0 %555 }
 0x15e   : > { %v562_v15 = vsel %vm557_vm2, %v556_v14, 0 }
 0x15f   : > { %1443 = vmatpush3.bf16.xpose.msra.mxu1 %v562_v15  ;;  %v669_v17 = vpop.permute.xlu1 %668 }
 0x160   : > { %1454 = vmatprep.subr.bf16.mxu1 %v1580_v1 }
 0x161   : > { %v671_v16 = vpop.permute.xlu0 %670 }
 0x162   : > { %v676_v18 = vsel %vm557_vm2, %v671_v16, 0 }
 0x163   : > { %v782_v19 = vpop.permute.xlu1 %781 }
 0x164   : > { %v787_v20 = vsel %vm557_vm2, %v782_v19, 0 }
 0x165   : > { %v780_v22 = vpop.permute.xlu0 %779 }
 0x166   : > { %1445 = vmatmul.mubr.msk.bf16.vlgmr.msra.gmra.mrb[0].mxu1 %vm557_vm2, %v552_v13 }
 0x167   : > { %1455 = vmatpush3.bf16.xpose.msra.mxu1 %v676_v18  ;;  %1456 = vmatprep.mubr.msk.bf16.mxu1 %vm1581_vm0, %v1580_v1  ;;  %v893_v21 = vpop.permute.xlu1 %892 }
 0x168   : > { %1466 = vmatprep.subr.bf16.mxu1 %v1580_v1  ;;  %v898_v23 = vsel %vm557_vm2, %v893_v21, 0 }
 0x169   : > { %v891_v24 = vpop.permute.xlu0 %890 }
 0x16e   : > { %1457 = vmatmul.mubr.msk.bf16.vlgmr.msra.gmra.mrb[4].mxu1 %vm557_vm2, %v669_v17 }
 0x16f   : > { %1467 = vmatpush3.bf16.xpose.msra.mxu1 %v787_v20  ;;  %1468 = vmatprep.mubr.msk.bf16.mxu1 %vm1581_vm0, %v1580_v1 }
 0x170   : > { %1478 = vmatprep.subr.bf16.mxu1 %v1580_v1 }
 0x176   : > { %1469 = vmatmul.mubr.msk.bf16.vlgmr.msra.gmra.mrb[8].mxu1 %vm557_vm2, %v780_v22 }
 0x177   : > { %1479 = vmatpush3.bf16.xpose.msra.mxu1 %v898_v23  ;;  %1480 = vmatprep.mubr.msk.bf16.mxu1 %vm1581_vm0, %v1580_v1 }
 0x178   : > { %1490 = vmatprep.subr.bf16.mxu1 %v1580_v1 }
 0x17e   : > { %1481 = vmatmul.mubr.msk.bf16.vlgmr.msra.gmra.mrb[12].mxu1 %vm557_vm2, %v891_v24 }
 0x17f   : > { %1494 = vmatprep.mubr.msk.bf16.mxu1 %vm1581_vm0, %v1580_v1 }
 0x239   : > { %v598_v26 = vpop.f32.mrb[0].mxu1 }
 0x23a   : > { %v605_v27 = vsel %vm604_vm3, %v598_v26, -1e+09  ;;  %v1446_v28 = vpop.f32.mrb[1].mxu1 }
 0x23b   : > { %v601_v29 = vpop.f32.mrb[2].mxu1  ;;  %v606_v30 = vsel %vm557_vm2, %v605_v27, -inf }
 0x23c   : > { %607 = vmax.xlane.f32.xlu1 %v606_v30  ;;  %v1447_v31 = vpop.f32.mrb[3].mxu1 }
 0x241   : > { %v712_v32 = vpop.f32.mrb[4].mxu1 }
 0x242   : > { %v718_v33 = vsel %vm604_vm3, %v712_v32, -1e+09  ;;  %v1458_v34 = vpop.f32.mrb[5].mxu1 }
 0x243   : > { %v715_v35 = vpop.f32.mrb[6].mxu1  ;;  %v719_v36 = vsel %vm557_vm2, %v718_v33, -inf }
 0x244   : > { %720 = vmax.xlane.f32.xlu0 %v719_v36  ;;  %v1459_v37 = vpop.f32.mrb[7].mxu1 }
 0x249   : > { %v823_v38 = vpop.f32.mrb[8].mxu1 }
 0x24a   : > { %v829_v39 = vsel %vm604_vm3, %v823_v38, -1e+09  ;;  %v1470_v40 = vpop.f32.mrb[9].mxu1 }
 0x24b   : > { %v826_v41 = vpop.f32.mrb[10].mxu1  ;;  %v830_v42 = vsel %vm557_vm2, %v829_v39, -inf  ;;  %v1544_v40 = vld [vmem:[%s1848_s4] sm:$0xff]  }
 0x24c   : > { %831 = vmax.xlane.f32.xlu0 %v830_v42  ;;  %v1471_v43 = vpop.f32.mrb[11].mxu1  ;;  %1491 = vmatpush3.bf16.msra.mxu1 %v1544_v40  ;;  %v1545_v41 = vld [vmem:[%s1848_s4 + $0x8] sm:$0xff]  }
 0x24d   : > { %1492 = vmatprep.subr.bf16.mxu1 %v1580_v1 }
 0x250   : > { %1493 = vmatpush3.bf16.msra.mxu1 %v1545_v41 }
 0x251   : > { %v934_v44 = vpop.f32.mrb[12].mxu1  ;;  %1506 = vmatprep.subr.bf16.mxu1 %v1580_v1 }
 0x252   : > { %v940_v45 = vsel %vm604_vm3, %v934_v44, -1e+09  ;;  %v1482_v46 = vpop.f32.mrb[13].mxu1 }
 0x253   : > { %v937_v47 = vpop.f32.mrb[14].mxu1  ;;  %v941_v48 = vsel %vm557_vm2, %v940_v45, -inf }
 0x254   : > { %942 = vmax.xlane.f32.xlu1 %v941_v48  ;;  %v1483_v49 = vpop.f32.mrb[15].mxu1 }
 0x2c9   : > { %v608_v50 = vpop.xlane.xlu1 %607 }
 0x2ca   : > { %v609_v51 = vsub.f32 %v605_v27, %v608_v50 }
 0x2cc   : > { %v610_v52 = vmul.f32 1.442695, %v609_v51 }
 0x2ce   : > { %1552 = vpow2.f32 %v610_v52 }
 0x2d1   : > { %v721_v53 = vpop.xlane.xlu0 %720 }
 0x2d2   : > { %v722_v54 = vsub.f32 %v718_v33, %v721_v53 }
 0x2d4   : > { %v723_v55 = vmul.f32 1.442695, %v722_v54 }
 0x2d6   : > { %1554 = vpow2.f32 %v723_v55 }
 0x2d8   : > { %v1553_v56 = vpop.eup %1552 }
 0x2d9   : > { %v832_v57 = vpop.xlane.xlu0 %831  ;;  %v612_v58 = vsel %vm557_vm2, %v1553_v56, 0.0 }
 0x2da   : > { %v833_v59 = vsub.f32 %v829_v39, %v832_v57  ;;  %613 = vadd.xlane.f32.xlu0 %v612_v58  ;;  %v1384_v57 = vld [vmem:[%s1849_s5] ss:$0 sm:$0xff] }
 0x2dc   : > { %v834_v60 = vmul.f32 1.442695, %v833_v59 }
 0x2de   : > { %1556 = vpow2.f32 %v834_v60 }
 0x2e0   : > { %v1555_v61 = vpop.eup %1554 }
 0x2e1   : > { %v725_v62 = vsel %vm557_vm2, %v1555_v61, 0.0  ;;  %v943_v2 = vpop.xlane.xlu1 %942 }
 0x2e2   : > { %726 = vadd.xlane.f32.xlu1 %v725_v62  ;;  %v944_v4 = vsub.f32 %v940_v45, %v943_v2 }
 0x2e4   : > { %v945_v5 = vmul.f32 1.442695, %v944_v4 }
 0x2e6   : > { %1558 = vpow2.f32 %v945_v5 }
 0x2e8   : > { %v1557_v63 = vpop.eup %1556 }
 0x2e9   : > { %v836_v0 = vsel %vm557_vm2, %v1557_v63, 0.0 }
 0x2ea   : > { %837 = vadd.xlane.f32.xlu0 %v836_v0 }
 0x2f0   : > { %v1559_v6 = vpop.eup %1558 }
 0x2f1   : > { %v947_v7 = vsel %vm557_vm2, %v1559_v6, 0.0 }
 0x2f3   : > { %731 = vrot.lane.b32.xlu1 %v1709_v11, %s1589_s21 }
 0x300   : > { %618 = vrot.lane.b32.xlu0 %v1709_v11, %s1590_s22 }
 0x304   : > { %953 = vrot.lane.b32.xlu0 %v1709_v11, %s1591_s23 }
 0x317   : > { %948 = vadd.xlane.f32.xlu1 %v947_v7 }
 0x328   : > { %842 = vrot.lane.b32.xlu1 %v1709_v11, %s1592_s24 }
 0x367   : > { %v614_v8 = vpop.xlane.xlu0 %613 }
 0x368   : > { %1560 = vrcp.f32 %v614_v8  ;;  %v1546_v8 = vld [vmem:[%s1852_s8] sm:$0xff]  }
 0x36f   : > { %v727_v9 = vpop.xlane.xlu1 %726 }
 0x370   : > { %1562 = vrcp.f32 %v727_v9  ;;  %v1548_v9 = vld [vmem:[%s1854_s10] sm:$0xff]  }
 0x372   : > { %v1561_v10 = vpop.eup %1560 }
 0x373   : > { %v616_v13 = vmul.f32 %v1561_v10, %v1553_v56  ;;  %v732_v16 = vpop.permute.xlu1 %731  ;;  %v1549_v10 = vld [vmem:[%s1854_s10 + $0x8] sm:$0xff]  }
 0x374   : > { %v737_v19 = vsel %vm623_vm4, %v732_v16, 0  ;;  %v1388_v16 = vld [vmem:[%s1850_s6] ss:$0 sm:$0xff] }
 0x375   : > { %v617_v17 = vpack.c.bf16 %v616_v13, %v616_v13 }
 0x377   : > { %v838_v12 = vpop.xlane.xlu0 %837 }
 0x378   : > { %1564 = vrcp.f32 %v838_v12 }
 0x37a   : > { %v1563_v18 = vpop.eup %1562 }
 0x37b   : > { %v619_v14 = vpop.permute.xlu0 %618  ;;  %v729_v11 = vmul.f32 %v1563_v18, %v1555_v61  ;;  %v1389_v18 = vld [vmem:[%s1851_s7] ss:$0 sm:$0xff] }
 0x37c   : > { %v625_v15 = vsel %vm623_vm4, %v619_v14, 0 }
 0x37d   : > { %1449 = vmatpush3.bf16.msra.mxu0 %v625_v15  ;;  %v730_v20 = vpack.c.bf16 %v729_v11, %v729_v11 }
 0x37e   : > { %1460 = vmatprep.subr.bf16.mxu0 %v1580_v1 }
 0x37f   : > { %v954_v26 = vpop.permute.xlu0 %953 }
 0x380   : > { %1451 = vmatmul.mubr.msk.bf16.vlgmr.msra.gmra.mrb[4].mxu0 %vm557_vm2, %v617_v17  ;;  %v959_v28 = vsel %vm623_vm4, %v954_v26, 0 }
 0x381   : > { %1461 = vmatpush3.bf16.msra.mxu0 %v737_v19  ;;  %1462 = vmatprep.mubr.msk.bf16.mxu0 %vm1581_vm0, %v1580_v1 }
 0x382   : > { %1472 = vmatprep.subr.bf16.mxu0 %v1580_v1  ;;  %v1565_v21 = vpop.eup %1564 }
 0x383   : > { %v840_v23 = vmul.f32 %v1565_v21, %v1557_v63  ;;  %v1550_v21 = vld [vmem:[%s1854_s10 + $0x10] sm:$0xff]  }
 0x385   : > { %v841_v27 = vpack.c.bf16 %v840_v23, %v840_v23  ;;  %v1390_v23 = vld [vmem:[%s1853_s9] ss:$0 sm:$0xff] }
 0x388   : > { %1463 = vmatmul.mubr.msk.bf16.vlgmr.msra.gmra.mrb[8].mxu0 %vm557_vm2, %v730_v20 }
 0x389   : > { %1474 = vmatprep.mubr.msk.bf16.mxu0 %vm1581_vm0, %v1580_v1 }
 0x3a4   : > { %v949_v22 = vpop.xlane.xlu1 %948 }
 0x3a5   : > { %1566 = vrcp.f32 %v949_v22  ;;  %v1551_v22 = vld [vmem:[%s1854_s10 + $0x18] sm:$0xff]  }
 0x3a8   : > { %v843_v24 = vpop.permute.xlu1 %842 }
 0x3a9   : > { %v848_v25 = vsel %vm623_vm4, %v843_v24, 0 }
 0x3aa   : > { %1473 = vmatpush3.bf16.msra.mxu0 %v848_v25 }
 0x3ab   : > { %1484 = vmatprep.subr.bf16.mxu0 %v1580_v1 }
 0x3ad   : > { %1475 = vmatmul.mubr.msk.bf16.vlgmr.msra.gmra.mrb[12].mxu0 %vm557_vm2, %v841_v27 }
 0x3ae   : > { %1485 = vmatpush3.bf16.msra.mxu0 %v959_v28  ;;  %1486 = vmatprep.mubr.msk.bf16.mxu0 %vm1581_vm0, %v1580_v1 }
 0x3af   : > { %v1567_v29 = vpop.eup %1566  ;;  %1498 = vmatprep.subr.bf16.mxu0 %v1580_v1 }
 0x3b0   : > { %v951_v30 = vmul.f32 %v1567_v29, %v1559_v6 }
 0x3b2   : > { %v952_v31 = vpack.c.bf16 %v951_v30, %v951_v30 }
 0x3b5   : > { %1487 = vmatmul.mubr.msk.bf16.vlgmr.msra.gmra.mrb[16].mxu0 %vm557_vm2, %v952_v31 }
 0x3b6   : > { %1502 = vmatprep.mubr.msk.bf16.mxu0 %vm1581_vm0, %v1580_v1  ;;  %1499 = vmatpush3.bf16.msra.mxu0 %v1546_v8 }
 0x3b7   : > { %1500 = vmatprep.subr.bf16.mxu0 %v1580_v1 }
 0x453   : > { %v661_v32 = vpop.f32.mrb[4].mxu0 }
 0x454   : > { %v1452_v33 = vpop.f32.mrb[5].mxu0 }
 0x455   : > { %v664_v34 = vpop.f32.mrb[6].mxu0 }
 0x456   : > { %v1453_v35 = vpop.f32.mrb[7].mxu0 }
 0x45b   : > { %v773_v36 = vpop.f32.mrb[8].mxu0 }
 0x45c   : > { %1002 = vrot.lane.b32.xlu1 %v773_v36, %s1593_s25  ;;  %v1464_v37 = vpop.f32.mrb[9].mxu0 }
 0x45d   : > { %v776_v38 = vpop.f32.mrb[10].mxu0 }
 0x45e   : > { %v1465_v39 = vpop.f32.mrb[11].mxu0 }
 0x480   : > { %v884_v42 = vpop.f32.mrb[12].mxu0 }
 0x481   : > { %1006 = vrot.lane.b32.xlu0 %v884_v42, %s1594_s15  ;;  %v1476_v43 = vpop.f32.mrb[13].mxu0 }
 0x482   : > { %v887_v44 = vpop.f32.mrb[14].mxu0 }
 0x483   : > { %v1477_v45 = vpop.f32.mrb[15].mxu0 }
 0x488   : > { %v995_v46 = vpop.f32.mrb[16].mxu0 }
 0x489   : > { %1010 = vrot.lane.b32.xlu1 %v995_v46, %s1595_s16  ;;  %v1488_v47 = vpop.f32.mrb[17].mxu0 }
 0x48a   : > { %v998_v48 = vpop.f32.mrb[18].mxu0  ;;  %v1400_v47 = vld [vmem:[%s1856_s12] ss:$0 sm:$0xff] }
 0x48b   : > { %v1489_v49 = vpop.f32.mrb[19].mxu0 }
 0x48c   : > { %v1401_v49 = vld [vmem:[%s1857_s13] ss:$0 sm:$0xff] }
 0x4ce   : > { %v1003_v50 = vpop.permute.xlu1 %1002 }
 0x4cf   : > { %v1013_v52 = vsel %vm557_vm2, %v661_v32, %v1003_v50 }
 0x4f3   : > { %v1007_v51 = vpop.permute.xlu0 %1006 }
 0x4f4   : > { %v1015_v53 = vsel %vm1014_vm5, %v1013_v52, %v1007_v51 }
 0x4fb   : > { %v1011_v54 = vpop.permute.xlu1 %1010 }
 0x4fc   : > { %v1017_v55 = vsel %vm1016_vm6, %v1015_v53, %v1011_v54 }
 0x4fd   : > { %v1018_v56 = vpack.c.bf16 %v1017_v55, %v1017_v55 }
 0x4ff   : > { %1495 = vmatmul.mubr.msk.bf16.vlgmr.msra.gmra.mrb[16].mxu1 %vm506_vm1, %v1018_v56 }
 0x500   : > { %1514 = vmatprep.mubr.msk.bf16.mxu1 %vm1581_vm0, %v1580_v1  ;;  %1507 = vmatpush3.bf16.msra.mxu1 %v1548_v9 }
 0x501   : > { %1508 = vmatprep.subr.bf16.mxu1 %v1580_v1 }
 0x504   : > { %1509 = vmatpush3.bf16.msra.mxu1 %v1549_v10 }
 0x505   : > { %1510 = vmatprep.subr.bf16.mxu1 %v1580_v1 }
 0x508   : > { %1511 = vmatpush3.bf16.msra.mxu1 %v1550_v21 }
 0x509   : > { %1512 = vmatprep.subr.bf16.mxu1 %v1580_v1  ;;  %v1394_v1 = vld [vmem:[%s1855_s11] ss:$0 sm:$0xff] }
 0x50c   : > { %1513 = vmatpush3.bf16.msra.mxu1 %v1551_v22 }
 0x5d2   : > { %v1079_v58 = vpop.f32.mrb[16].mxu1 }
 0x5d3   : > { %v1080_v59 = vadd.f32 %v1384_v57, %v1079_v58  ;;  %v1496_v60 = vpop.f32.mrb[17].mxu1 }
 0x5d4   : > { %v1082_v61 = vpop.f32.mrb[18].mxu1 }
 0x5d5   : > { %v1497_v62 = vpop.f32.mrb[19].mxu1  ;;  %v1085_v63 = vadd.f32 %v1080_v59, %v1699_v3  ;;  %v1547_v3 = vld [vmem:[%s1852_s8 + $0x8] sm:$0xff]  }
 0x5d6   : > { %1501 = vmatpush3.bf16.msra.mxu0 %v1547_v3 }
 0x5d7   : > { %v1088_v0 = vsel %vm506_vm1, %v1085_v63, 0.0 }
 0x5d8   : > { %1089 = vadd.xlane.f32.xlu0 %v1088_v0 }
 0x665   : > { %v1090_v2 = vpop.xlane.xlu0 %1089 }
 0x666   : > { %v1092_v4 = vmul.f32 0.03125, %v1090_v2 }
 0x668   : > { %v1093_v5 = vsub.f32 %v1085_v63, %v1092_v4 }
 0x66a   : > { %v1094_v6 = vmul.f32 %v1093_v5, %v1093_v5 }
 0x66c   : > { %v1095_v7 = vsel %vm506_vm1, %v1094_v6, 0.0 }
 0x66d   : > { %1096 = vadd.xlane.f32.xlu1 %v1095_v7 }
 0x6fa   : > { %v1097_v12 = vpop.xlane.xlu1 %1096 }
 0x6fb   : > { %v1098_v13 = vmul.f32 0.03125, %v1097_v12 }
 0x6fd   : > { %v1099_v14 = vadd.f32 1e-05, %v1098_v13 }
 0x6ff   : > { %1568 = vrsqrt.f32 %v1099_v14 }
 0x709   : > { %v1569_v15 = vpop.eup %1568 }
 0x70a   : > { %v1101_v17 = vmul.f32 %v1569_v15, %v1093_v5 }
 0x70c   : > { %v1108_v19 = vmul.f32 %v1388_v16, %v1101_v17 }
 0x70e   : > { %v1115_v11 = vadd.f32 %v1389_v18, %v1108_v19 }
 0x710   : > { %v1116_v20 = vpack.c.bf16 %v1115_v11, %v1115_v11 }
 0x712   : > { %1503 = vmatmul.mubr.msk.bf16.vlgmr.msra.gmra.mrb[20].mxu0 %vm506_vm1, %v1116_v20 }
 0x7e5   : > { %v1177_v24 = vpop.f32.mrb[20].mxu0 }
 0x7e6   : > { %v1178_v25 = vadd.f32 %v1390_v23, %v1177_v24  ;;  %v1504_v26 = vpop.f32.mrb[21].mxu0 }
 0x7e7   : > { %v1180_v27 = vpop.f32.mrb[22].mxu0 }
 0x7e8   : > { %v1183_v28 = vmax.f32 %v1178_v25, 0.0  ;;  %v1505_v29 = vpop.f32.mrb[23].mxu0 }
 0x7ea   : > { %v1184_v30 = vpack.c.bf16 %v1183_v28, %v1183_v28 }
 0x7ec   : > { %1515 = vmatmul.mubr.msk.bf16.vlgmr.msra.gmra.mrb[20].mxu1 %vm1224_vm7, %v1184_v30 }
 0x8bf   : > { %v1262_v31 = vpop.f32.mrb[20].mxu1 }
 0x8c0   : > { %v1263_v32 = vadd.f32 %v1394_v1, %v1262_v31  ;;  %v1516_v33 = vpop.f32.mrb[21].mxu1 }
 0x8c1   : > { %v1265_v34 = vpop.f32.mrb[22].mxu1 }
 0x8c2   : > { %v1517_v35 = vpop.f32.mrb[23].mxu1  ;;  %v1268_v36 = vadd.f32 %v1263_v32, %v1115_v11 }
 0x8c4   : > { %v1271_v37 = vsel %vm506_vm1, %v1268_v36, 0.0 }
 0x8c5   : > { %1272 = vadd.xlane.f32.xlu0 %v1271_v37 }
 0x952   : > { %v1273_v38 = vpop.xlane.xlu0 %1272 }
 0x953   : > { %v1274_v39 = vmul.f32 0.03125, %v1273_v38 }
 0x955   : > { %v1275_v40 = vsub.f32 %v1268_v36, %v1274_v39 }
 0x957   : > { %v1276_v41 = vmul.f32 %v1275_v40, %v1275_v40 }
 0x959   : > { %v1277_v42 = vsel %vm506_vm1, %v1276_v41, 0.0 }
 0x95a   : > { %1278 = vadd.xlane.f32.xlu0 %v1277_v42 }
 0x9e7   : > { %v1279_v43 = vpop.xlane.xlu0 %1278 }
 0x9e8   : > { %v1280_v44 = vmul.f32 0.03125, %v1279_v43 }
 0x9ea   : > { %v1281_v45 = vadd.f32 1e-05, %v1280_v44 }
 0x9ec   : > { %1570 = vrsqrt.f32 %v1281_v45 }
 0x9f6   : > { %v1571_v46 = vpop.eup %1570 }
 0x9f7   : > { %v1283_v48 = vmul.f32 %v1571_v46, %v1275_v40 }
 0x9f9   : > { %v1290_v50 = vmul.f32 %v1400_v47, %v1283_v48 }
 0x9fb   : > { %v1297_v51 = vadd.f32 %v1401_v49, %v1290_v50 }
 0x9fd   : > { %1298 = vst.msk [vmem:[%s479_s17] sm:$0xff] %vm506_vm1, %v1297_v51 }
 0x9fe PF: > { %s24_s29 = sadd.s32 1, %s1578_s29  }
 0x9ff   : > { %p21_p4 = scmp.ge.s32.totalorder %s24_s29, 4  }
 0xa01   :  { %23 = sbr.rel (!%p21_p4) target bundleno = 1 (0x1), region = 109 }

// kernel: transformer_forward.8
= control target key start
LH: loop header
LB: loop body
LE: loop exit
PB: predicated region body
PF: predicated region fallthrough
CT: control target
= control target key end

     0   :  { %s3321_s0 = inlined_call_operand.vmem [shape: f32[2,8,32], index: 0, kind: input, shape index: {}]   ;;  %s3322_s1 = inlined_call_operand.vmem [shape: f32[2,8,32], index: 1, kind: input, shape index: {}]   ;;  %s3323_s2 = inlined_call_operand.vmem [shape: s32[2,8,8], index: 2, kind: input, shape index: {}]   ;;  %s3324_s3 = inlined_call_operand.vmem [shape: s32[2,8,8], index: 3, kind: input, shape index: {}]   ;;  %s3325_s4 = inlined_call_operand.vmem [shape: bf16[32,96], index: 4, kind: input, shape index: {}]   ;;  %s3326_s5 = inlined_call_operand.vmem [shape: f32[1,96], index: 5, kind: input, shape index: {}]   ;;  %s3327_s6 = inlined_call_operand.vmem [shape: bf16[32,32], index: 6, kind: input, shape index: {}]   ;;  %s3328_s7 = inlined_call_operand.vmem [shape: f32[1,32], index: 7, kind: input, shape index: {}]   ;;  %s3329_s8 = inlined_call_operand.vmem [shape: f32[1,32], index: 8, kind: input, shape index: {}]   ;;  %s3330_s9 = inlined_call_operand.vmem [shape: f32[1,32], index: 9, kind: input, shape index: {}]   ;;  %s3331_s10 = inlined_call_operand.vmem [shape: bf16[32,32], index: 10, kind: input, shape index: {}]   ;;  %s3332_s11 = inlined_call_operand.vmem [shape: f32[1,32], index: 11, kind: input, shape index: {}]   ;;  %s3333_s12 = inlined_call_operand.vmem [shape: bf16[32,64], index: 12, kind: input, shape index: {}]   ;;  %s3334_s13 = inlined_call_operand.vmem [shape: f32[1,64], index: 13, kind: input, shape index: {}]   ;;  %s3335_s14 = inlined_call_operand.vmem [shape: bf16[32,32], index: 14, kind: input, shape index: {}]   ;;  %s3336_s15 = inlined_call_operand.vmem [shape: f32[1,32], index: 15, kind: input, shape index: {}]   ;;  %s3337_s16 = inlined_call_operand.vmem [shape: f32[1,32], index: 16, kind: input, shape index: {}]   ;;  %s3338_s17 = inlined_call_operand.vmem [shape: f32[1,32], index: 17, kind: input, shape index: {}]   ;;  %s3339_s18 = inlined_call_operand.vmem [shape: bf16[32,64], index: 18, kind: input, shape index: {}]   ;;  %s3340_s19 = inlined_call_operand.vmem [shape: f32[1,64], index: 19, kind: input, shape index: {}]   ;;  %s3341_s20 = inlined_call_operand.vmem [shape: bf16[64,32], index: 20, kind: input, shape index: {}]   ;;  %s3342_s21 = inlined_call_operand.vmem [shape: f32[1,32], index: 21, kind: input, shape index: {}]   ;;  %s3343_s22 = inlined_call_operand.vmem [shape: f32[1,32], index: 22, kind: input, shape index: {}]   ;;  %s3344_s23 = inlined_call_operand.hbm [shape: f32[1,32], index: 23, kind: input, shape index: {}]   ;;  %s3345_s24 = inlined_call_operand.vmem [shape: f32[2,8,32], index: 24, kind: output, shape index: {}]  }
   0x1   :  { %3357 = sst [smem:[#allocation5_spill]] %s3321_s0 }
   0x2   :  { %3358 = sst [smem:[#allocation6_spill]] %s3322_s1 }
   0x3   :  { %3359 = sst [smem:[#allocation7_spill]] %s3323_s2 }
   0x4   :  { %3360 = sst [smem:[#allocation8_spill]] %s3324_s3 }
   0x5   :  { %3361 = sst [smem:[#allocation9_spill]] %s3325_s4 }
   0x6   :  { %3362 = sst [smem:[#allocation10_spill]] %s3326_s5 }
   0x7   :  { %3363 = sst [smem:[#allocation11_spill]] %s3327_s6 }
   0x8   :  { %3364 = sst [smem:[#allocation12_spill]] %s3328_s7 }
   0x9   :  { %3365 = sst [smem:[#allocation13_spill]] %s3329_s8 }
   0xa   :  { %29 = vsyncpa [#allocation3], 0  ;;  %s2959_s5 = smov 0  }
   0xb LB: > { %s2965_s26 = sadd.s32 4294967295, %s2815_s5   ;;  %p2413_p0 = scmp.ge.s32.totalorder %s2815_s5, 1  ;;  %s2815_s5 = sphi %s2959_s5, %s35_s5  }
   0xc   : > { %p590_p1 = scmp.lt.s32.totalorder %s2815_s5, 3  ;;  %p3348_p3 = scmp.eq.s32.totalorder %s2965_s26, 0 }
   0xd   : > { %s2817_s28 = smov [#allocation2]   ;;  %s2777_s7 = scalar_lea.hbm %s3344_s23, 16 }
   0xe   : > { %p2969_p2 = pnand %p2413_p0, %p590_p1  ;;  %s660_s6 = sshll.u32 %s2817_s28, 4  ;;  %s661_s6 = int_to_ptr.vmem [resolvable:$true] %s660_s6 }
   0xf   : > { %p2778_p6 = scmp.ne.s32.totalorder %s3344_s23, %s2777_s7  ;;  %p2784_p10 = scmp.lt.u32.totalorder %s2777_s7, %s3344_s23 }
  0x10   : > { %s3366_s27 = scalar_select %p2969_p2, 1, 0 }
  0x11   : > { %p2692_p4 = pneg %p2969_p2 }
  0x13   : > { %p2978_p5 = pnand %p3348_p3, %p2692_p4 }
  0x15   : > { %p2779_p7 = pneg %p2978_p5 }
  0x17   : > { %p2780_p8 = pnand %p2779_p7, %p2778_p6 }
  0x19   : > { %p2781_p9 = pneg %p2780_p8 }
  0x1b   : > { %p2786_p11 = pnand %p2784_p10, %p2781_p9 }
  0x1d   : > { %2789 = shalt.err (!%p2786_p11)
}
  0x1e   : > { %s2790_s4 = scalar_lea.vmem %s661_s6, 16  ;;  %s2797_s1 = scalar_lea.vmem %s661_s6, 32 }
  0x1f   : > { %p2791_p12 = scmp.ne.s32.totalorder %s661_s6, %s2790_s4  ;;  %p2798_p1 = scmp.lt.s32.totalorder %s661_s6, %s661_s6 }
  0x20   : > { %p2799_p4 = scmp.lt.s32.totalorder %s2797_s1, %s2790_s4 }
  0x21   : > { %p2793_p13 = pnand %p2791_p12, %p2779_p7 }
  0x22   : > { %p2800_p3 = por %p2799_p4, %p2798_p1 }
  0x23   : > { %p2794_p0 = pneg %p2793_p13 }
  0x25   : > { %p2801_p2 = pnand %p2800_p3, %p2794_p0 }
  0x27   : > { %2804 = shalt.err (!%p2801_p2)
}
  0x28   : > { %2695 = dma.hbm_to_vmem [thread:$0]  (!%p2978_p5), %s3344_s23, 16, %s661_s6, [#allocation3]  }
  0x29   : > { %p3368_p6 = scmp.ne.s32.totalorder %s3366_s27, 0 }
  0x2a   : > { %p3369_p8 = scmp.eq.s32.totalorder (!%p3368_p6), %s2965_s26, 0 }
  0x2b   : > { %701 = sbr.rel (%p3368_p6) target bundleno = 4353 (0x1101), region = 116 }
  0x32   : > { %2810 = dma.done.wait (%p3369_p8), [#allocation3], 16   ;;  %p3370_p7 = pmov %p3369_p8 }
  0x33   : > { %p777_p9 = scmp.lt.s32.totalorder %s2965_s26, 1  ;;  %v2818_v0 = vmov 0.0   ;;  %vm2819_vm0 = vmmov 0   ;;  %s3371_s0 = sld [smem:[#allocation5_spill]]  ;;  %vm824_vm1 = vcmask 261120   ;;  %vm875_vm2 = vcmask 64512  }
  0x34   : > { %2812 = vsyncadd (%p3370_p7), [#allocation3], 4294967280  ;;  %2532 = vmatprep.subr.bf16.mxu1 %v2818_v0  ;;  %2536 = vmatprep.mubr.msk.bf16.mxu1 %vm2819_vm0, %v2818_v0  ;;  %s3372_s25 = sld [smem:[#allocation9_spill]]  ;;  %s3373_s28 = sld [smem:[#allocation10_spill]]  ;;  %vm941_vm4 = vcmask 1043456   ;;  %vm1332_vm5 = vcmask 130048  }
  0x35   : > { %s3388_s26 = smov (!%p777_p9, %s2965_s26), 1  ;;  %2546 = vmatprep.subr.bf16.mxu0 %v2818_v0  ;;  %2548 = vmatprep.mubr.msk.bf16.mxu0 %vm2819_vm0, %v2818_v0  ;;  %s3356_s29 = smov 96   ;;  %vm1334_vm6 = vcmask 195584   ;;  %vm2235_vm8 = vcmask 523264  }
  0x36   : > { %s3012_s27 = sshll.u32 %s3388_s26, 3  ;;  %s2821_s6 = smov 120  }
  0x37   : > { %s3350_s2 = smov 88   ;;  %s3351_s30 = smov 72  }
  0x38   : > { %s2826_s3 = smov 104   ;;  %s3374_s26 = sld [smem:[#allocation7_spill]] }
  0x39   : > { %s780_s7 = scalar_lea.vmem %s3371_s0, %s3012_s27  ;;  %s3355_s0 = smov 80  }
  0x3a   : > { %v2723_v1 = vld [vmem:[%s3372_s25] sm:$0xff]   ;;  %v2724_v2 = vld [vmem:[%s3372_s25 + $0x8] sm:$0xff]   ;;  %s2828_s8 = smov 64   ;;  %s2829_s4 = smov 40  }
  0x3b   : > { %2533 = vmatpush3.bf16.msra.mxu1 %v2723_v1  ;;  %v3024_v3 = vld [vmem:[%s780_s7] sm:$0xff]  ;;  %s2824_s7 = smov 112  }
  0x3c   : > { %2534 = vmatprep.subr.bf16.mxu1 %v2818_v0  ;;  %v800_v4 = vpack.c.bf16 %v3024_v3, %v3024_v3  ;;  %v2423_v5 = vld [vmem:[%s3373_s28] ss:$0 sm:$0xff]  ;;  %s2827_s28 = smov 56  }
  0x3e   : > { %s788_s1 = scalar_lea.vmem %s3374_s26, %s3012_s27  ;;  %s2830_s26 = smov 48  }
  0x3f   : > { %2535 = vmatpush3.bf16.msra.mxu1 %v2724_v2  ;;  %v868_v25 = vld [vmem:[%s788_s1] sm:$0xff]  ;;  %s3354_s1 = smov 8  }
  0x40   : > { %2540 = vmatprep.subr.bf16.mxu1 %v2818_v0  ;;  %vm922_vm3 = vcmp.gt.s32.totalorder %v868_v25, 0 }
  0x42   : > { %2537 = vmatmul.mubr.msk.bf16.vlgmr.msra.gmra.mrb[0].mxu1 %vm824_vm1, %v800_v4 }
  0x43   : > { %2542 = vmatprep.mubr.msk.bf16.mxu1 %vm2819_vm0, %v2818_v0 }
 0x115   : > { %v862_v6 = vpop.f32.mrb[0].mxu1 }
 0x116   : > { %v863_v7 = vadd.f32 %v2423_v5, %v862_v6  ;;  %v2538_v8 = vpop.f32.mrb[1].mxu1 }
 0x117   : > { %v865_v9 = vpop.f32.mrb[2].mxu1 }
 0x118   : > { %v869_v10 = vmul.f32 0.35355338, %v863_v7  ;;  %v3036_v11 = vpack.c.bf16 %v863_v7, %v863_v7  ;;  %v2539_v12 = vpop.f32.mrb[3].mxu1 }
 0x11a   : > { %v870_v13 = vpack.c.bf16 %v869_v10, %v869_v10  ;;  %873 = vrot.lane.b32.xlu0 %v3036_v11, %s3356_s29 }
 0x11c   : > { %986 = vrot.lane.b32.xlu1 %v870_v13, %s2821_s6 }
 0x11e   : > { %988 = vrot.lane.b32.xlu0 %v3036_v11, %s3350_s2  ;;  %s3382_s2 = smov 72  }
 0x120   : > { %1099 = vrot.lane.b32.xlu1 %v3036_v11, %s3355_s0  ;;  %s3377_s0 = sld [smem:[#allocation6_spill]] }
 0x122   : > { %1097 = vrot.lane.b32.xlu0 %v870_v13, %s2824_s7 }
 0x124   : > { %1210 = vrot.lane.b32.xlu1 %v3036_v11, %s3351_s30  ;;  %s3353_s30 = smov 16  }
 0x126   : > { %1208 = vrot.lane.b32.xlu0 %v870_v13, %s2826_s3  ;;  %s784_s29 = scalar_lea.vmem %s3377_s0, %s3012_s27 }
 0x18c   : > { %v874_v14 = vpop.permute.xlu0 %873 }
 0x18d   : > { %v880_v15 = vsel %vm875_vm2, %v874_v14, 0 }
 0x18e   : > { %2541 = vmatpush3.bf16.xpose.msra.mxu1 %v880_v15  ;;  %v987_v17 = vpop.permute.xlu1 %986 }
 0x18f   : > { %2552 = vmatprep.subr.bf16.mxu1 %v2818_v0 }
 0x190   : > { %v989_v16 = vpop.permute.xlu0 %988 }
 0x191   : > { %v994_v18 = vsel %vm875_vm2, %v989_v16, 0 }
 0x192   : > { %v1100_v19 = vpop.permute.xlu1 %1099 }
 0x193   : > { %v1105_v20 = vsel %vm875_vm2, %v1100_v19, 0 }
 0x194   : > { %v1098_v22 = vpop.permute.xlu0 %1097 }
 0x195   : > { %2543 = vmatmul.mubr.msk.bf16.vlgmr.msra.gmra.mrb[4].mxu1 %vm875_vm2, %v870_v13 }
 0x196   : > { %2553 = vmatpush3.bf16.xpose.msra.mxu1 %v994_v18  ;;  %2554 = vmatprep.mubr.msk.bf16.mxu1 %vm2819_vm0, %v2818_v0  ;;  %v1211_v21 = vpop.permute.xlu1 %1210 }
 0x197   : > { %2564 = vmatprep.subr.bf16.mxu1 %v2818_v0  ;;  %v1216_v23 = vsel %vm875_vm2, %v1211_v21, 0 }
 0x198   : > { %v1209_v24 = vpop.permute.xlu0 %1208 }
 0x19d   : > { %2555 = vmatmul.mubr.msk.bf16.vlgmr.msra.gmra.mrb[8].mxu1 %vm875_vm2, %v987_v17 }
 0x19e   : > { %2565 = vmatpush3.bf16.xpose.msra.mxu1 %v1105_v20  ;;  %2566 = vmatprep.mubr.msk.bf16.mxu1 %vm2819_vm0, %v2818_v0 }
 0x19f   : > { %2576 = vmatprep.subr.bf16.mxu1 %v2818_v0 }
 0x1a5   : > { %2567 = vmatmul.mubr.msk.bf16.vlgmr.msra.gmra.mrb[12].mxu1 %vm875_vm2, %v1098_v22 }
 0x1a6   : > { %2577 = vmatpush3.bf16.xpose.msra.mxu1 %v1216_v23  ;;  %2578 = vmatprep.mubr.msk.bf16.mxu1 %vm2819_vm0, %v2818_v0 }
 0x1a7   : > { %2588 = vmatprep.subr.bf16.mxu1 %v2818_v0 }
 0x1ad   : > { %2579 = vmatmul.mubr.msk.bf16.vlgmr.msra.gmra.mrb[16].mxu1 %vm875_vm2, %v1209_v24 }
 0x1ae   : > { %2592 = vmatprep.mubr.msk.bf16.mxu1 %vm2819_vm0, %v2818_v0 }
 0x268   : > { %v916_v26 = vpop.f32.mrb[4].mxu1 }
 0x269   : > { %v923_v27 = vsel %vm922_vm3, %v916_v26, -1e+09  ;;  %v2544_v28 = vpop.f32.mrb[5].mxu1 }
 0x26a   : > { %v919_v29 = vpop.f32.mrb[6].mxu1  ;;  %v924_v30 = vsel %vm875_vm2, %v923_v27, -inf }
 0x26b   : > { %925 = vmax.xlane.f32.xlu1 %v924_v30  ;;  %v2545_v31 = vpop.f32.mrb[7].mxu1 }
 0x270   : > { %v1030_v32 = vpop.f32.mrb[8].mxu1 }
 0x271   : > { %v1036_v33 = vsel %vm922_vm3, %v1030_v32, -1e+09  ;;  %v2556_v34 = vpop.f32.mrb[9].mxu1 }
 0x272   : > { %v1033_v35 = vpop.f32.mrb[10].mxu1  ;;  %v1037_v36 = vsel %vm875_vm2, %v1036_v33, -inf }
 0x273   : > { %1038 = vmax.xlane.f32.xlu0 %v1037_v36  ;;  %v2557_v37 = vpop.f32.mrb[11].mxu1 }
 0x278   : > { %v1141_v38 = vpop.f32.mrb[12].mxu1 }
 0x279   : > { %v1147_v39 = vsel %vm922_vm3, %v1141_v38, -1e+09  ;;  %v2568_v40 = vpop.f32.mrb[13].mxu1 }
 0x27a   : > { %v1144_v41 = vpop.f32.mrb[14].mxu1  ;;  %v1148_v42 = vsel %vm875_vm2, %v1147_v39, -inf }
 0x27b   : > { %1149 = vmax.xlane.f32.xlu0 %v1148_v42  ;;  %v2569_v43 = vpop.f32.mrb[15].mxu1 }
 0x280   : > { %v1252_v44 = vpop.f32.mrb[16].mxu1 }
 0x281   : > { %v1258_v45 = vsel %vm922_vm3, %v1252_v44, -1e+09  ;;  %v2580_v46 = vpop.f32.mrb[17].mxu1 }
 0x282   : > { %v1255_v47 = vpop.f32.mrb[18].mxu1  ;;  %v1259_v48 = vsel %vm875_vm2, %v1258_v45, -inf }
 0x283   : > { %1260 = vmax.xlane.f32.xlu1 %v1259_v48  ;;  %v2581_v49 = vpop.f32.mrb[19].mxu1 }
 0x2f8   : > { %v926_v50 = vpop.xlane.xlu1 %925 }
 0x2f9   : > { %v927_v51 = vsub.f32 %v923_v27, %v926_v50 }
 0x2fb   : > { %v928_v52 = vmul.f32 1.442695, %v927_v51 }
 0x2fd   : > { %2739 = vpow2.f32 %v928_v52 }
 0x300   : > { %v1039_v53 = vpop.xlane.xlu0 %1038 }
 0x301   : > { %v1040_v54 = vsub.f32 %v1036_v33, %v1039_v53 }
 0x303   : > { %v1041_v55 = vmul.f32 1.442695, %v1040_v54 }
 0x305   : > { %2741 = vpow2.f32 %v1041_v55 }
 0x307   : > { %v2740_v56 = vpop.eup %2739 }
 0x308   : > { %v1150_v57 = vpop.xlane.xlu0 %1149  ;;  %v930_v58 = vsel %vm875_vm2, %v2740_v56, 0.0 }
 0x309   : > { %v1151_v59 = vsub.f32 %v1147_v39, %v1150_v57  ;;  %931 = vadd.xlane.f32.xlu0 %v930_v58 }
 0x30b   : > { %v1152_v60 = vmul.f32 1.442695, %v1151_v59 }
 0x30d   : > { %2743 = vpow2.f32 %v1152_v60 }
 0x30f   : > { %v2742_v61 = vpop.eup %2741 }
 0x310   : > { %v1043_v62 = vsel %vm875_vm2, %v2742_v61, 0.0  ;;  %v1261_v2 = vpop.xlane.xlu1 %1260 }
 0x311   : > { %1044 = vadd.xlane.f32.xlu1 %v1043_v62  ;;  %v1262_v4 = vsub.f32 %v1258_v45, %v1261_v2 }
 0x313   : > { %v1263_v5 = vmul.f32 1.442695, %v1262_v4 }
 0x315   : > { %2745 = vpow2.f32 %v1263_v5 }
 0x317   : > { %v2744_v63 = vpop.eup %2743 }
 0x318   : > { %v1154_v1 = vsel %vm875_vm2, %v2744_v63, 0.0 }
 0x319   : > { %1155 = vadd.xlane.f32.xlu0 %v1154_v1 }
 0x31f   : > { %v2746_v6 = vpop.eup %2745 }
 0x320   : > { %v1265_v7 = vsel %vm875_vm2, %v2746_v6, 0.0 }
 0x322   : > { %1049 = vrot.lane.b32.xlu1 %v3036_v11, %s2827_s28  ;;  %s3352_s28 = smov 24  }
 0x32f   : > { %936 = vrot.lane.b32.xlu0 %v3036_v11, %s2828_s8  ;;  %s3383_s8 = smov 88  }
 0x333   : > { %1271 = vrot.lane.b32.xlu0 %v3036_v11, %s2829_s4  ;;  %s3375_s4 = sld [smem:[#allocation11_spill]] }
 0x339   : > { %v2725_v40 = vld [vmem:[%s3375_s4] sm:$0xff]   ;;  %v2726_v41 = vld [vmem:[%s3375_s4 + $0x8] sm:$0xff]  }
 0x33a   : > { %2589 = vmatpush3.bf16.msra.mxu1 %v2725_v40 }
 0x33b   : > { %2590 = vmatprep.subr.bf16.mxu1 %v2818_v0 }
 0x33e   : > { %2591 = vmatpush3.bf16.msra.mxu1 %v2726_v41 }
 0x33f   : > { %2604 = vmatprep.subr.bf16.mxu1 %v2818_v0 }
 0x346   : > { %1266 = vadd.xlane.f32.xlu1 %v1265_v7 }
 0x357   : > { %1160 = vrot.lane.b32.xlu1 %v3036_v11, %s2830_s26  ;;  %s3376_s26 = sld [smem:[#allocation12_spill]] }
 0x35d   : > { %v2435_v57 = vld [vmem:[%s3376_s26] ss:$0 sm:$0xff]  ;;  %s3381_s26 = smov 80  }
 0x396   : > { %v932_v8 = vpop.xlane.xlu0 %931 }
 0x397   : > { %2747 = vrcp.f32 %v932_v8  ;;  %v2727_v8 = vld [vmem:[%s3333_s12] sm:$0xff]  }
 0x39e   : > { %v1045_v9 = vpop.xlane.xlu1 %1044 }
 0x39f   : > { %2749 = vrcp.f32 %v1045_v9  ;;  %v799_v9 = vld [vmem:[%s784_s29] sm:$0xff]  ;;  %s3384_s29 = smov 8  }
 0x3a1   : > { %v2748_v10 = vpop.eup %2747 }
 0x3a2   : > { %v934_v13 = vmul.f32 %v2748_v10, %v2740_v56  ;;  %v1050_v16 = vpop.permute.xlu1 %1049  ;;  %v1501_v10 = vpack.c.bf16 %v799_v9, %v799_v9 }
 0x3a3   : > { %v1055_v19 = vsel %vm941_vm4, %v1050_v16, 0 }
 0x3a4   : > { %v935_v17 = vpack.c.bf16 %v934_v13, %v934_v13  ;;  %v2730_v13 = vld [vmem:[%s3331_s10 + $0x8] sm:$0xff]  }
 0x3a6   : > { %v1156_v12 = vpop.xlane.xlu0 %1155 }
 0x3a7   : > { %2751 = vrcp.f32 %v1156_v12  ;;  %v2729_v12 = vld [vmem:[%s3331_s10] sm:$0xff]  }
 0x3a9   : > { %v2750_v18 = vpop.eup %2749 }
 0x3aa   : > { %v937_v14 = vpop.permute.xlu0 %936  ;;  %v1047_v11 = vmul.f32 %v2750_v18, %v2742_v61 }
 0x3ab   : > { %v943_v15 = vsel %vm941_vm4, %v937_v14, 0 }
 0x3ac   : > { %2547 = vmatpush3.bf16.msra.mxu0 %v943_v15  ;;  %v1048_v20 = vpack.c.bf16 %v1047_v11, %v1047_v11  ;;  %v2440_v11 = vld [vmem:[%s3330_s9] ss:$0 sm:$0xff] }
 0x3ad   : > { %2558 = vmatprep.subr.bf16.mxu0 %v2818_v0 }
 0x3ae   : > { %v1272_v26 = vpop.permute.xlu0 %1271 }
 0x3af   : > { %2549 = vmatmul.mubr.msk.bf16.vlgmr.msra.gmra.mrb[0].mxu0 %vm875_vm2, %v935_v17  ;;  %v1277_v28 = vsel %vm941_vm4, %v1272_v26, 0 }
 0x3b0   : > { %2559 = vmatpush3.bf16.msra.mxu0 %v1055_v19  ;;  %2560 = vmatprep.mubr.msk.bf16.mxu0 %vm2819_vm0, %v2818_v0 }
 0x3b1   : > { %2570 = vmatprep.subr.bf16.mxu0 %v2818_v0  ;;  %v2752_v21 = vpop.eup %2751 }
 0x3b2   : > { %v1158_v23 = vmul.f32 %v2752_v21, %v2744_v63 }
 0x3b4   : > { %v1159_v27 = vpack.c.bf16 %v1158_v23, %v1158_v23  ;;  %v2445_v23 = vld [vmem:[%s3334_s13] ss:$0 sm:$0xff] }
 0x3b7   : > { %2561 = vmatmul.mubr.msk.bf16.vlgmr.msra.gmra.mrb[4].mxu0 %vm875_vm2, %v1048_v20 }
 0x3b8   : > { %2572 = vmatprep.mubr.msk.bf16.mxu0 %vm2819_vm0, %v2818_v0 }
 0x3d3   : > { %v1267_v22 = vpop.xlane.xlu1 %1266 }
 0x3d4   : > { %2753 = vrcp.f32 %v1267_v22 }
 0x3d7   : > { %v1161_v24 = vpop.permute.xlu1 %1160 }
 0x3d8   : > { %v1166_v25 = vsel %vm941_vm4, %v1161_v24, 0 }
 0x3d9   : > { %2571 = vmatpush3.bf16.msra.mxu0 %v1166_v25 }
 0x3da   : > { %2582 = vmatprep.subr.bf16.mxu0 %v2818_v0 }
 0x3dc   : > { %2573 = vmatmul.mubr.msk.bf16.vlgmr.msra.gmra.mrb[8].mxu0 %vm875_vm2, %v1159_v27 }
 0x3dd   : > { %2583 = vmatpush3.bf16.msra.mxu0 %v1277_v28  ;;  %2584 = vmatprep.mubr.msk.bf16.mxu0 %vm2819_vm0, %v2818_v0 }
 0x3de   : > { %v2754_v29 = vpop.eup %2753  ;;  %2596 = vmatprep.subr.bf16.mxu0 %v2818_v0 }
 0x3df   : > { %v1269_v30 = vmul.f32 %v2754_v29, %v2746_v6 }
 0x3e1   : > { %v1270_v31 = vpack.c.bf16 %v1269_v30, %v1269_v30 }
 0x3e4   : > { %2585 = vmatmul.mubr.msk.bf16.vlgmr.msra.gmra.mrb[12].mxu0 %vm875_vm2, %v1270_v31  ;;  %v2441_v31 = vld [vmem:[%s3332_s11] ss:$0 sm:$0xff] }
 0x3e5   : > { %2600 = vmatprep.mubr.msk.bf16.mxu0 %vm2819_vm0, %v2818_v0  ;;  %2597 = vmatpush3.bf16.msra.mxu0 %v2729_v12 }
 0x3e6   : > { %2598 = vmatprep.subr.bf16.mxu0 %v2818_v0 }
 0x3e9   : > { %2599 = vmatpush3.bf16.msra.mxu0 %v2730_v13 }
 0x3ea   : > { %2612 = vmatprep.subr.bf16.mxu0 %v2818_v0 }
 0x482   : > { %v979_v32 = vpop.f32.mrb[0].mxu0 }
 0x483   : > { %v2550_v33 = vpop.f32.mrb[1].mxu0 }
 0x484   : > { %v982_v34 = vpop.f32.mrb[2].mxu0 }
 0x485   : > { %v2551_v35 = vpop.f32.mrb[3].mxu0 }
 0x48a   : > { %v1091_v36 = vpop.f32.mrb[4].mxu0 }
 0x48b   : > { %1320 = vrot.lane.b32.xlu1 %v1091_v36, %s3354_s1  ;;  %v2562_v37 = vpop.f32.mrb[5].mxu0  ;;  %s3378_s1 = sld [smem:[#allocation13_spill]] }
 0x48c   : > { %v1094_v38 = vpop.f32.mrb[6].mxu0 }
 0x48d   : > { %v2563_v39 = vpop.f32.mrb[7].mxu0 }
 0x491   : > { %v2439_v18 = vld [vmem:[%s3378_s1] ss:$0 sm:$0xff]  ;;  %s3380_s1 = smov 96  }
 0x4af   : > { %v1202_v42 = vpop.f32.mrb[8].mxu0 }
 0x4b0   : > { %1324 = vrot.lane.b32.xlu0 %v1202_v42, %s3353_s30  ;;  %v2574_v43 = vpop.f32.mrb[9].mxu0 }
 0x4b1   : > { %v1205_v44 = vpop.f32.mrb[10].mxu0 }
 0x4b2   : > { %v2575_v45 = vpop.f32.mrb[11].mxu0 }
 0x4b7   : > { %v1313_v46 = vpop.f32.mrb[12].mxu0 }
 0x4b8   : > { %1328 = vrot.lane.b32.xlu1 %v1313_v46, %s3352_s28  ;;  %v2586_v47 = vpop.f32.mrb[13].mxu0  ;;  %s796_s28 = scalar_lea.vmem %s3345_s24, %s3012_s27 }
 0x4b9   : > { %v1316_v48 = vpop.f32.mrb[14].mxu0 }
 0x4ba   : > { %v2587_v49 = vpop.f32.mrb[15].mxu0 }
 0x4fd   : > { %v1321_v50 = vpop.permute.xlu1 %1320 }
 0x4fe   : > { %v1331_v52 = vsel %vm875_vm2, %v979_v32, %v1321_v50 }
 0x522   : > { %v1325_v51 = vpop.permute.xlu0 %1324 }
 0x523   : > { %v1333_v53 = vsel %vm1332_vm5, %v1331_v52, %v1325_v51 }
 0x52a   : > { %v1329_v54 = vpop.permute.xlu1 %1328 }
 0x52b   : > { %v1335_v55 = vsel %vm1334_vm6, %v1333_v53, %v1329_v54 }
 0x52c   : > { %v1336_v56 = vpack.c.bf16 %v1335_v55, %v1335_v55 }
 0x52e   : > { %2593 = vmatmul.mubr.msk.bf16.vlgmr.msra.gmra.mrb[20].mxu1 %vm824_vm1, %v1336_v56 }
 0x52f   : > { %2608 = vmatprep.mubr.msk.bf16.mxu1 %vm2819_vm0, %v2818_v0  ;;  %2605 = vmatpush3.bf16.msra.mxu1 %v2727_v8 }
 0x530   : > { %2606 = vmatprep.subr.bf16.mxu1 %v2818_v0 }
 0x601   : > { %v1397_v58 = vpop.f32.mrb[20].mxu1 }
 0x602   : > { %v1398_v59 = vadd.f32 %v2435_v57, %v1397_v58  ;;  %v2594_v60 = vpop.f32.mrb[21].mxu1 }
 0x603   : > { %v1400_v61 = vpop.f32.mrb[22].mxu1 }
 0x604   : > { %v2595_v62 = vpop.f32.mrb[23].mxu1  ;;  %v1403_v63 = vadd.f32 %v1398_v59, %v3024_v3  ;;  %v2728_v3 = vld [vmem:[%s3333_s12 + $0x8] sm:$0xff]  }
 0x605   : > { %2607 = vmatpush3.bf16.msra.mxu1 %v2728_v3 }
 0x606   : > { %v1406_v1 = vsel %vm824_vm1, %v1403_v63, 0.0  ;;  %2618 = vmatprep.subr.bf16.mxu1 %v2818_v0 }
 0x607   : > { %1407 = vadd.xlane.f32.xlu0 %v1406_v1 }
 0x608   : > { %2609 = vmatmul.mubr.msk.bf16.vlgmr.msra.gmra.mrb[24].mxu1 %vm824_vm1, %v1501_v10 }
 0x609   : > { %2620 = vmatprep.mubr.msk.bf16.mxu1 %vm2819_vm0, %v2818_v0 }
 0x694   : > { %v1408_v2 = vpop.xlane.xlu0 %1407 }
 0x695   : > { %v1410_v4 = vmul.f32 0.03125, %v1408_v2 }
 0x697   : > { %v1411_v5 = vsub.f32 %v1403_v63, %v1410_v4 }
 0x699   : > { %v1412_v6 = vmul.f32 %v1411_v5, %v1411_v5 }
 0x69b   : > { %v1413_v7 = vsel %vm824_vm1, %v1412_v6, 0.0 }
 0x69c   : > { %1414 = vadd.xlane.f32.xlu1 %v1413_v7 }
 0x6db   : > { %v1562_v24 = vpop.f32.mrb[24].mxu1 }
 0x6dc   : > { %v1563_v25 = vadd.f32 %v2445_v23, %v1562_v24  ;;  %v2610_v26 = vpop.f32.mrb[25].mxu1 }
 0x6dd   : > { %v1565_v27 = vpop.f32.mrb[26].mxu1 }
 0x6de   : > { %v3171_v28 = vpack.c.bf16 %v1563_v25, %v1563_v25  ;;  %v2611_v29 = vpop.f32.mrb[27].mxu1 }
 0x6e0   : > { %1684 = vrot.lane.b32.xlu0 %v3171_v28, %s2821_s6  ;;  %v1576_v30 = vsel %vm875_vm2, %v3171_v28, 0 }
 0x6e4   : > { %1795 = vrot.lane.b32.xlu0 %v3171_v28, %s2824_s7 }
 0x6e8   : > { %1906 = vrot.lane.b32.xlu0 %v3171_v28, %s2826_s3 }
 0x729   : > { %v1415_v14 = vpop.xlane.xlu1 %1414 }
 0x72a   : > { %v1416_v15 = vmul.f32 0.03125, %v1415_v14 }
 0x72c   : > { %v1417_v16 = vadd.f32 1e-05, %v1416_v15 }
 0x72e   : > { %2755 = vrsqrt.f32 %v1417_v16 }
 0x738   : > { %v2756_v17 = vpop.eup %2755 }
 0x739   : > { %v1419_v19 = vmul.f32 %v2756_v17, %v1411_v5 }
 0x73b   : > { %v1426_v20 = vmul.f32 %v2439_v18, %v1419_v19 }
 0x73d   : > { %v3161_v21 = vadd.f32 %v2440_v11, %v1426_v20 }
 0x73f   : > { %v1434_v22 = vpack.c.bf16 %v3161_v21, %v3161_v21 }
 0x741   : > { %2601 = vmatmul.mubr.msk.bf16.vlgmr.msra.gmra.mrb[16].mxu0 %vm824_vm1, %v1434_v22 }
 0x742   : > { %2614 = vmatprep.mubr.msk.bf16.mxu0 %vm2819_vm0, %v2818_v0  ;;  %2613 = vmatpush3.bf16.xpose.msra.mxu0 %v1576_v30 }
 0x743   : > { %2624 = vmatprep.subr.bf16.mxu0 %v2818_v0 }
 0x752   : > { %v1685_v38 = vpop.permute.xlu0 %1684 }
 0x753   : > { %v1690_v40 = vsel %vm875_vm2, %v1685_v38, 0 }
 0x756   : > { %v1796_v41 = vpop.permute.xlu0 %1795 }
 0x757   : > { %v1801_v43 = vsel %vm875_vm2, %v1796_v41, 0 }
 0x75a   : > { %v1907_v44 = vpop.permute.xlu0 %1906 }
 0x75b   : > { %v1912_v46 = vsel %vm875_vm2, %v1907_v44, 0 }
 0x814   : > { %v1495_v32 = vpop.f32.mrb[16].mxu0 }
 0x815   : > { %v1496_v33 = vadd.f32 %v2441_v31, %v1495_v32  ;;  %v2602_v34 = vpop.f32.mrb[17].mxu0 }
 0x816   : > { %v1498_v35 = vpop.f32.mrb[18].mxu0 }
 0x817   : > { %v1569_v36 = vmul.f32 0.35355338, %v1496_v33  ;;  %v2603_v37 = vpop.f32.mrb[19].mxu0 }
 0x819   : > { %v1570_v39 = vpack.c.bf16 %v1569_v36, %v1569_v36 }
 0x81b   : > { %1682 = vrot.lane.b32.xlu1 %v1570_v39, %s2821_s6  ;;  %2615 = vmatmul.mubr.msk.bf16.vlgmr.msra.gmra.mrb[20].mxu0 %vm875_vm2, %v1570_v39 }
 0x81c   : > { %2625 = vmatpush3.bf16.xpose.msra.mxu0 %v1690_v40  ;;  %2626 = vmatprep.mubr.msk.bf16.mxu0 %vm2819_vm0, %v2818_v0 }
 0x81d   : > { %2636 = vmatprep.subr.bf16.mxu0 %v2818_v0 }
 0x81f   : > { %1793 = vrot.lane.b32.xlu1 %v1570_v39, %s2824_s7 }
 0x823   : > { %1904 = vrot.lane.b32.xlu1 %v1570_v39, %s2826_s3  ;;  %s3379_s3 = sld [smem:[#allocation8_spill]] }
 0x829   : > { %s792_s0 = scalar_lea.vmem %s3379_s3, %s3012_s27  ;;  %s3385_s3 = smov 16  }
 0x82a   : > { %v1568_v48 = vld [vmem:[%s792_s0] sm:$0xff]  ;;  %s3386_s0 = smov 24  }
 0x82b   : > { %vm1618_vm7 = vcmp.gt.s32.totalorder %v1568_v48, 0 }
 0x88d   : > { %v1683_v42 = vpop.permute.xlu1 %1682 }
 0x88e   : > { %2627 = vmatmul.mubr.msk.bf16.vlgmr.msra.gmra.mrb[24].mxu0 %vm875_vm2, %v1683_v42 }
 0x88f   : > { %2637 = vmatpush3.bf16.xpose.msra.mxu0 %v1801_v43  ;;  %2638 = vmatprep.mubr.msk.bf16.mxu0 %vm2819_vm0, %v2818_v0 }
 0x890   : > { %2648 = vmatprep.subr.bf16.mxu0 %v2818_v0 }
 0x891   : > { %v1794_v45 = vpop.permute.xlu1 %1793 }
 0x895   : > { %v1905_v47 = vpop.permute.xlu1 %1904 }
 0x896   : > { %2639 = vmatmul.mubr.msk.bf16.vlgmr.msra.gmra.mrb[28].mxu0 %vm875_vm2, %v1794_v45 }
 0x897   : > { %2649 = vmatpush3.bf16.xpose.msra.mxu0 %v1912_v46  ;;  %2650 = vmatprep.mubr.msk.bf16.mxu0 %vm2819_vm0, %v2818_v0 }
 0x898   : > { %2660 = vmatprep.subr.bf16.mxu0 %v2818_v0 }
 0x89e   : > { %2651 = vmatmul.mubr.msk.bf16.vlgmr.msra.gmra.mrb[32].mxu0 %vm875_vm2, %v1905_v47 }
 0x89f   : > { %2664 = vmatprep.mubr.msk.bf16.mxu0 %vm2819_vm0, %v2818_v0 }
 0x8ee   : > { %v1612_v49 = vpop.f32.mrb[20].mxu0 }
 0x8ef   : > { %v1619_v50 = vsel %vm1618_vm7, %v1612_v49, -1e+09  ;;  %v2616_v51 = vpop.f32.mrb[21].mxu0 }
 0x8f0   : > { %v1615_v52 = vpop.f32.mrb[22].mxu0  ;;  %v1620_v53 = vsel %vm875_vm2, %v1619_v50, -inf }
 0x8f1   : > { %1621 = vmax.xlane.f32.xlu0 %v1620_v53  ;;  %v2617_v54 = vpop.f32.mrb[23].mxu0 }
 0x961   : > { %v1726_v55 = vpop.f32.mrb[24].mxu0 }
 0x962   : > { %v1732_v56 = vsel %vm1618_vm7, %v1726_v55, -1e+09  ;;  %v2628_v57 = vpop.f32.mrb[25].mxu0 }
 0x963   : > { %v1729_v58 = vpop.f32.mrb[26].mxu0  ;;  %v1733_v59 = vsel %vm875_vm2, %v1732_v56, -inf }
 0x964   : > { %1734 = vmax.xlane.f32.xlu1 %v1733_v59  ;;  %v2629_v60 = vpop.f32.mrb[27].mxu0  ;;  %v2731_v59 = vld [vmem:[%s3335_s14] sm:$0xff]  }
 0x965   : > { %2661 = vmatpush3.bf16.msra.mxu0 %v2731_v59 }
 0x966   : > { %2662 = vmatprep.subr.bf16.mxu0 %v2818_v0 }
 0x969   : > { %v1837_v61 = vpop.f32.mrb[28].mxu0 }
 0x96a   : > { %v1843_v62 = vsel %vm1618_vm7, %v1837_v61, -1e+09  ;;  %v2640_v63 = vpop.f32.mrb[29].mxu0 }
 0x96b   : > { %v1840_v1 = vpop.f32.mrb[30].mxu0  ;;  %v1844_v2 = vsel %vm875_vm2, %v1843_v62, -inf }
 0x96c   : > { %1845 = vmax.xlane.f32.xlu0 %v1844_v2  ;;  %v2641_v4 = vpop.f32.mrb[31].mxu0  ;;  %v2732_v1 = vld [vmem:[%s3335_s14 + $0x8] sm:$0xff]  }
 0x96d   : > { %2663 = vmatpush3.bf16.msra.mxu0 %v2732_v1 }
 0x96e   : > { %2676 = vmatprep.subr.bf16.mxu0 %v2818_v0 }
 0x971   : > { %v1948_v5 = vpop.f32.mrb[32].mxu0 }
 0x972   : > { %v1954_v6 = vsel %vm1618_vm7, %v1948_v5, -1e+09  ;;  %v2652_v7 = vpop.f32.mrb[33].mxu0 }
 0x973   : > { %v1951_v8 = vpop.f32.mrb[34].mxu0  ;;  %v1955_v3 = vsel %vm875_vm2, %v1954_v6, -inf }
 0x974   : > { %1956 = vmax.xlane.f32.xlu0 %v1955_v3  ;;  %v2653_v9 = vpop.f32.mrb[35].mxu0 }
 0x97e   : > { %v1622_v10 = vpop.xlane.xlu0 %1621 }
 0x97f   : > { %v1623_v12 = vsub.f32 %v1619_v50, %v1622_v10 }
 0x981   : > { %v1624_v13 = vmul.f32 1.442695, %v1623_v12 }
 0x983   : > { %2757 = vpow2.f32 %v1624_v13 }
 0x98d   : > { %v2758_v14 = vpop.eup %2757 }
 0x98e   : > { %v1626_v15 = vsel %vm875_vm2, %v2758_v14, 0.0 }
 0x98f   : > { %1627 = vadd.xlane.f32.xlu1 %v1626_v15 }
 0x9a0   : > { %1633 = vrot.lane.b32.xlu1 %v3171_v28, %s3380_s1 }
 0x9f1   : > { %v1735_v16 = vpop.xlane.xlu1 %1734 }
 0x9f2   : > { %v1736_v17 = vsub.f32 %v1732_v56, %v1735_v16 }
 0x9f4   : > { %v1737_v18 = vmul.f32 1.442695, %v1736_v17 }
 0x9f6   : > { %2759 = vpow2.f32 %v1737_v18  ;;  %v2457_v18 = vld [vmem:[%s3336_s15] ss:$0 sm:$0xff] }
 0x9f9   : > { %v1846_v19 = vpop.xlane.xlu0 %1845 }
 0x9fa   : > { %v1847_v11 = vsub.f32 %v1843_v62, %v1846_v19 }
 0x9fc   : > { %v1848_v20 = vmul.f32 1.442695, %v1847_v11 }
 0x9fe   : > { %2761 = vpow2.f32 %v1848_v20 }
 0xa00   : > { %v2760_v22 = vpop.eup %2759 }
 0xa01   : > { %v1957_v23 = vpop.xlane.xlu0 %1956  ;;  %v1739_v24 = vsel %vm875_vm2, %v2760_v22, 0.0 }
 0xa02   : > { %v1958_v25 = vsub.f32 %v1954_v6, %v1957_v23  ;;  %1740 = vadd.xlane.f32.xlu0 %v1739_v24 }
 0xa04   : > { %v1959_v26 = vmul.f32 1.442695, %v1958_v25 }
 0xa06   : > { %2763 = vpow2.f32 %v1959_v26 }
 0xa08   : > { %v2762_v27 = vpop.eup %2761 }
 0xa09   : > { %v1850_v29 = vsel %vm875_vm2, %v2762_v27, 0.0 }
 0xa0a   : > { %1851 = vadd.xlane.f32.xlu1 %v1850_v29 }
 0xa10   : > { %v2764_v30 = vpop.eup %2763 }
 0xa11   : > { %v1961_v31 = vsel %vm875_vm2, %v2764_v30, 0.0 }
 0xa12   : > { %1962 = vadd.xlane.f32.xlu0 %v1961_v31 }
 0xa1b   : > { %1856 = vrot.lane.b32.xlu1 %v3171_v28, %s3381_s26 }
 0xa1c   : > { %v1628_v32 = vpop.xlane.xlu1 %1627 }
 0xa1d   : > { %2765 = vrcp.f32 %v1628_v32  ;;  %v2733_v32 = vld [vmem:[%s3339_s18] sm:$0xff]  }
 0xa1f   : > { %1967 = vrot.lane.b32.xlu1 %v3171_v28, %s3382_s2 }
 0xa20   : > { %v1634_v33 = vpop.permute.xlu1 %1633 }
 0xa21   : > { %v1639_v34 = vsel %vm941_vm4, %v1634_v33, 0  ;;  %v2734_v33 = vld [vmem:[%s3339_s18 + $0x8] sm:$0xff]  }
 0xa22   : > { %2619 = vmatpush3.bf16.msra.mxu1 %v1639_v34  ;;  %v2736_v34 = vld [vmem:[%s3341_s20 + $0x8] sm:$0xff]  }
 0xa23   : > { %2630 = vmatprep.subr.bf16.mxu1 %v2818_v0 }
 0xa27   : > { %v2766_v35 = vpop.eup %2765 }
 0xa28   : > { %v1630_v36 = vmul.f32 %v2766_v35, %v2758_v14  ;;  %1745 = vrot.lane.b32.xlu0 %v3171_v28, %s3383_s8 }
 0xa2a   : > { %v1631_v37 = vpack.c.bf16 %v1630_v36, %v1630_v36 }
 0xa2c   : > { %2621 = vmatmul.mubr.msk.bf16.vlgmr.msra.gmra.mrb[28].mxu1 %vm875_vm2, %v1631_v37 }
 0xa2d   : > { %2632 = vmatprep.mubr.msk.bf16.mxu1 %vm2819_vm0, %v2818_v0 }
 0xa8f   : > { %v1741_v38 = vpop.xlane.xlu0 %1740 }
 0xa90   : > { %2767 = vrcp.f32 %v1741_v38 }
 0xa97   : > { %v1852_v39 = vpop.xlane.xlu1 %1851 }
 0xa98   : > { %2769 = vrcp.f32 %v1852_v39  ;;  %v2461_v39 = vld [vmem:[%s3337_s16] ss:$0 sm:$0xff] }
 0xa9a   : > { %v2768_v40 = vpop.eup %2767 }
 0xa9b   : > { %v1743_v42 = vmul.f32 %v2768_v40, %v2760_v22  ;;  %v1857_v45 = vpop.permute.xlu1 %1856 }
 0xa9c   : > { %v1862_v47 = vsel %vm941_vm4, %v1857_v45, 0  ;;  %v2737_v45 = vld [vmem:[%s3341_s20 + $0x10] sm:$0xff]  }
 0xa9d   : > { %v1744_v28 = vpack.c.bf16 %v1743_v42, %v1743_v42 }
 0xa9f   : > { %v1963_v41 = vpop.xlane.xlu0 %1962  ;;  %v1968_v49 = vpop.permute.xlu1 %1967 }
 0xaa0   : > { %2771 = vrcp.f32 %v1963_v41  ;;  %v1973_v52 = vsel %vm941_vm4, %v1968_v49, 0  ;;  %v2462_v41 = vld [vmem:[%s3338_s17] ss:$0 sm:$0xff] }
 0xaa2   : > { %v2770_v46 = vpop.eup %2769 }
 0xaa3   : > { %v1746_v43 = vpop.permute.xlu0 %1745  ;;  %v1854_v48 = vmul.f32 %v2770_v46, %v2762_v27  ;;  %v2463_v46 = vld [vmem:[%s3340_s19] ss:$0 sm:$0xff] }
 0xaa4   : > { %v1751_v44 = vsel %vm941_vm4, %v1746_v43, 0 }
 0xaa5   : > { %2631 = vmatpush3.bf16.msra.mxu1 %v1751_v44  ;;  %v1855_v50 = vpack.c.bf16 %v1854_v48, %v1854_v48 }
 0xaa6   : > { %2642 = vmatprep.subr.bf16.mxu1 %v2818_v0 }
 0xaa8   : > { %2633 = vmatmul.mubr.msk.bf16.vlgmr.msra.gmra.mrb[32].mxu1 %vm875_vm2, %v1744_v28  ;;  %v2738_v28 = vld [vmem:[%s3341_s20 + $0x18] sm:$0xff]  }
 0xaa9   : > { %2643 = vmatpush3.bf16.msra.mxu1 %v1862_v47  ;;  %2644 = vmatprep.mubr.msk.bf16.mxu1 %vm2819_vm0, %v2818_v0 }
 0xaaa   : > { %2654 = vmatprep.subr.bf16.mxu1 %v2818_v0  ;;  %v2772_v51 = vpop.eup %2771 }
 0xaab   : > { %v1965_v53 = vmul.f32 %v2772_v51, %v2764_v30 }
 0xaad   : > { %v1966_v54 = vpack.c.bf16 %v1965_v53, %v1965_v53 }
 0xab0   : > { %2645 = vmatmul.mubr.msk.bf16.vlgmr.msra.gmra.mrb[36].mxu1 %vm875_vm2, %v1855_v50 }
 0xab1   : > { %2655 = vmatpush3.bf16.msra.mxu1 %v1973_v52  ;;  %2656 = vmatprep.mubr.msk.bf16.mxu1 %vm2819_vm0, %v2818_v0 }
 0xab2   : > { %2668 = vmatprep.subr.bf16.mxu1 %v2818_v0 }
 0xab8   : > { %2657 = vmatmul.mubr.msk.bf16.vlgmr.msra.gmra.mrb[40].mxu1 %vm875_vm2, %v1966_v54 }
 0xab9   : > { %2672 = vmatprep.mubr.msk.bf16.mxu1 %vm2819_vm0, %v2818_v0  ;;  %2669 = vmatpush3.bf16.msra.mxu1 %v2733_v32 }
 0xaba   : > { %2670 = vmatprep.subr.bf16.mxu1 %v2818_v0 }
 0xabd   : > { %2671 = vmatpush3.bf16.msra.mxu1 %v2734_v33 }
 0xaff   : > { %v1675_v55 = vpop.f32.mrb[28].mxu1 }
 0xb00   : > { %v2622_v56 = vpop.f32.mrb[29].mxu1 }
 0xb01   : > { %v1678_v57 = vpop.f32.mrb[30].mxu1 }
 0xb02   : > { %v2623_v58 = vpop.f32.mrb[31].mxu1 }
 0xb7b   : > { %v1787_v60 = vpop.f32.mrb[32].mxu1 }
 0xb7c   : > { %2016 = vrot.lane.b32.xlu0 %v1787_v60, %s3384_s29  ;;  %v2634_v61 = vpop.f32.mrb[33].mxu1 }
 0xb7d   : > { %v1790_v62 = vpop.f32.mrb[34].mxu1 }
 0xb7e   : > { %v2635_v63 = vpop.f32.mrb[35].mxu1 }
 0xb83   : > { %v1898_v2 = vpop.f32.mrb[36].mxu1 }
 0xb84   : > { %2020 = vrot.lane.b32.xlu1 %v1898_v2, %s3385_s3  ;;  %v2646_v4 = vpop.f32.mrb[37].mxu1 }
 0xb85   : > { %v1901_v5 = vpop.f32.mrb[38].mxu1 }
 0xb86   : > { %v2647_v6 = vpop.f32.mrb[39].mxu1 }
 0xb8b   : > { %v2009_v7 = vpop.f32.mrb[40].mxu1 }
 0xb8c   : > { %2024 = vrot.lane.b32.xlu0 %v2009_v7, %s3386_s0  ;;  %v2658_v8 = vpop.f32.mrb[41].mxu1 }
 0xb8d   : > { %v2012_v3 = vpop.f32.mrb[42].mxu1  ;;  %v2473_v8 = vld [vmem:[%s3343_s22] ss:$0 sm:$0xff] }
 0xb8e   : > { %v2659_v9 = vpop.f32.mrb[43].mxu1 }
 0xb8f   : > { %v2474_v9 = vld [vmem:[#allocation2] ss:$0 sm:$0xff] }
 0xbee   : > { %v2017_v10 = vpop.permute.xlu0 %2016 }
 0xbef   : > { %v2027_v13 = vsel %vm875_vm2, %v1675_v55, %v2017_v10 }
 0xbf6   : > { %v2021_v12 = vpop.permute.xlu1 %2020 }
 0xbf7   : > { %v2028_v14 = vsel %vm1332_vm5, %v2027_v13, %v2021_v12 }
 0xbfe   : > { %v2025_v15 = vpop.permute.xlu0 %2024 }
 0xbff   : > { %v2029_v16 = vsel %vm1334_vm6, %v2028_v14, %v2025_v15 }
 0xc00   : > { %v2030_v17 = vpack.c.bf16 %v2029_v16, %v2029_v16 }
 0xc02   : > { %2665 = vmatmul.mubr.msk.bf16.vlgmr.msra.gmra.mrb[36].mxu0 %vm824_vm1, %v2030_v17 }
 0xc03   : > { %2684 = vmatprep.mubr.msk.bf16.mxu0 %vm2819_vm0, %v2818_v0 }
 0xcd5   : > { %v2091_v19 = vpop.f32.mrb[36].mxu0 }
 0xcd6   : > { %v2092_v11 = vadd.f32 %v2457_v18, %v2091_v19  ;;  %v2666_v20 = vpop.f32.mrb[37].mxu0 }
 0xcd7   : > { %v2094_v22 = vpop.f32.mrb[38].mxu0 }
 0xcd8   : > { %v2667_v23 = vpop.f32.mrb[39].mxu0  ;;  %v2097_v24 = vadd.f32 %v2092_v11, %v3161_v21  ;;  %v2735_v21 = vld [vmem:[%s3341_s20] sm:$0xff]  }
 0xcd9   : > { %2677 = vmatpush3.bf16.msra.mxu0 %v2735_v21 }
 0xcda   : > { %v2100_v25 = vsel %vm824_vm1, %v2097_v24, 0.0  ;;  %2678 = vmatprep.subr.bf16.mxu0 %v2818_v0 }
 0xcdb   : > { %2101 = vadd.xlane.f32.xlu1 %v2100_v25 }
 0xcdd   : > { %2679 = vmatpush3.bf16.msra.mxu0 %v2736_v34 }
 0xcde   : > { %2680 = vmatprep.subr.bf16.mxu0 %v2818_v0 }
 0xce1   : > { %2681 = vmatpush3.bf16.msra.mxu0 %v2737_v45 }
 0xce2   : > { %2682 = vmatprep.subr.bf16.mxu0 %v2818_v0  ;;  %v2467_v0 = vld [vmem:[%s3342_s21] ss:$0 sm:$0xff] }
 0xce5   : > { %2683 = vmatpush3.bf16.msra.mxu0 %v2738_v28 }
 0xd68   : > { %v2102_v26 = vpop.xlane.xlu1 %2101 }
 0xd69   : > { %v2103_v27 = vmul.f32 0.03125, %v2102_v26 }
 0xd6b   : > { %v2104_v29 = vsub.f32 %v2097_v24, %v2103_v27 }
 0xd6d   : > { %v2105_v30 = vmul.f32 %v2104_v29, %v2104_v29 }
 0xd6f   : > { %v2106_v31 = vsel %vm824_vm1, %v2105_v30, 0.0 }
 0xd70   : > { %2107 = vadd.xlane.f32.xlu0 %v2106_v31 }
 0xdfd   : > { %v2108_v35 = vpop.xlane.xlu0 %2107 }
 0xdfe   : > { %v2109_v36 = vmul.f32 0.03125, %v2108_v35 }
 0xe00   : > { %v2110_v37 = vadd.f32 1e-05, %v2109_v36 }
 0xe02   : > { %2773 = vrsqrt.f32 %v2110_v37 }
 0xe0c   : > { %v2774_v38 = vpop.eup %2773 }
 0xe0d   : > { %v2112_v40 = vmul.f32 %v2774_v38, %v2104_v29 }
 0xe0f   : > { %v2119_v42 = vmul.f32 %v2461_v39, %v2112_v40 }
 0xe11   : > { %v2126_v43 = vadd.f32 %v2462_v41, %v2119_v42 }
 0xe13   : > { %v2127_v44 = vpack.c.bf16 %v2126_v43, %v2126_v43 }
 0xe15   : > { %2673 = vmatmul.mubr.msk.bf16.vlgmr.msra.gmra.mrb[44].mxu1 %vm824_vm1, %v2127_v44 }
 0xee8   : > { %v2188_v47 = vpop.f32.mrb[44].mxu1 }
 0xee9   : > { %v2189_v48 = vadd.f32 %v2463_v46, %v2188_v47  ;;  %v2674_v49 = vpop.f32.mrb[45].mxu1 }
 0xeea   : > { %v2191_v50 = vpop.f32.mrb[46].mxu1 }
 0xeeb   : > { %v2194_v51 = vmax.f32 %v2189_v48, 0.0  ;;  %v2675_v52 = vpop.f32.mrb[47].mxu1 }
 0xeed   : > { %v2195_v53 = vpack.c.bf16 %v2194_v51, %v2194_v51 }
 0xeef   : > { %2685 = vmatmul.mubr.msk.bf16.vlgmr.msra.gmra.mrb[40].mxu0 %vm2235_vm8, %v2195_v53 }
 0xfc2   : > { %v2273_v54 = vpop.f32.mrb[40].mxu0 }
 0xfc3   : > { %v2274_v55 = vadd.f32 %v2467_v0, %v2273_v54  ;;  %v2686_v56 = vpop.f32.mrb[41].mxu0 }
 0xfc4   : > { %v2276_v57 = vpop.f32.mrb[42].mxu0 }
 0xfc5   : > { %v2687_v58 = vpop.f32.mrb[43].mxu0  ;;  %v2279_v59 = vadd.f32 %v2274_v55, %v2126_v43 }
 0xfc7   : > { %v2282_v60 = vsel %vm824_vm1, %v2279_v59, 0.0 }
 0xfc8   : > { %2283 = vadd.xlane.f32.xlu0 %v2282_v60 }
0x1055   : > { %v2284_v61 = vpop.xlane.xlu0 %2283 }
0x1056   : > { %v2285_v62 = vmul.f32 0.03125, %v2284_v61 }
0x1058   : > { %v2286_v63 = vsub.f32 %v2279_v59, %v2285_v62 }
0x105a   : > { %v2287_v1 = vmul.f32 %v2286_v63, %v2286_v63 }
0x105c   : > { %v2288_v2 = vsel %vm824_vm1, %v2287_v1, 0.0 }
0x105d   : > { %2289 = vadd.xlane.f32.xlu1 %v2288_v2 }
0x10ea   : > { %v2290_v4 = vpop.xlane.xlu1 %2289 }
0x10eb   : > { %v2291_v5 = vmul.f32 0.03125, %v2290_v4 }
0x10ed   : > { %v2292_v6 = vadd.f32 1e-05, %v2291_v5 }
0x10ef   : > { %2775 = vrsqrt.f32 %v2292_v6 }
0x10f9   : > { %v2776_v7 = vpop.eup %2775 }
0x10fa   : > { %v2294_v3 = vmul.f32 %v2776_v7, %v2286_v63 }
0x10fc   : > { %v2301_v10 = vmul.f32 %v2473_v8, %v2294_v3 }
0x10fe   : > { %v2308_v12 = vadd.f32 %v2474_v9, %v2301_v10 }
0x1100   : > { %2309 = vst.msk [vmem:[%s796_s28] sm:$0xff] %vm824_vm1, %v2308_v12 }
0x1101 PF: > { %s35_s5 = sadd.s32 1, %s2815_s5  }
0x1102   : > { %p32_p2 = scmp.ge.s32.totalorder %s35_s5, 4  }
0x1104   :  { %34 = sbr.rel (!%p32_p2) target bundleno = 11 (0xb), region = 160 }
0x110b   :  { %2329 = vsyncpa [#allocation3], 1 }
0x110c   :  { %2331 = vsyncpa [#allocation3 + $0x1], 1 }

// kernel: transformer_forward.7
= control target key start
LH: loop header
LB: loop body
LE: loop exit
PB: predicated region body
PF: predicated region fallthrough
CT: control target
= control target key end

     0   :  { %s3214_s0 = inlined_call_operand.vmem [shape: f32[2,8,32], index: 0, kind: input, shape index: {}]   ;;  %s3215_s1 = inlined_call_operand.vmem [shape: f32[2,8,32], index: 1, kind: input, shape index: {}]   ;;  %s3216_s2 = inlined_call_operand.vmem [shape: s32[2,8,8], index: 2, kind: input, shape index: {}]   ;;  %s3217_s3 = inlined_call_operand.vmem [shape: s32[2,8,8], index: 3, kind: input, shape index: {}]   ;;  %s3218_s4 = inlined_call_operand.vmem [shape: bf16[32,96], index: 4, kind: input, shape index: {}]   ;;  %s3219_s5 = inlined_call_operand.vmem [shape: f32[1,96], index: 5, kind: input, shape index: {}]   ;;  %s3220_s6 = inlined_call_operand.vmem [shape: bf16[32,32], index: 6, kind: input, shape index: {}]   ;;  %s3221_s7 = inlined_call_operand.vmem [shape: f32[1,32], index: 7, kind: input, shape index: {}]   ;;  %s3222_s8 = inlined_call_operand.vmem [shape: f32[1,32], index: 8, kind: input, shape index: {}]   ;;  %s3223_s9 = inlined_call_operand.vmem [shape: f32[1,32], index: 9, kind: input, shape index: {}]   ;;  %s3224_s10 = inlined_call_operand.vmem [shape: bf16[32,32], index: 10, kind: input, shape index: {}]   ;;  %s3225_s11 = inlined_call_operand.vmem [shape: f32[1,32], index: 11, kind: input, shape index: {}]   ;;  %s3226_s12 = inlined_call_operand.vmem [shape: bf16[32,64], index: 12, kind: input, shape index: {}]   ;;  %s3227_s13 = inlined_call_operand.vmem [shape: f32[1,64], index: 13, kind: input, shape index: {}]   ;;  %s3228_s14 = inlined_call_operand.vmem [shape: bf16[32,32], index: 14, kind: input, shape index: {}]   ;;  %s3229_s15 = inlined_call_operand.vmem [shape: f32[1,32], index: 15, kind: input, shape index: {}]   ;;  %s3230_s16 = inlined_call_operand.vmem [shape: f32[1,32], index: 16, kind: input, shape index: {}]   ;;  %s3231_s17 = inlined_call_operand.vmem [shape: f32[1,32], index: 17, kind: input, shape index: {}]   ;;  %s3232_s18 = inlined_call_operand.vmem [shape: bf16[32,64], index: 18, kind: input, shape index: {}]   ;;  %s3233_s19 = inlined_call_operand.vmem [shape: f32[1,64], index: 19, kind: input, shape index: {}]   ;;  %s3234_s20 = inlined_call_operand.vmem [shape: bf16[64,32], index: 20, kind: input, shape index: {}]   ;;  %s3235_s21 = inlined_call_operand.vmem [shape: f32[1,32], index: 21, kind: input, shape index: {}]   ;;  %s3236_s22 = inlined_call_operand.vmem [shape: f32[1,32], index: 22, kind: input, shape index: {}]   ;;  %s3237_s23 = inlined_call_operand.vmem [shape: f32[1,32], index: 23, kind: input, shape index: {}]   ;;  %s3238_s24 = inlined_call_operand.vmem [shape: f32[2,8,32], index: 24, kind: output, shape index: {}]  }
   0x1   :  { %3248 = sst [smem:[#allocation2_spill]] %s3214_s0 }
   0x2   :  { %3249 = sst [smem:[#allocation3_spill]] %s3215_s1 }
   0x3   :  { %3250 = sst [smem:[#allocation4_spill]] %s3216_s2 }
   0x4   :  { %3251 = sst [smem:[#allocation5_spill]] %s3217_s3 }
   0x5   :  { %3252 = sst [smem:[#allocation6_spill]] %s3218_s4 }
   0x6   :  { %3253 = sst [smem:[#allocation7_spill]] %s3219_s5  ;;  %s2888_s5 = smov 0  }
   0x7   :  { %3254 = sst [smem:[#allocation8_spill]] %s3220_s6 }
   0x8   :  { %3255 = sst [smem:[#allocation9_spill]] %s3221_s7 }
   0x9   :  { %3256 = sst [smem:[#allocation10_spill]] %s3222_s8 }
   0xa LB: > { %s2386_s26 = sadd.s32 4294967295, %s2745_s5   ;;  %p2390_p0 = scmp.ge.s32.totalorder %s2745_s5, 1  ;;  %s2745_s5 = sphi %s2888_s5, %s34_s5  }
   0xb   : > { %p688_p1 = scmp.lt.s32.totalorder %s2745_s5, 3 }
   0xd   : > { %p689_p2 = pnand %p2390_p0, %p688_p1 }
   0xe   : > { %s3257_s6 = sld [smem:[#allocation6_spill]] (!%p689_p2)  ;;  %v2747_v1 = vmov (!%p689_p2), 0.0   ;;  %vm2748_vm0 = vmmov (!%p689_p2), 0   ;;  %p764_p3 = scmp.lt.s32.totalorder (!%p689_p2), %s2386_s26, 1  ;;  %vm811_vm1 = vcmask (!%p689_p2), 261120   ;;  %vm862_vm2 = vcmask (!%p689_p2), 64512  }
   0xf   : > { %692 = sbr.rel (%p689_p2) target bundleno = 4315 (0x10db), region = 116  ;;  %2505 = vmatprep.subr.bf16.mxu1 (!%p689_p2), %v2747_v1  ;;  %2519 = vmatprep.subr.bf16.mxu0 (!%p689_p2), %v2747_v1  ;;  %s3258_s3 = sld [smem:[#allocation2_spill]] (!%p689_p2)  ;;  %vm928_vm4 = vcmask (!%p689_p2), 1043456   ;;  %vm1319_vm5 = vcmask (!%p689_p2), 130048   ;;  %vm1321_vm6 = vcmask (!%p689_p2), 195584   ;;  %vm2222_vm8 = vcmask (!%p689_p2), 523264  }
  0x10   : > { %2509 = vmatprep.mubr.msk.bf16.mxu1 (!%p689_p2), %vm2748_vm0, %v2747_v1  ;;  %2521 = vmatprep.mubr.msk.bf16.mxu0 (!%p689_p2), %vm2748_vm0, %v2747_v1  ;;  %s3259_s1 = sld [smem:[#allocation7_spill]] (!%p689_p2)  ;;  %s2750_s27 = smov (!%p689_p2), 120  }
  0x11   : > { %s3241_s28 = smov (!%p689_p2), 88   ;;  %s3246_s2 = smov (!%p689_p2), 80  }
  0x12   : > { %s2753_s29 = smov (!%p689_p2), 112   ;;  %s3242_s7 = smov (!%p689_p2), 72  }
  0x13   : > { %s2755_s30 = smov (!%p689_p2), 104   ;;  %s3260_s8 = sld [smem:[#allocation4_spill]] (!%p689_p2) }
  0x14   : > { %v2685_v0 = vld [vmem:[%s3257_s6] sm:$0xff] (!%p689_p2)   ;;  %v2686_v2 = vld [vmem:[%s3257_s6 + $0x8] sm:$0xff] (!%p689_p2)  }
  0x15   : > { %2506 = vmatpush3.bf16.msra.mxu1 (!%p689_p2), %v2685_v0 }
  0x16   : > { %2507 = vmatprep.subr.bf16.mxu1 %v2747_v1  ;;  %s3274_s26 = smov (!%p764_p3, %s2386_s26), 1  ;;  %v2396_v5 = vld [vmem:[%s3259_s1] ss:$0 sm:$0xff]  ;;  %s2756_s1 = smov 56  }
  0x17   : > { %s2909_s0 = sshll.u32 %s3274_s26, 3  ;;  %s3247_s26 = smov 96  }
  0x18   : > { %s767_s25 = scalar_lea.vmem %s3258_s3, %s2909_s0  ;;  %s2757_s3 = smov 64  }
  0x19   : > { %2508 = vmatpush3.bf16.msra.mxu1 %v2686_v2  ;;  %v2916_v3 = vld [vmem:[%s767_s25] sm:$0xff]  ;;  %s775_s4 = scalar_lea.vmem %s3260_s8, %s2909_s0  ;;  %s2758_s25 = smov 40  }
  0x1a   : > { %2513 = vmatprep.subr.bf16.mxu1 %v2747_v1  ;;  %v787_v4 = vpack.c.bf16 %v2916_v3, %v2916_v3  ;;  %v855_v25 = vld [vmem:[%s775_s4] sm:$0xff]  ;;  %s2759_s8 = smov 48   ;;  %s3245_s4 = smov 8  }
  0x1b   : > { %vm909_vm3 = vcmp.gt.s32.totalorder %v855_v25, 0 }
  0x1c   : > { %2510 = vmatmul.mubr.msk.bf16.vlgmr.msra.gmra.mrb[0].mxu1 %vm811_vm1, %v787_v4 }
  0x1d   : > { %2515 = vmatprep.mubr.msk.bf16.mxu1 %vm2748_vm0, %v2747_v1 }
  0xef   : > { %v849_v6 = vpop.f32.mrb[0].mxu1 }
  0xf0   : > { %v850_v7 = vadd.f32 %v2396_v5, %v849_v6  ;;  %v2511_v8 = vpop.f32.mrb[1].mxu1 }
  0xf1   : > { %v852_v9 = vpop.f32.mrb[2].mxu1 }
  0xf2   : > { %v856_v10 = vmul.f32 0.35355338, %v850_v7  ;;  %v2926_v11 = vpack.c.bf16 %v850_v7, %v850_v7  ;;  %v2512_v12 = vpop.f32.mrb[3].mxu1 }
  0xf4   : > { %v857_v13 = vpack.c.bf16 %v856_v10, %v856_v10  ;;  %860 = vrot.lane.b32.xlu0 %v2926_v11, %s3247_s26 }
  0xf6   : > { %973 = vrot.lane.b32.xlu1 %v857_v13, %s2750_s27 }
  0xf8   : > { %975 = vrot.lane.b32.xlu0 %v2926_v11, %s3241_s28  ;;  %s3268_s28 = smov 72  }
  0xfa   : > { %1086 = vrot.lane.b32.xlu1 %v2926_v11, %s3246_s2  ;;  %s3263_s2 = sld [smem:[#allocation3_spill]] }
  0xfc   : > { %1084 = vrot.lane.b32.xlu0 %v857_v13, %s2753_s29 }
  0xfe   : > { %1197 = vrot.lane.b32.xlu1 %v2926_v11, %s3242_s7  ;;  %s3244_s7 = smov 16  }
 0x100   : > { %1195 = vrot.lane.b32.xlu0 %v857_v13, %s2755_s30  ;;  %s771_s26 = scalar_lea.vmem %s3263_s2, %s2909_s0 }
 0x166   : > { %v861_v14 = vpop.permute.xlu0 %860 }
 0x167   : > { %v867_v15 = vsel %vm862_vm2, %v861_v14, 0 }
 0x168   : > { %2514 = vmatpush3.bf16.xpose.msra.mxu1 %v867_v15  ;;  %v974_v17 = vpop.permute.xlu1 %973 }
 0x169   : > { %2525 = vmatprep.subr.bf16.mxu1 %v2747_v1 }
 0x16a   : > { %v976_v16 = vpop.permute.xlu0 %975 }
 0x16b   : > { %v981_v18 = vsel %vm862_vm2, %v976_v16, 0 }
 0x16c   : > { %v1087_v19 = vpop.permute.xlu1 %1086 }
 0x16d   : > { %v1092_v20 = vsel %vm862_vm2, %v1087_v19, 0 }
 0x16e   : > { %v1085_v22 = vpop.permute.xlu0 %1084 }
 0x16f   : > { %2516 = vmatmul.mubr.msk.bf16.vlgmr.msra.gmra.mrb[4].mxu1 %vm862_vm2, %v857_v13 }
 0x170   : > { %2526 = vmatpush3.bf16.xpose.msra.mxu1 %v981_v18  ;;  %2527 = vmatprep.mubr.msk.bf16.mxu1 %vm2748_vm0, %v2747_v1  ;;  %v1198_v21 = vpop.permute.xlu1 %1197 }
 0x171   : > { %2537 = vmatprep.subr.bf16.mxu1 %v2747_v1  ;;  %v1203_v23 = vsel %vm862_vm2, %v1198_v21, 0 }
 0x172   : > { %v1196_v24 = vpop.permute.xlu0 %1195 }
 0x177   : > { %2528 = vmatmul.mubr.msk.bf16.vlgmr.msra.gmra.mrb[8].mxu1 %vm862_vm2, %v974_v17 }
 0x178   : > { %2538 = vmatpush3.bf16.xpose.msra.mxu1 %v1092_v20  ;;  %2539 = vmatprep.mubr.msk.bf16.mxu1 %vm2748_vm0, %v2747_v1 }
 0x179   : > { %2549 = vmatprep.subr.bf16.mxu1 %v2747_v1 }
 0x17f   : > { %2540 = vmatmul.mubr.msk.bf16.vlgmr.msra.gmra.mrb[12].mxu1 %vm862_vm2, %v1085_v22 }
 0x180   : > { %2550 = vmatpush3.bf16.xpose.msra.mxu1 %v1203_v23  ;;  %2551 = vmatprep.mubr.msk.bf16.mxu1 %vm2748_vm0, %v2747_v1 }
 0x181   : > { %2561 = vmatprep.subr.bf16.mxu1 %v2747_v1 }
 0x187   : > { %2552 = vmatmul.mubr.msk.bf16.vlgmr.msra.gmra.mrb[16].mxu1 %vm862_vm2, %v1196_v24 }
 0x188   : > { %2565 = vmatprep.mubr.msk.bf16.mxu1 %vm2748_vm0, %v2747_v1 }
 0x242   : > { %v903_v26 = vpop.f32.mrb[4].mxu1 }
 0x243   : > { %v910_v27 = vsel %vm909_vm3, %v903_v26, -1e+09  ;;  %v2517_v28 = vpop.f32.mrb[5].mxu1 }
 0x244   : > { %v906_v29 = vpop.f32.mrb[6].mxu1  ;;  %v911_v30 = vsel %vm862_vm2, %v910_v27, -inf }
 0x245   : > { %912 = vmax.xlane.f32.xlu1 %v911_v30  ;;  %v2518_v31 = vpop.f32.mrb[7].mxu1 }
 0x24a   : > { %v1017_v32 = vpop.f32.mrb[8].mxu1 }
 0x24b   : > { %v1023_v33 = vsel %vm909_vm3, %v1017_v32, -1e+09  ;;  %v2529_v34 = vpop.f32.mrb[9].mxu1 }
 0x24c   : > { %v1020_v35 = vpop.f32.mrb[10].mxu1  ;;  %v1024_v36 = vsel %vm862_vm2, %v1023_v33, -inf }
 0x24d   : > { %1025 = vmax.xlane.f32.xlu0 %v1024_v36  ;;  %v2530_v37 = vpop.f32.mrb[11].mxu1 }
 0x252   : > { %v1128_v38 = vpop.f32.mrb[12].mxu1 }
 0x253   : > { %v1134_v39 = vsel %vm909_vm3, %v1128_v38, -1e+09  ;;  %v2541_v40 = vpop.f32.mrb[13].mxu1 }
 0x254   : > { %v1131_v41 = vpop.f32.mrb[14].mxu1  ;;  %v1135_v42 = vsel %vm862_vm2, %v1134_v39, -inf }
 0x255   : > { %1136 = vmax.xlane.f32.xlu0 %v1135_v42  ;;  %v2542_v43 = vpop.f32.mrb[15].mxu1 }
 0x25a   : > { %v1239_v44 = vpop.f32.mrb[16].mxu1 }
 0x25b   : > { %v1245_v45 = vsel %vm909_vm3, %v1239_v44, -1e+09  ;;  %v2553_v46 = vpop.f32.mrb[17].mxu1 }
 0x25c   : > { %v1242_v47 = vpop.f32.mrb[18].mxu1  ;;  %v1246_v48 = vsel %vm862_vm2, %v1245_v45, -inf }
 0x25d   : > { %1247 = vmax.xlane.f32.xlu1 %v1246_v48  ;;  %v2554_v49 = vpop.f32.mrb[19].mxu1 }
 0x2d2   : > { %v913_v50 = vpop.xlane.xlu1 %912 }
 0x2d3   : > { %v914_v51 = vsub.f32 %v910_v27, %v913_v50 }
 0x2d5   : > { %v915_v52 = vmul.f32 1.442695, %v914_v51 }
 0x2d7   : > { %2701 = vpow2.f32 %v915_v52 }
 0x2da   : > { %v1026_v53 = vpop.xlane.xlu0 %1025 }
 0x2db   : > { %v1027_v54 = vsub.f32 %v1023_v33, %v1026_v53 }
 0x2dd   : > { %v1028_v55 = vmul.f32 1.442695, %v1027_v54 }
 0x2df   : > { %2703 = vpow2.f32 %v1028_v55 }
 0x2e1   : > { %v2702_v56 = vpop.eup %2701 }
 0x2e2   : > { %v1137_v57 = vpop.xlane.xlu0 %1136  ;;  %v917_v58 = vsel %vm862_vm2, %v2702_v56, 0.0 }
 0x2e3   : > { %v1138_v59 = vsub.f32 %v1134_v39, %v1137_v57  ;;  %918 = vadd.xlane.f32.xlu0 %v917_v58 }
 0x2e5   : > { %v1139_v60 = vmul.f32 1.442695, %v1138_v59 }
 0x2e7   : > { %2705 = vpow2.f32 %v1139_v60 }
 0x2e9   : > { %v2704_v61 = vpop.eup %2703 }
 0x2ea   : > { %v1030_v62 = vsel %vm862_vm2, %v2704_v61, 0.0  ;;  %v1248_v2 = vpop.xlane.xlu1 %1247 }
 0x2eb   : > { %1031 = vadd.xlane.f32.xlu1 %v1030_v62  ;;  %v1249_v4 = vsub.f32 %v1245_v45, %v1248_v2 }
 0x2ed   : > { %v1250_v5 = vmul.f32 1.442695, %v1249_v4 }
 0x2ef   : > { %2707 = vpow2.f32 %v1250_v5 }
 0x2f1   : > { %v2706_v63 = vpop.eup %2705 }
 0x2f2   : > { %v1141_v0 = vsel %vm862_vm2, %v2706_v63, 0.0 }
 0x2f3   : > { %1142 = vadd.xlane.f32.xlu0 %v1141_v0 }
 0x2f9   : > { %v2708_v6 = vpop.eup %2707 }
 0x2fa   : > { %v1252_v7 = vsel %vm862_vm2, %v2708_v6, 0.0 }
 0x2fc   : > { %1036 = vrot.lane.b32.xlu1 %v2926_v11, %s2756_s1  ;;  %s3243_s1 = smov 24  }
 0x309   : > { %923 = vrot.lane.b32.xlu0 %v2926_v11, %s2757_s3  ;;  %s3269_s3 = smov 88  }
 0x30d   : > { %1258 = vrot.lane.b32.xlu0 %v2926_v11, %s2758_s25  ;;  %s3261_s25 = sld [smem:[#allocation8_spill]] }
 0x313   : > { %v2687_v40 = vld [vmem:[%s3261_s25] sm:$0xff]   ;;  %v2688_v41 = vld [vmem:[%s3261_s25 + $0x8] sm:$0xff]  }
 0x314   : > { %2562 = vmatpush3.bf16.msra.mxu1 %v2687_v40 }
 0x315   : > { %2563 = vmatprep.subr.bf16.mxu1 %v2747_v1 }
 0x318   : > { %2564 = vmatpush3.bf16.msra.mxu1 %v2688_v41 }
 0x319   : > { %2577 = vmatprep.subr.bf16.mxu1 %v2747_v1 }
 0x320   : > { %1253 = vadd.xlane.f32.xlu1 %v1252_v7 }
 0x331   : > { %1147 = vrot.lane.b32.xlu1 %v2926_v11, %s2759_s8  ;;  %s3262_s8 = sld [smem:[#allocation9_spill]] }
 0x337   : > { %v2408_v57 = vld [vmem:[%s3262_s8] ss:$0 sm:$0xff]  ;;  %s3267_s8 = smov 80  }
 0x370   : > { %v919_v8 = vpop.xlane.xlu0 %918 }
 0x371   : > { %2709 = vrcp.f32 %v919_v8  ;;  %v2689_v8 = vld [vmem:[%s3226_s12] sm:$0xff]  }
 0x378   : > { %v1032_v9 = vpop.xlane.xlu1 %1031 }
 0x379   : > { %2711 = vrcp.f32 %v1032_v9  ;;  %v786_v9 = vld [vmem:[%s771_s26] sm:$0xff]  ;;  %s3270_s26 = smov 8  }
 0x37b   : > { %v2710_v10 = vpop.eup %2709 }
 0x37c   : > { %v921_v13 = vmul.f32 %v2710_v10, %v2702_v56  ;;  %v1037_v16 = vpop.permute.xlu1 %1036  ;;  %v1488_v10 = vpack.c.bf16 %v786_v9, %v786_v9 }
 0x37d   : > { %v1042_v19 = vsel %vm928_vm4, %v1037_v16, 0 }
 0x37e   : > { %v922_v17 = vpack.c.bf16 %v921_v13, %v921_v13  ;;  %v2692_v13 = vld [vmem:[%s3224_s10 + $0x8] sm:$0xff]  }
 0x380   : > { %v1143_v12 = vpop.xlane.xlu0 %1142 }
 0x381   : > { %2713 = vrcp.f32 %v1143_v12  ;;  %v2691_v12 = vld [vmem:[%s3224_s10] sm:$0xff]  }
 0x383   : > { %v2712_v18 = vpop.eup %2711 }
 0x384   : > { %v924_v14 = vpop.permute.xlu0 %923  ;;  %v1034_v11 = vmul.f32 %v2712_v18, %v2704_v61 }
 0x385   : > { %v930_v15 = vsel %vm928_vm4, %v924_v14, 0 }
 0x386   : > { %2520 = vmatpush3.bf16.msra.mxu0 %v930_v15  ;;  %v1035_v20 = vpack.c.bf16 %v1034_v11, %v1034_v11  ;;  %v2413_v11 = vld [vmem:[%s3223_s9] ss:$0 sm:$0xff] }
 0x387   : > { %2531 = vmatprep.subr.bf16.mxu0 %v2747_v1 }
 0x388   : > { %v1259_v26 = vpop.permute.xlu0 %1258 }
 0x389   : > { %2522 = vmatmul.mubr.msk.bf16.vlgmr.msra.gmra.mrb[0].mxu0 %vm862_vm2, %v922_v17  ;;  %v1264_v28 = vsel %vm928_vm4, %v1259_v26, 0 }
 0x38a   : > { %2532 = vmatpush3.bf16.msra.mxu0 %v1042_v19  ;;  %2533 = vmatprep.mubr.msk.bf16.mxu0 %vm2748_vm0, %v2747_v1 }
 0x38b   : > { %2543 = vmatprep.subr.bf16.mxu0 %v2747_v1  ;;  %v2714_v21 = vpop.eup %2713 }
 0x38c   : > { %v1145_v23 = vmul.f32 %v2714_v21, %v2706_v63 }
 0x38e   : > { %v1146_v27 = vpack.c.bf16 %v1145_v23, %v1145_v23  ;;  %v2418_v23 = vld [vmem:[%s3227_s13] ss:$0 sm:$0xff] }
 0x391   : > { %2534 = vmatmul.mubr.msk.bf16.vlgmr.msra.gmra.mrb[4].mxu0 %vm862_vm2, %v1035_v20 }
 0x392   : > { %2545 = vmatprep.mubr.msk.bf16.mxu0 %vm2748_vm0, %v2747_v1 }
 0x3ad   : > { %v1254_v22 = vpop.xlane.xlu1 %1253 }
 0x3ae   : > { %2715 = vrcp.f32 %v1254_v22 }
 0x3b1   : > { %v1148_v24 = vpop.permute.xlu1 %1147 }
 0x3b2   : > { %v1153_v25 = vsel %vm928_vm4, %v1148_v24, 0 }
 0x3b3   : > { %2544 = vmatpush3.bf16.msra.mxu0 %v1153_v25 }
 0x3b4   : > { %2555 = vmatprep.subr.bf16.mxu0 %v2747_v1 }
 0x3b6   : > { %2546 = vmatmul.mubr.msk.bf16.vlgmr.msra.gmra.mrb[8].mxu0 %vm862_vm2, %v1146_v27 }
 0x3b7   : > { %2556 = vmatpush3.bf16.msra.mxu0 %v1264_v28  ;;  %2557 = vmatprep.mubr.msk.bf16.mxu0 %vm2748_vm0, %v2747_v1 }
 0x3b8   : > { %v2716_v29 = vpop.eup %2715  ;;  %2569 = vmatprep.subr.bf16.mxu0 %v2747_v1 }
 0x3b9   : > { %v1256_v30 = vmul.f32 %v2716_v29, %v2708_v6 }
 0x3bb   : > { %v1257_v31 = vpack.c.bf16 %v1256_v30, %v1256_v30 }
 0x3be   : > { %2558 = vmatmul.mubr.msk.bf16.vlgmr.msra.gmra.mrb[12].mxu0 %vm862_vm2, %v1257_v31  ;;  %v2414_v31 = vld [vmem:[%s3225_s11] ss:$0 sm:$0xff] }
 0x3bf   : > { %2573 = vmatprep.mubr.msk.bf16.mxu0 %vm2748_vm0, %v2747_v1  ;;  %2570 = vmatpush3.bf16.msra.mxu0 %v2691_v12 }
 0x3c0   : > { %2571 = vmatprep.subr.bf16.mxu0 %v2747_v1 }
 0x3c3   : > { %2572 = vmatpush3.bf16.msra.mxu0 %v2692_v13 }
 0x3c4   : > { %2585 = vmatprep.subr.bf16.mxu0 %v2747_v1 }
 0x45c   : > { %v966_v32 = vpop.f32.mrb[0].mxu0 }
 0x45d   : > { %v2523_v33 = vpop.f32.mrb[1].mxu0 }
 0x45e   : > { %v969_v34 = vpop.f32.mrb[2].mxu0 }
 0x45f   : > { %v2524_v35 = vpop.f32.mrb[3].mxu0 }
 0x464   : > { %v1078_v36 = vpop.f32.mrb[4].mxu0 }
 0x465   : > { %1307 = vrot.lane.b32.xlu1 %v1078_v36, %s3245_s4  ;;  %v2535_v37 = vpop.f32.mrb[5].mxu0  ;;  %s3264_s4 = sld [smem:[#allocation10_spill]] }
 0x466   : > { %v1081_v38 = vpop.f32.mrb[6].mxu0 }
 0x467   : > { %v2536_v39 = vpop.f32.mrb[7].mxu0 }
 0x46b   : > { %v2412_v18 = vld [vmem:[%s3264_s4] ss:$0 sm:$0xff]  ;;  %s3266_s4 = smov 96  }
 0x489   : > { %v1189_v42 = vpop.f32.mrb[8].mxu0 }
 0x48a   : > { %1311 = vrot.lane.b32.xlu0 %v1189_v42, %s3244_s7  ;;  %v2547_v43 = vpop.f32.mrb[9].mxu0 }
 0x48b   : > { %v1192_v44 = vpop.f32.mrb[10].mxu0 }
 0x48c   : > { %v2548_v45 = vpop.f32.mrb[11].mxu0 }
 0x491   : > { %v1300_v46 = vpop.f32.mrb[12].mxu0 }
 0x492   : > { %1315 = vrot.lane.b32.xlu1 %v1300_v46, %s3243_s1  ;;  %v2559_v47 = vpop.f32.mrb[13].mxu0 }
 0x493   : > { %v1303_v48 = vpop.f32.mrb[14].mxu0 }
 0x494   : > { %v2560_v49 = vpop.f32.mrb[15].mxu0 }
 0x4d7   : > { %v1308_v50 = vpop.permute.xlu1 %1307 }
 0x4d8   : > { %v1318_v52 = vsel %vm862_vm2, %v966_v32, %v1308_v50 }
 0x4fc   : > { %v1312_v51 = vpop.permute.xlu0 %1311 }
 0x4fd   : > { %v1320_v53 = vsel %vm1319_vm5, %v1318_v52, %v1312_v51 }
 0x504   : > { %v1316_v54 = vpop.permute.xlu1 %1315 }
 0x505   : > { %v1322_v55 = vsel %vm1321_vm6, %v1320_v53, %v1316_v54 }
 0x506   : > { %v1323_v56 = vpack.c.bf16 %v1322_v55, %v1322_v55 }
 0x508   : > { %2566 = vmatmul.mubr.msk.bf16.vlgmr.msra.gmra.mrb[20].mxu1 %vm811_vm1, %v1323_v56 }
 0x509   : > { %2581 = vmatprep.mubr.msk.bf16.mxu1 %vm2748_vm0, %v2747_v1  ;;  %2578 = vmatpush3.bf16.msra.mxu1 %v2689_v8 }
 0x50a   : > { %2579 = vmatprep.subr.bf16.mxu1 %v2747_v1 }
 0x5db   : > { %v1384_v58 = vpop.f32.mrb[20].mxu1 }
 0x5dc   : > { %v1385_v59 = vadd.f32 %v2408_v57, %v1384_v58  ;;  %v2567_v60 = vpop.f32.mrb[21].mxu1 }
 0x5dd   : > { %v1387_v61 = vpop.f32.mrb[22].mxu1 }
 0x5de   : > { %v2568_v62 = vpop.f32.mrb[23].mxu1  ;;  %v1390_v63 = vadd.f32 %v1385_v59, %v2916_v3  ;;  %v2690_v3 = vld [vmem:[%s3226_s12 + $0x8] sm:$0xff]  }
 0x5df   : > { %2580 = vmatpush3.bf16.msra.mxu1 %v2690_v3 }
 0x5e0   : > { %v1393_v0 = vsel %vm811_vm1, %v1390_v63, 0.0  ;;  %2591 = vmatprep.subr.bf16.mxu1 %v2747_v1 }
 0x5e1   : > { %1394 = vadd.xlane.f32.xlu0 %v1393_v0 }
 0x5e2   : > { %2582 = vmatmul.mubr.msk.bf16.vlgmr.msra.gmra.mrb[24].mxu1 %vm811_vm1, %v1488_v10 }
 0x5e3   : > { %2593 = vmatprep.mubr.msk.bf16.mxu1 %vm2748_vm0, %v2747_v1 }
 0x66e   : > { %v1395_v2 = vpop.xlane.xlu0 %1394 }
 0x66f   : > { %v1397_v4 = vmul.f32 0.03125, %v1395_v2 }
 0x671   : > { %v1398_v5 = vsub.f32 %v1390_v63, %v1397_v4 }
 0x673   : > { %v1399_v6 = vmul.f32 %v1398_v5, %v1398_v5 }
 0x675   : > { %v1400_v7 = vsel %vm811_vm1, %v1399_v6, 0.0 }
 0x676   : > { %1401 = vadd.xlane.f32.xlu1 %v1400_v7 }
 0x6b5   : > { %v1549_v24 = vpop.f32.mrb[24].mxu1 }
 0x6b6   : > { %v1550_v25 = vadd.f32 %v2418_v23, %v1549_v24  ;;  %v2583_v26 = vpop.f32.mrb[25].mxu1 }
 0x6b7   : > { %v1552_v27 = vpop.f32.mrb[26].mxu1 }
 0x6b8   : > { %v3061_v28 = vpack.c.bf16 %v1550_v25, %v1550_v25  ;;  %v2584_v29 = vpop.f32.mrb[27].mxu1 }
 0x6ba   : > { %1671 = vrot.lane.b32.xlu0 %v3061_v28, %s2750_s27  ;;  %v1563_v30 = vsel %vm862_vm2, %v3061_v28, 0 }
 0x6be   : > { %1782 = vrot.lane.b32.xlu0 %v3061_v28, %s2753_s29 }
 0x6c2   : > { %1893 = vrot.lane.b32.xlu0 %v3061_v28, %s2755_s30 }
 0x703   : > { %v1402_v14 = vpop.xlane.xlu1 %1401 }
 0x704   : > { %v1403_v15 = vmul.f32 0.03125, %v1402_v14 }
 0x706   : > { %v1404_v16 = vadd.f32 1e-05, %v1403_v15 }
 0x708   : > { %2717 = vrsqrt.f32 %v1404_v16 }
 0x712   : > { %v2718_v17 = vpop.eup %2717 }
 0x713   : > { %v1406_v19 = vmul.f32 %v2718_v17, %v1398_v5 }
 0x715   : > { %v1413_v20 = vmul.f32 %v2412_v18, %v1406_v19 }
 0x717   : > { %v3051_v21 = vadd.f32 %v2413_v11, %v1413_v20 }
 0x719   : > { %v1421_v22 = vpack.c.bf16 %v3051_v21, %v3051_v21 }
 0x71b   : > { %2574 = vmatmul.mubr.msk.bf16.vlgmr.msra.gmra.mrb[16].mxu0 %vm811_vm1, %v1421_v22 }
 0x71c   : > { %2587 = vmatprep.mubr.msk.bf16.mxu0 %vm2748_vm0, %v2747_v1  ;;  %2586 = vmatpush3.bf16.xpose.msra.mxu0 %v1563_v30 }
 0x71d   : > { %2597 = vmatprep.subr.bf16.mxu0 %v2747_v1 }
 0x72c   : > { %v1672_v38 = vpop.permute.xlu0 %1671 }
 0x72d   : > { %v1677_v40 = vsel %vm862_vm2, %v1672_v38, 0 }
 0x730   : > { %v1783_v41 = vpop.permute.xlu0 %1782 }
 0x731   : > { %v1788_v43 = vsel %vm862_vm2, %v1783_v41, 0 }
 0x734   : > { %v1894_v44 = vpop.permute.xlu0 %1893 }
 0x735   : > { %v1899_v46 = vsel %vm862_vm2, %v1894_v44, 0 }
 0x7ee   : > { %v1482_v32 = vpop.f32.mrb[16].mxu0 }
 0x7ef   : > { %v1483_v33 = vadd.f32 %v2414_v31, %v1482_v32  ;;  %v2575_v34 = vpop.f32.mrb[17].mxu0 }
 0x7f0   : > { %v1485_v35 = vpop.f32.mrb[18].mxu0 }
 0x7f1   : > { %v1556_v36 = vmul.f32 0.35355338, %v1483_v33  ;;  %v2576_v37 = vpop.f32.mrb[19].mxu0 }
 0x7f3   : > { %v1557_v39 = vpack.c.bf16 %v1556_v36, %v1556_v36 }
 0x7f5   : > { %1669 = vrot.lane.b32.xlu1 %v1557_v39, %s2750_s27  ;;  %2588 = vmatmul.mubr.msk.bf16.vlgmr.msra.gmra.mrb[20].mxu0 %vm862_vm2, %v1557_v39 }
 0x7f6   : > { %2598 = vmatpush3.bf16.xpose.msra.mxu0 %v1677_v40  ;;  %2599 = vmatprep.mubr.msk.bf16.mxu0 %vm2748_vm0, %v2747_v1 }
 0x7f7   : > { %2609 = vmatprep.subr.bf16.mxu0 %v2747_v1 }
 0x7f9   : > { %1780 = vrot.lane.b32.xlu1 %v1557_v39, %s2753_s29 }
 0x7fd   : > { %1891 = vrot.lane.b32.xlu1 %v1557_v39, %s2755_s30  ;;  %s3265_s30 = sld [smem:[#allocation5_spill]] }
 0x803   : > { %s779_s2 = scalar_lea.vmem %s3265_s30, %s2909_s0  ;;  %s3271_s30 = smov 16  }
 0x804   : > { %v1555_v48 = vld [vmem:[%s779_s2] sm:$0xff]  ;;  %s3272_s2 = smov 24  }
 0x805   : > { %vm1605_vm7 = vcmp.gt.s32.totalorder %v1555_v48, 0 }
 0x867   : > { %v1670_v42 = vpop.permute.xlu1 %1669 }
 0x868   : > { %2600 = vmatmul.mubr.msk.bf16.vlgmr.msra.gmra.mrb[24].mxu0 %vm862_vm2, %v1670_v42 }
 0x869   : > { %2610 = vmatpush3.bf16.xpose.msra.mxu0 %v1788_v43  ;;  %2611 = vmatprep.mubr.msk.bf16.mxu0 %vm2748_vm0, %v2747_v1 }
 0x86a   : > { %2621 = vmatprep.subr.bf16.mxu0 %v2747_v1 }
 0x86b   : > { %v1781_v45 = vpop.permute.xlu1 %1780 }
 0x86f   : > { %v1892_v47 = vpop.permute.xlu1 %1891 }
 0x870   : > { %2612 = vmatmul.mubr.msk.bf16.vlgmr.msra.gmra.mrb[28].mxu0 %vm862_vm2, %v1781_v45 }
 0x871   : > { %2622 = vmatpush3.bf16.xpose.msra.mxu0 %v1899_v46  ;;  %2623 = vmatprep.mubr.msk.bf16.mxu0 %vm2748_vm0, %v2747_v1 }
 0x872   : > { %2633 = vmatprep.subr.bf16.mxu0 %v2747_v1 }
 0x878   : > { %2624 = vmatmul.mubr.msk.bf16.vlgmr.msra.gmra.mrb[32].mxu0 %vm862_vm2, %v1892_v47 }
 0x879   : > { %2637 = vmatprep.mubr.msk.bf16.mxu0 %vm2748_vm0, %v2747_v1 }
 0x8c8   : > { %v1599_v49 = vpop.f32.mrb[20].mxu0 }
 0x8c9   : > { %v1606_v50 = vsel %vm1605_vm7, %v1599_v49, -1e+09  ;;  %v2589_v51 = vpop.f32.mrb[21].mxu0 }
 0x8ca   : > { %v1602_v52 = vpop.f32.mrb[22].mxu0  ;;  %v1607_v53 = vsel %vm862_vm2, %v1606_v50, -inf }
 0x8cb   : > { %1608 = vmax.xlane.f32.xlu0 %v1607_v53  ;;  %v2590_v54 = vpop.f32.mrb[23].mxu0 }
 0x93b   : > { %v1713_v55 = vpop.f32.mrb[24].mxu0 }
 0x93c   : > { %v1719_v56 = vsel %vm1605_vm7, %v1713_v55, -1e+09  ;;  %v2601_v57 = vpop.f32.mrb[25].mxu0 }
 0x93d   : > { %v1716_v58 = vpop.f32.mrb[26].mxu0  ;;  %v1720_v59 = vsel %vm862_vm2, %v1719_v56, -inf }
 0x93e   : > { %1721 = vmax.xlane.f32.xlu1 %v1720_v59  ;;  %v2602_v60 = vpop.f32.mrb[27].mxu0  ;;  %v2693_v59 = vld [vmem:[%s3228_s14] sm:$0xff]  }
 0x93f   : > { %2634 = vmatpush3.bf16.msra.mxu0 %v2693_v59 }
 0x940   : > { %2635 = vmatprep.subr.bf16.mxu0 %v2747_v1 }
 0x943   : > { %v1824_v61 = vpop.f32.mrb[28].mxu0 }
 0x944   : > { %v1830_v62 = vsel %vm1605_vm7, %v1824_v61, -1e+09  ;;  %v2613_v63 = vpop.f32.mrb[29].mxu0 }
 0x945   : > { %v1827_v0 = vpop.f32.mrb[30].mxu0  ;;  %v1831_v2 = vsel %vm862_vm2, %v1830_v62, -inf }
 0x946   : > { %1832 = vmax.xlane.f32.xlu0 %v1831_v2  ;;  %v2614_v4 = vpop.f32.mrb[31].mxu0  ;;  %v2694_v0 = vld [vmem:[%s3228_s14 + $0x8] sm:$0xff]  }
 0x947   : > { %2636 = vmatpush3.bf16.msra.mxu0 %v2694_v0 }
 0x948   : > { %2649 = vmatprep.subr.bf16.mxu0 %v2747_v1 }
 0x94b   : > { %v1935_v5 = vpop.f32.mrb[32].mxu0 }
 0x94c   : > { %v1941_v6 = vsel %vm1605_vm7, %v1935_v5, -1e+09  ;;  %v2625_v7 = vpop.f32.mrb[33].mxu0 }
 0x94d   : > { %v1938_v8 = vpop.f32.mrb[34].mxu0  ;;  %v1942_v3 = vsel %vm862_vm2, %v1941_v6, -inf }
 0x94e   : > { %1943 = vmax.xlane.f32.xlu0 %v1942_v3  ;;  %v2626_v9 = vpop.f32.mrb[35].mxu0 }
 0x958   : > { %v1609_v10 = vpop.xlane.xlu0 %1608 }
 0x959   : > { %v1610_v12 = vsub.f32 %v1606_v50, %v1609_v10 }
 0x95b   : > { %v1611_v13 = vmul.f32 1.442695, %v1610_v12 }
 0x95d   : > { %2719 = vpow2.f32 %v1611_v13 }
 0x967   : > { %v2720_v14 = vpop.eup %2719 }
 0x968   : > { %v1613_v15 = vsel %vm862_vm2, %v2720_v14, 0.0 }
 0x969   : > { %1614 = vadd.xlane.f32.xlu1 %v1613_v15 }
 0x97a   : > { %1620 = vrot.lane.b32.xlu1 %v3061_v28, %s3266_s4 }
 0x9cb   : > { %v1722_v16 = vpop.xlane.xlu1 %1721 }
 0x9cc   : > { %v1723_v17 = vsub.f32 %v1719_v56, %v1722_v16 }
 0x9ce   : > { %v1724_v18 = vmul.f32 1.442695, %v1723_v17 }
 0x9d0   : > { %2721 = vpow2.f32 %v1724_v18  ;;  %v2430_v18 = vld [vmem:[%s3229_s15] ss:$0 sm:$0xff] }
 0x9d3   : > { %v1833_v19 = vpop.xlane.xlu0 %1832 }
 0x9d4   : > { %v1834_v11 = vsub.f32 %v1830_v62, %v1833_v19 }
 0x9d6   : > { %v1835_v20 = vmul.f32 1.442695, %v1834_v11 }
 0x9d8   : > { %2723 = vpow2.f32 %v1835_v20 }
 0x9da   : > { %v2722_v22 = vpop.eup %2721 }
 0x9db   : > { %v1944_v23 = vpop.xlane.xlu0 %1943  ;;  %v1726_v24 = vsel %vm862_vm2, %v2722_v22, 0.0 }
 0x9dc   : > { %v1945_v25 = vsub.f32 %v1941_v6, %v1944_v23  ;;  %1727 = vadd.xlane.f32.xlu0 %v1726_v24 }
 0x9de   : > { %v1946_v26 = vmul.f32 1.442695, %v1945_v25 }
 0x9e0   : > { %2725 = vpow2.f32 %v1946_v26 }
 0x9e2   : > { %v2724_v27 = vpop.eup %2723 }
 0x9e3   : > { %v1837_v29 = vsel %vm862_vm2, %v2724_v27, 0.0 }
 0x9e4   : > { %1838 = vadd.xlane.f32.xlu1 %v1837_v29 }
 0x9ea   : > { %v2726_v30 = vpop.eup %2725 }
 0x9eb   : > { %v1948_v31 = vsel %vm862_vm2, %v2726_v30, 0.0 }
 0x9ec   : > { %1949 = vadd.xlane.f32.xlu0 %v1948_v31 }
 0x9f5   : > { %1843 = vrot.lane.b32.xlu1 %v3061_v28, %s3267_s8 }
 0x9f6   : > { %v1615_v32 = vpop.xlane.xlu1 %1614 }
 0x9f7   : > { %2727 = vrcp.f32 %v1615_v32  ;;  %v2695_v32 = vld [vmem:[%s3232_s18] sm:$0xff]  }
 0x9f9   : > { %1954 = vrot.lane.b32.xlu1 %v3061_v28, %s3268_s28 }
 0x9fa   : > { %v1621_v33 = vpop.permute.xlu1 %1620 }
 0x9fb   : > { %v1626_v34 = vsel %vm928_vm4, %v1621_v33, 0  ;;  %v2696_v33 = vld [vmem:[%s3232_s18 + $0x8] sm:$0xff]  }
 0x9fc   : > { %2592 = vmatpush3.bf16.msra.mxu1 %v1626_v34  ;;  %v2698_v34 = vld [vmem:[%s3234_s20 + $0x8] sm:$0xff]  }
 0x9fd   : > { %2603 = vmatprep.subr.bf16.mxu1 %v2747_v1 }
 0xa01   : > { %v2728_v35 = vpop.eup %2727 }
 0xa02   : > { %v1617_v36 = vmul.f32 %v2728_v35, %v2720_v14  ;;  %1732 = vrot.lane.b32.xlu0 %v3061_v28, %s3269_s3 }
 0xa04   : > { %v1618_v37 = vpack.c.bf16 %v1617_v36, %v1617_v36 }
 0xa06   : > { %2594 = vmatmul.mubr.msk.bf16.vlgmr.msra.gmra.mrb[28].mxu1 %vm862_vm2, %v1618_v37 }
 0xa07   : > { %2605 = vmatprep.mubr.msk.bf16.mxu1 %vm2748_vm0, %v2747_v1 }
 0xa69   : > { %v1728_v38 = vpop.xlane.xlu0 %1727 }
 0xa6a   : > { %2729 = vrcp.f32 %v1728_v38 }
 0xa71   : > { %v1839_v39 = vpop.xlane.xlu1 %1838 }
 0xa72   : > { %2731 = vrcp.f32 %v1839_v39  ;;  %v2434_v39 = vld [vmem:[%s3230_s16] ss:$0 sm:$0xff] }
 0xa74   : > { %v2730_v40 = vpop.eup %2729 }
 0xa75   : > { %v1730_v42 = vmul.f32 %v2730_v40, %v2722_v22  ;;  %v1844_v45 = vpop.permute.xlu1 %1843 }
 0xa76   : > { %v1849_v47 = vsel %vm928_vm4, %v1844_v45, 0  ;;  %v2699_v45 = vld [vmem:[%s3234_s20 + $0x10] sm:$0xff]  }
 0xa77   : > { %v1731_v28 = vpack.c.bf16 %v1730_v42, %v1730_v42 }
 0xa79   : > { %v1950_v41 = vpop.xlane.xlu0 %1949  ;;  %v1955_v49 = vpop.permute.xlu1 %1954 }
 0xa7a   : > { %2733 = vrcp.f32 %v1950_v41  ;;  %v1960_v52 = vsel %vm928_vm4, %v1955_v49, 0  ;;  %v2435_v41 = vld [vmem:[%s3231_s17] ss:$0 sm:$0xff] }
 0xa7c   : > { %v2732_v46 = vpop.eup %2731 }
 0xa7d   : > { %v1733_v43 = vpop.permute.xlu0 %1732  ;;  %v1841_v48 = vmul.f32 %v2732_v46, %v2724_v27  ;;  %v2436_v46 = vld [vmem:[%s3233_s19] ss:$0 sm:$0xff] }
 0xa7e   : > { %v1738_v44 = vsel %vm928_vm4, %v1733_v43, 0 }
 0xa7f   : > { %2604 = vmatpush3.bf16.msra.mxu1 %v1738_v44  ;;  %v1842_v50 = vpack.c.bf16 %v1841_v48, %v1841_v48 }
 0xa80   : > { %2615 = vmatprep.subr.bf16.mxu1 %v2747_v1 }
 0xa82   : > { %2606 = vmatmul.mubr.msk.bf16.vlgmr.msra.gmra.mrb[32].mxu1 %vm862_vm2, %v1731_v28  ;;  %v2700_v28 = vld [vmem:[%s3234_s20 + $0x18] sm:$0xff]  }
 0xa83   : > { %2616 = vmatpush3.bf16.msra.mxu1 %v1849_v47  ;;  %2617 = vmatprep.mubr.msk.bf16.mxu1 %vm2748_vm0, %v2747_v1 }
 0xa84   : > { %2627 = vmatprep.subr.bf16.mxu1 %v2747_v1  ;;  %v2734_v51 = vpop.eup %2733 }
 0xa85   : > { %v1952_v53 = vmul.f32 %v2734_v51, %v2726_v30 }
 0xa87   : > { %v1953_v54 = vpack.c.bf16 %v1952_v53, %v1952_v53 }
 0xa8a   : > { %2618 = vmatmul.mubr.msk.bf16.vlgmr.msra.gmra.mrb[36].mxu1 %vm862_vm2, %v1842_v50 }
 0xa8b   : > { %2628 = vmatpush3.bf16.msra.mxu1 %v1960_v52  ;;  %2629 = vmatprep.mubr.msk.bf16.mxu1 %vm2748_vm0, %v2747_v1 }
 0xa8c   : > { %2641 = vmatprep.subr.bf16.mxu1 %v2747_v1 }
 0xa92   : > { %2630 = vmatmul.mubr.msk.bf16.vlgmr.msra.gmra.mrb[40].mxu1 %vm862_vm2, %v1953_v54 }
 0xa93   : > { %2645 = vmatprep.mubr.msk.bf16.mxu1 %vm2748_vm0, %v2747_v1  ;;  %2642 = vmatpush3.bf16.msra.mxu1 %v2695_v32 }
 0xa94   : > { %2643 = vmatprep.subr.bf16.mxu1 %v2747_v1 }
 0xa97   : > { %2644 = vmatpush3.bf16.msra.mxu1 %v2696_v33 }
 0xad9   : > { %v1662_v55 = vpop.f32.mrb[28].mxu1 }
 0xada   : > { %v2595_v56 = vpop.f32.mrb[29].mxu1 }
 0xadb   : > { %v1665_v57 = vpop.f32.mrb[30].mxu1 }
 0xadc   : > { %v2596_v58 = vpop.f32.mrb[31].mxu1 }
 0xb55   : > { %v1774_v60 = vpop.f32.mrb[32].mxu1 }
 0xb56   : > { %2003 = vrot.lane.b32.xlu0 %v1774_v60, %s3270_s26  ;;  %v2607_v61 = vpop.f32.mrb[33].mxu1  ;;  %s783_s26 = scalar_lea.vmem %s3238_s24, %s2909_s0 }
 0xb57   : > { %v1777_v62 = vpop.f32.mrb[34].mxu1 }
 0xb58   : > { %v2608_v63 = vpop.f32.mrb[35].mxu1 }
 0xb5d   : > { %v1885_v2 = vpop.f32.mrb[36].mxu1 }
 0xb5e   : > { %2007 = vrot.lane.b32.xlu1 %v1885_v2, %s3271_s30  ;;  %v2619_v4 = vpop.f32.mrb[37].mxu1 }
 0xb5f   : > { %v1888_v5 = vpop.f32.mrb[38].mxu1 }
 0xb60   : > { %v2620_v6 = vpop.f32.mrb[39].mxu1 }
 0xb65   : > { %v1996_v7 = vpop.f32.mrb[40].mxu1 }
 0xb66   : > { %2011 = vrot.lane.b32.xlu0 %v1996_v7, %s3272_s2  ;;  %v2631_v8 = vpop.f32.mrb[41].mxu1 }
 0xb67   : > { %v1999_v3 = vpop.f32.mrb[42].mxu1  ;;  %v2446_v8 = vld [vmem:[%s3236_s22] ss:$0 sm:$0xff] }
 0xb68   : > { %v2632_v9 = vpop.f32.mrb[43].mxu1 }
 0xb69   : > { %v2447_v9 = vld [vmem:[%s3237_s23] ss:$0 sm:$0xff] }
 0xbc8   : > { %v2004_v10 = vpop.permute.xlu0 %2003 }
 0xbc9   : > { %v2014_v13 = vsel %vm862_vm2, %v1662_v55, %v2004_v10 }
 0xbd0   : > { %v2008_v12 = vpop.permute.xlu1 %2007 }
 0xbd1   : > { %v2015_v14 = vsel %vm1319_vm5, %v2014_v13, %v2008_v12 }
 0xbd8   : > { %v2012_v15 = vpop.permute.xlu0 %2011 }
 0xbd9   : > { %v2016_v16 = vsel %vm1321_vm6, %v2015_v14, %v2012_v15 }
 0xbda   : > { %v2017_v17 = vpack.c.bf16 %v2016_v16, %v2016_v16 }
 0xbdc   : > { %2638 = vmatmul.mubr.msk.bf16.vlgmr.msra.gmra.mrb[36].mxu0 %vm811_vm1, %v2017_v17 }
 0xbdd   : > { %2657 = vmatprep.mubr.msk.bf16.mxu0 %vm2748_vm0, %v2747_v1 }
 0xcaf   : > { %v2078_v19 = vpop.f32.mrb[36].mxu0 }
 0xcb0   : > { %v2079_v11 = vadd.f32 %v2430_v18, %v2078_v19  ;;  %v2639_v20 = vpop.f32.mrb[37].mxu0 }
 0xcb1   : > { %v2081_v22 = vpop.f32.mrb[38].mxu0 }
 0xcb2   : > { %v2640_v23 = vpop.f32.mrb[39].mxu0  ;;  %v2084_v24 = vadd.f32 %v2079_v11, %v3051_v21  ;;  %v2697_v21 = vld [vmem:[%s3234_s20] sm:$0xff]  }
 0xcb3   : > { %2650 = vmatpush3.bf16.msra.mxu0 %v2697_v21 }
 0xcb4   : > { %v2087_v25 = vsel %vm811_vm1, %v2084_v24, 0.0  ;;  %2651 = vmatprep.subr.bf16.mxu0 %v2747_v1 }
 0xcb5   : > { %2088 = vadd.xlane.f32.xlu1 %v2087_v25 }
 0xcb7   : > { %2652 = vmatpush3.bf16.msra.mxu0 %v2698_v34 }
 0xcb8   : > { %2653 = vmatprep.subr.bf16.mxu0 %v2747_v1 }
 0xcbb   : > { %2654 = vmatpush3.bf16.msra.mxu0 %v2699_v45 }
 0xcbc   : > { %2655 = vmatprep.subr.bf16.mxu0 %v2747_v1  ;;  %v2440_v1 = vld [vmem:[%s3235_s21] ss:$0 sm:$0xff] }
 0xcbf   : > { %2656 = vmatpush3.bf16.msra.mxu0 %v2700_v28 }
 0xd42   : > { %v2089_v26 = vpop.xlane.xlu1 %2088 }
 0xd43   : > { %v2090_v27 = vmul.f32 0.03125, %v2089_v26 }
 0xd45   : > { %v2091_v29 = vsub.f32 %v2084_v24, %v2090_v27 }
 0xd47   : > { %v2092_v30 = vmul.f32 %v2091_v29, %v2091_v29 }
 0xd49   : > { %v2093_v31 = vsel %vm811_vm1, %v2092_v30, 0.0 }
 0xd4a   : > { %2094 = vadd.xlane.f32.xlu0 %v2093_v31 }
 0xdd7   : > { %v2095_v35 = vpop.xlane.xlu0 %2094 }
 0xdd8   : > { %v2096_v36 = vmul.f32 0.03125, %v2095_v35 }
 0xdda   : > { %v2097_v37 = vadd.f32 1e-05, %v2096_v36 }
 0xddc   : > { %2735 = vrsqrt.f32 %v2097_v37 }
 0xde6   : > { %v2736_v38 = vpop.eup %2735 }
 0xde7   : > { %v2099_v40 = vmul.f32 %v2736_v38, %v2091_v29 }
 0xde9   : > { %v2106_v42 = vmul.f32 %v2434_v39, %v2099_v40 }
 0xdeb   : > { %v2113_v43 = vadd.f32 %v2435_v41, %v2106_v42 }
 0xded   : > { %v2114_v44 = vpack.c.bf16 %v2113_v43, %v2113_v43 }
 0xdef   : > { %2646 = vmatmul.mubr.msk.bf16.vlgmr.msra.gmra.mrb[44].mxu1 %vm811_vm1, %v2114_v44 }
 0xec2   : > { %v2175_v47 = vpop.f32.mrb[44].mxu1 }
 0xec3   : > { %v2176_v48 = vadd.f32 %v2436_v46, %v2175_v47  ;;  %v2647_v49 = vpop.f32.mrb[45].mxu1 }
 0xec4   : > { %v2178_v50 = vpop.f32.mrb[46].mxu1 }
 0xec5   : > { %v2181_v51 = vmax.f32 %v2176_v48, 0.0  ;;  %v2648_v52 = vpop.f32.mrb[47].mxu1 }
 0xec7   : > { %v2182_v53 = vpack.c.bf16 %v2181_v51, %v2181_v51 }
 0xec9   : > { %2658 = vmatmul.mubr.msk.bf16.vlgmr.msra.gmra.mrb[40].mxu0 %vm2222_vm8, %v2182_v53 }
 0xf9c   : > { %v2260_v54 = vpop.f32.mrb[40].mxu0 }
 0xf9d   : > { %v2261_v55 = vadd.f32 %v2440_v1, %v2260_v54  ;;  %v2659_v56 = vpop.f32.mrb[41].mxu0 }
 0xf9e   : > { %v2263_v57 = vpop.f32.mrb[42].mxu0 }
 0xf9f   : > { %v2660_v58 = vpop.f32.mrb[43].mxu0  ;;  %v2266_v59 = vadd.f32 %v2261_v55, %v2113_v43 }
 0xfa1   : > { %v2269_v60 = vsel %vm811_vm1, %v2266_v59, 0.0 }
 0xfa2   : > { %2270 = vadd.xlane.f32.xlu0 %v2269_v60 }
0x102f   : > { %v2271_v61 = vpop.xlane.xlu0 %2270 }
0x1030   : > { %v2272_v62 = vmul.f32 0.03125, %v2271_v61 }
0x1032   : > { %v2273_v63 = vsub.f32 %v2266_v59, %v2272_v62 }
0x1034   : > { %v2274_v0 = vmul.f32 %v2273_v63, %v2273_v63 }
0x1036   : > { %v2275_v2 = vsel %vm811_vm1, %v2274_v0, 0.0 }
0x1037   : > { %2276 = vadd.xlane.f32.xlu1 %v2275_v2 }
0x10c4   : > { %v2277_v4 = vpop.xlane.xlu1 %2276 }
0x10c5   : > { %v2278_v5 = vmul.f32 0.03125, %v2277_v4 }
0x10c7   : > { %v2279_v6 = vadd.f32 1e-05, %v2278_v5 }
0x10c9   : > { %2737 = vrsqrt.f32 %v2279_v6 }
0x10d3   : > { %v2738_v7 = vpop.eup %2737 }
0x10d4   : > { %v2281_v3 = vmul.f32 %v2738_v7, %v2273_v63 }
0x10d6   : > { %v2288_v10 = vmul.f32 %v2446_v8, %v2281_v3 }
0x10d8   : > { %v2295_v12 = vadd.f32 %v2447_v9, %v2288_v10 }
0x10da   : > { %2296 = vst.msk [vmem:[%s783_s26] sm:$0xff] %vm811_vm1, %v2295_v12 }
0x10db PF: > { %s34_s5 = sadd.s32 1, %s2745_s5  }
0x10dc   : > { %p31_p4 = scmp.ge.s32.totalorder %s34_s5, 4  }
0x10de   :  { %33 = sbr.rel (!%p31_p4) target bundleno = 10 (0xa), region = 155 }

</bundles_post_ra>
